<compile_context>
chip_gen: v6e
topology: v6e:2x2x1
jax: 0.10.0
libtpu: 0.0.40
codegen_flags: <defaults>
</compile_context>

<pallas_src>
import functools

import jax
import jax.numpy as jnp
from jax import lax
from jax.experimental import pallas as pl
from jax.experimental.pallas import tpu as pltpu


def _round_up(x, m):
    return ((x + m - 1) // m) * m


# ---------------------------------------------------------------------------
# Generation-aware sizing knobs.
# ---------------------------------------------------------------------------
def _tpu_config():
    kind = ""
    try:
        kind = jax.devices()[0].device_kind.lower()
    except Exception:
        pass
    is_v7 = ("v7" in kind) or ("7x" in kind)

    vmem_cap = None
    try:
        info = pltpu.get_tpu_info()
        vmem_cap = getattr(info, "vmem_capacity_bytes", None)
    except Exception:
        vmem_cap = None
    if not vmem_cap:
        vmem_cap = (64 << 20) if is_v7 else (128 << 20)
    vmem_cap = int(vmem_cap)

    # Leave headroom for compiler-internal scratch: ~48 MiB on v7x (64 MiB
    # physical per TC), ~96 MiB on v5e/v6e (128 MiB physical).
    vmem_limit = min(vmem_cap * 3 // 4, 100 << 20)
    return {
        "is_v7": is_v7,
        "vmem_limit": vmem_limit,
        "budget": vmem_limit * 3 // 4,          # block-sizing budget
        "bf16_gates": ("v6" in kind) or is_v7,  # bf16 EUP on v6e/v7x only
    }


def _pick_time_block(t, bt, hp, op, budget_bytes):
    """Largest TB whose double-buffered blocks + scratch fit the VMEM budget."""
    g = 3 * hp
    best = 1
    for tb in (1, 2, 4, 8, 16, 32):
        if tb > t:
            break
        need = (2 * tb * bt * g * 2      # gi block (bf16), double-buffered
                + 2 * tb * bt * hp * 2   # seq-out block (bf16), double-buffered
                + 2 * hp * g * 2         # W_hh (bf16), double-buffered
                + 2 * hp * op * 2        # W_fc (bf16), double-buffered (last layer)
                + bt * op * 4            # fc output block
                + bt * hp * 4            # h scratch
                + 8 * bt * hp * 4)       # gate temporaries / vreg headroom
        if need <= budget_bytes:
            best = tb
    return best


def _pick_row_tile(m, f, n, budget_bytes):
    """Row tile for the input projection: 256-512 sweet spot, VMEM-checked."""
    for tm in (512, 256, 128, 64, 32, 16):
        if tm > m or m % tm != 0:
            continue
        need = (2 * tm * f * 2      # x block (bf16), double-buffered
                + 2 * tm * n * 2    # gi out block (bf16), double-buffered
                + 2 * f * n * 2     # weight (bf16), double-buffered
                + 2 * n * 4)        # bias
        if need <= budget_bytes:
            return tm
    return 16  # m is always a multiple of 16


# ---------------------------------------------------------------------------
# Kernel 1: batched input projection  gi = x @ W_ih^T + b_ih  (all timesteps).
# ---------------------------------------------------------------------------
def _matmul_bias_kernel(x_ref, w_ref, b_ref, o_ref):
    o_ref[...] = (jnp.dot(x_ref[...], w_ref[...],
                          preferred_element_type=jnp.float32)
                  + b_ref[...]).astype(o_ref.dtype)


def input_projection(x2d, w, b, *, tm, vmem_limit):
    """x2d: (M, F) bf16, w: (F, 3Hp) bf16, b: (1, 3Hp) f32 -> (M, 3Hp) bf16."""
    m, f = x2d.shape
    n = w.shape[1]
    return pl.pallas_call(
        _matmul_bias_kernel,
        out_shape=jax.ShapeDtypeStruct((m, n), jnp.bfloat16),
        grid_spec=pltpu.PrefetchScalarGridSpec(
            num_scalar_prefetch=0,
            grid=(m // tm,),
            in_specs=[
                pl.BlockSpec((tm, f), lambda i: (i, 0)),
                pl.BlockSpec((f, n), lambda i: (0, 0)),
                pl.BlockSpec((1, n), lambda i: (0, 0)),
            ],
            out_specs=pl.BlockSpec((tm, n), lambda i: (i, 0)),
        ),
        compiler_params=pltpu.CompilerParams(
            dimension_semantics=("parallel",),
            vmem_limit_bytes=vmem_limit),
    )(x2d, w, b)


# ---------------------------------------------------------------------------
# Shared GRU gate math (gi: bf16 block-slice, gh/h: f32; h carry stays f32).
# ---------------------------------------------------------------------------
def _gru_cell(gi, gh, h, hp, act):
    r = jax.nn.sigmoid((gi[:, 0:hp] + gh[:, 0:hp]).astype(act)).astype(jnp.float32)
    z = jax.nn.sigmoid((gi[:, hp:2 * hp] + gh[:, hp:2 * hp]).astype(act)).astype(jnp.float32)
    n = jnp.tanh((gi[:, 2 * hp:] + r * gh[:, 2 * hp:]).astype(act)).astype(jnp.float32)
    return n + z * (h - n)                       # == (1-z)*n + z*h


# ---------------------------------------------------------------------------
# Kernel 2: GRU recurrence emitting the full hidden sequence (middle layers).
# ---------------------------------------------------------------------------
def _gru_seq_kernel(gi_ref, whh_ref, bhh_ref, out_ref, h_ref,
                    *, hp, tb, rem, masked, act):
    @pl.when(pl.program_id(1) == 0)
    def _():
        h_ref[...] = jnp.zeros_like(h_ref)

    whh = whh_ref[...]          # (Hp, 3Hp) bf16, hoisted out of the time loop
    bhh = bhh_ref[...]          # (1, 3Hp) f32
    if masked:
        valid = jnp.where(pl.program_id(1) == pl.num_programs(1) - 1, rem, tb)

    def step(i, carry):
        h = h_ref[...]                                   # (BT, Hp) f32
        gi = gi_ref[i]                                   # (BT, 3Hp) bf16
        gh = jnp.dot(h.astype(jnp.bfloat16), whh,
                     preferred_element_type=jnp.float32) + bhh
        h_new = _gru_cell(gi, gh, h, hp, act)
        if masked:
            h_new = jnp.where(i < valid, h_new, h)       # freeze past valid T
        h_ref[...] = h_new
        out_ref[i] = h_new.astype(out_ref.dtype)
        return carry

    lax.fori_loop(0, tb, step, 0, unroll=min(tb, 8))


def gru_recurrence_seq(gi, whh, bhh, *, tb, bt, hp, rem, masked, act,
                       vmem_limit):
    """gi: (Tp, Bp, 3Hp) bf16 -> hidden sequence (Tp, Bp, Hp) bf16."""
    t, bp, g = gi.shape
    kernel = functools.partial(_gru_seq_kernel, hp=hp, tb=tb, rem=rem,
                               masked=masked, act=act)
    return pl.pallas_call(
        kernel,
        out_shape=jax.ShapeDtypeStruct((t, bp, hp), jnp.bfloat16),
        grid_spec=pltpu.PrefetchScalarGridSpec(
            num_scalar_prefetch=0,
            grid=(bp // bt, t // tb),
            in_specs=[
                pl.BlockSpec((tb, bt, g), lambda b, ti: (ti, b, 0)),
                pl.BlockSpec((hp, g), lambda b, ti: (0, 0)),
                pl.BlockSpec((1, g), lambda b, ti: (0, 0)),
            ],
            out_specs=pl.BlockSpec((tb, bt, hp), lambda b, ti: (ti, b, 0)),
            scratch_shapes=[pltpu.VMEM((bt, hp), jnp.float32)],
        ),
        compiler_params=pltpu.CompilerParams(
            dimension_semantics=("parallel", "arbitrary"),
            vmem_limit_bytes=vmem_limit),
    )(gi, whh, bhh)


# ---------------------------------------------------------------------------
# Kernel 3: last GRU layer, keeps h resident and fuses the fc projection.
# ---------------------------------------------------------------------------
def _gru_last_fc_kernel(gi_ref, whh_ref, bhh_ref, wfc_ref, bfc_ref, out_ref,
                        h_ref, *, hp, tb, rem, masked, act):
    t_blk = pl.program_id(1)

    @pl.when(t_blk == 0)
    def _():
        h_ref[...] = jnp.zeros_like(h_ref)

    whh = whh_ref[...]
    bhh = bhh_ref[...]
    if masked:
        valid = jnp.where(t_blk == pl.num_programs(1) - 1, rem, tb)

    def step(i, carry):
        h = h_ref[...]
        gi = gi_ref[i]
        gh = jnp.dot(h.astype(jnp.bfloat16), whh,
                     preferred_element_type=jnp.float32) + bhh
        h_new = _gru_cell(gi, gh, h, hp, act)
        if masked:
            h_new = jnp.where(i < valid, h_new, h)
        h_ref[...] = h_new
        return carry

    lax.fori_loop(0, tb, step, 0, unroll=min(tb, 8))

    @pl.when(t_blk == pl.num_programs(1) - 1)
    def _():
        h = h_ref[...]
        out_ref[...] = (jnp.dot(h.astype(jnp.bfloat16), wfc_ref[...],
                                preferred_element_type=jnp.float32)
                        + bfc_ref[...]).astype(out_ref.dtype)


def gru_recurrence_last_fc(gi, whh, bhh, wfc, bfc, *, tb, bt, hp, rem, masked,
                           act, vmem_limit):
    """gi: (Tp, Bp, 3Hp) bf16 -> fc(last valid hidden state): (Bp, Op) f32."""
    t, bp, g = gi.shape
    op = wfc.shape[1]
    kernel = functools.partial(_gru_last_fc_kernel, hp=hp, tb=tb, rem=rem,
                               masked=masked, act=act)
    return pl.pallas_call(
        kernel,
        out_shape=jax.ShapeDtypeStruct((bp, op), jnp.float32),
        grid_spec=pltpu.PrefetchScalarGridSpec(
            num_scalar_prefetch=0,
            grid=(bp // bt, t // tb),
            in_specs=[
                pl.BlockSpec((tb, bt, g), lambda b, ti: (ti, b, 0)),
                pl.BlockSpec((hp, g), lambda b, ti: (0, 0)),
                pl.BlockSpec((1, g), lambda b, ti: (0, 0)),
                pl.BlockSpec((hp, op), lambda b, ti: (0, 0)),
                pl.BlockSpec((1, op), lambda b, ti: (0, 0)),
            ],
            out_specs=pl.BlockSpec((bt, op), lambda b, ti: (b, 0)),
            scratch_shapes=[pltpu.VMEM((bt, hp), jnp.float32)],
        ),
        compiler_params=pltpu.CompilerParams(
            dimension_semantics=("parallel", "arbitrary"),
            vmem_limit_bytes=vmem_limit),
    )(gi, whh, bhh, wfc, bfc)


# ---------------------------------------------------------------------------
# Parameter init (PyTorch-style shapes) and weight repacking helpers.
# ---------------------------------------------------------------------------
def init_rnn_params(key, input_size, hidden_size, num_layers, num_outputs):
    params = {"gru": [], "fc": None}
    bound = 1.0 / jnp.sqrt(jnp.float32(hidden_size))
    for layer in range(num_layers):
        in_dim = input_size if layer == 0 else hidden_size
        key, k1, k2, k3, k4 = jax.random.split(key, 5)
        w_ih = jax.random.uniform(k1, (3 * hidden_size, in_dim),
                                  jnp.float32, -bound, bound)
        w_hh = jax.random.uniform(k2, (3 * hidden_size, hidden_size),
                                  jnp.float32, -bound, bound)
        b_ih = jax.random.uniform(k3, (3 * hidden_size,), jnp.float32, -bound, bound)
        b_hh = jax.random.uniform(k4, (3 * hidden_size,), jnp.float32, -bound, bound)
        params["gru"].append((w_ih, w_hh, b_ih, b_hh))
    key, k1, k2 = jax.random.split(key, 3)
    w_fc = jax.random.uniform(k1, (num_outputs, hidden_size),
                              jnp.float32, -bound, bound)
    b_fc = jax.random.uniform(k2, (num_outputs,), jnp.float32, -bound, bound)
    params["fc"] = (w_fc, b_fc)
    return params


def _pack_gate_weights(w, hidden, hp, in_pad):
    """(3H, in_dim) PyTorch weight -> (in_pad, 3*hp), each gate 128-aligned, zero padded."""
    in_dim = w.shape[1]
    cols = []
    for g in jnp.split(w, 3, axis=0):                       # (H, in_dim) per gate
        g = jnp.pad(g, ((0, hp - hidden), (0, in_pad - in_dim)))
        cols.append(g.T)                                    # (in_pad, hp)
    return jnp.concatenate(cols, axis=1)                    # (in_pad, 3*hp)


def _pack_gate_bias(b, hidden, hp):
    parts = [jnp.pad(g, (0, hp - hidden)) for g in jnp.split(b, 3)]
    return jnp.concatenate(parts).reshape(1, -1).astype(jnp.float32)


# ---------------------------------------------------------------------------
# Forward pass (equivalent of RNN.forward).
# ---------------------------------------------------------------------------
def rnn_forward(params, x_btf):
    """x_btf: (B, T, input_size) -> (B, num_outputs)."""
    cfg = _tpu_config()
    vmem_limit = cfg["vmem_limit"]
    budget = cfg["budget"]
    act = jnp.bfloat16 if cfg["bf16_gates"] else jnp.float32

    gru_params = params["gru"]
    w_fc, b_fc = params["fc"]
    hidden = gru_params[0][1].shape[1]          # w_hh: (3H, H)
    num_outputs = w_fc.shape[0]

    B, T, F = x_btf.shape
    Bp = _round_up(max(B, 16), 16)              # bf16 sublane-dense batch rows
    Hp = _round_up(max(hidden, 128), 128)
    Op = _round_up(max(num_outputs, 128), 128)
    Fp = _round_up(max(F, 128), 128)

    # Split the batch across TensorCores only on dual-TC v7x; on single-TC
    # chips the split would just shrink the matmul M-dim for no gain.
    num_b_tiles = 2 if (cfg["is_v7"] and Bp % 32 == 0) else 1
    BT = Bp // num_b_tiles

    # VMEM-budget-aware time block; ragged T handled by padding + masking.
    TB = _pick_time_block(T, BT, Hp, Op, budget)
    Tp = _round_up(T, TB)
    n_tblk = Tp // TB
    rem = T - (n_tblk - 1) * TB                 # valid steps in last block
    masked = (rem != TB)

    # batch_first -> time-major, pad time/batch/feature, bf16 into the MXU.
    x = jnp.transpose(x_btf, (1, 0, 2)).astype(jnp.float32)        # (T, B, F)
    x = jnp.pad(x, ((0, Tp - T), (0, Bp - B), (0, Fp - F)))
    seq = x.astype(jnp.bfloat16)                                   # (Tp, Bp, Fp)
    in_pad = Fp

    n_layers = len(gru_params)
    y = None
    for li, (w_ih, w_hh, b_ih, b_hh) in enumerate(gru_params):
        wih_p = _pack_gate_weights(w_ih, hidden, Hp, in_pad).astype(jnp.bfloat16)
        whh_p = _pack_gate_weights(w_hh, hidden, Hp, Hp).astype(jnp.bfloat16)
        bih_p = _pack_gate_bias(b_ih, hidden, Hp)
        bhh_p = _pack_gate_bias(b_hh, hidden, Hp)

        # (1) One big lane-dense GEMM over all timesteps for the input proj,
        #     with a row tile independent of the recurrence blocking; gi is
        #     stored as bf16 to halve the dominant HBM stream.
        m_rows = Tp * Bp
        tm = _pick_row_tile(m_rows, in_pad, 3 * Hp, budget)
        gi2d = input_projection(seq.reshape(m_rows, in_pad), wih_p, bih_p,
                                tm=tm, vmem_limit=vmem_limit)
        gi = gi2d.reshape(Tp, Bp, 3 * Hp)

        if li < n_layers - 1:
            # (2) Serial recurrence, TB timesteps per grid step; bf16 seq out.
            seq = gru_recurrence_seq(gi, whh_p, bhh_p, tb=TB, bt=BT, hp=Hp,
                                     rem=rem, masked=masked, act=act,
                                     vmem_limit=vmem_limit)
            in_pad = Hp
        else:
            # (3) Last layer: keep h resident, fuse fc, emit only (Bp, Op).
            wfc_p = jnp.pad(w_fc, ((0, Op - num_outputs),
                                   (0, Hp - hidden))).T.astype(jnp.bfloat16)
            bfc_p = jnp.pad(b_fc, (0, Op - num_outputs)).reshape(1, -1)
            bfc_p = bfc_p.astype(jnp.float32)
            y = gru_recurrence_last_fc(gi, whh_p, bhh_p, wfc_p, bfc_p,
                                       tb=TB, bt=BT, hp=Hp, rem=rem,
                                       masked=masked, act=act,
                                       vmem_limit=vmem_limit)

    return y[:B, :num_outputs]


if __name__ == "__main__":
    input_size = 16
    hidden_size = 32
    num_layers = 2
    num_outputs = 4
    batch = 2
    seq_len = 8

    key = jax.random.PRNGKey(0)
    key, pkey, xkey = jax.random.split(key, 3)
    params = init_rnn_params(pkey, input_size, hidden_size, num_layers, num_outputs)
    x = jax.random.normal(xkey, (batch, seq_len, input_size), jnp.float32)

    out = jax.jit(rnn_forward)(params, x)
    out = jax.block_until_ready(out)
    assert out.shape == (batch, num_outputs)
    print("KERNEL_OK")
</pallas_src>

<mosaic_0001>
module attributes {stable_mosaic.version = 11 : i64} {
  func.func @_matmul_bias_kernel(%arg0: i32, %arg1: memref<128x128xbf16, #tpu.memory_space<vmem>>, %arg2: memref<128x384xbf16, #tpu.memory_space<vmem>>, %arg3: memref<1x384xf32, #tpu.memory_space<vmem>>, %arg4: memref<128x384xbf16, #tpu.memory_space<vmem>>) attributes {dimension_semantics = [#tpu.dimension_semantics<parallel>], iteration_bounds = array<i64: 1>, scalar_prefetch = 0 : i64, scratch_operands = 0 : i64, tpu.core_type = #tpu.core_type<tc>, window_params = [{transform_indices = @transform_0, window_bounds = array<i64: 128, 128>}, {pipeline_mode = #tpu.pipeline_mode<synchronous>, transform_indices = @transform_1, window_bounds = array<i64: 128, 384>}, {pipeline_mode = #tpu.pipeline_mode<synchronous>, transform_indices = @transform_2, window_bounds = array<i64: 1, 384>}, {transform_indices = @transform_3, window_bounds = array<i64: 128, 384>}]} {
    %c0 = arith.constant 0 : index
    %c0_0 = arith.constant 0 : index
    %0 = vector.load %arg1[%c0, %c0_0] : memref<128x128xbf16, #tpu.memory_space<vmem>>, vector<128x128xbf16>
    %c0_1 = arith.constant 0 : index
    %c0_2 = arith.constant 0 : index
    %1 = vector.load %arg2[%c0_1, %c0_2] : memref<128x384xbf16, #tpu.memory_space<vmem>>, vector<128x384xbf16>
    %cst = arith.constant dense<0.000000e+00> : vector<128x384xf32>
    %2 = tpu.matmul %0, %1, %cst {dimension_numbers = #tpu.dot_dimension_numbers<[1], [0], [0], [1], [0, 0, 1, 1], [], []>} : vector<128x128xbf16>, vector<128x384xbf16>, vector<128x384xf32> -> vector<128x384xf32>
    %c0_3 = arith.constant 0 : index
    %c0_4 = arith.constant 0 : index
    %3 = vector.load %arg3[%c0_3, %c0_4] : memref<1x384xf32, #tpu.memory_space<vmem>>, vector<1x384xf32>
    %4 = vector.broadcast %3 : vector<1x384xf32> to vector<128x384xf32>
    %5 = arith.addf %2, %4 : vector<128x384xf32>
    %6 = arith.truncf %5 : vector<128x384xf32> to vector<128x384xbf16>
    %c0_5 = arith.constant 0 : index
    %c0_6 = arith.constant 0 : index
    %7 = vector.load %arg4[%c0_5, %c0_6] : memref<128x384xbf16, #tpu.memory_space<vmem>>, vector<128x384xbf16>
    tpu.vector_store %arg4[%c0_5, %c0_6], %6 {strides = array<i32>} : memref<128x384xbf16, #tpu.memory_space<vmem>>, vector<128x384xbf16>,
    return
  }
  func.func @transform_0(%arg0: i32) -> (i32, i32) {
    %c0_i32 = arith.constant 0 : i32
    %c0_i32_0 = arith.constant 0 : i32
    return %arg0, %c0_i32 : i32, i32
  }
  func.func @transform_1(%arg0: i32) -> (i32, i32) {
    %c0_i32 = arith.constant 0 : i32
    %c0_i32_0 = arith.constant 0 : i32
    %c0_i32_1 = arith.constant 0 : i32
    return %c0_i32, %c0_i32_0 : i32, i32
  }
  func.func @transform_2(%arg0: i32) -> (i32, i32) {
    %c0_i32 = arith.constant 0 : i32
    %c0_i32_0 = arith.constant 0 : i32
    %c0_i32_1 = arith.constant 0 : i32
    return %c0_i32, %c0_i32_0 : i32, i32
  }
  func.func @transform_3(%arg0: i32) -> (i32, i32) {
    %c0_i32 = arith.constant 0 : i32
    %c0_i32_0 = arith.constant 0 : i32
    return %arg0, %c0_i32 : i32, i32
  }
}

module attributes {stable_mosaic.version = 11 : i64} {
  func.func @_gru_seq_kernel(%arg0: i32, %arg1: i32, %arg2: memref<8x16x384xbf16, #tpu.memory_space<vmem>>, %arg3: memref<128x384xbf16, #tpu.memory_space<vmem>>, %arg4: memref<1x384xf32, #tpu.memory_space<vmem>>, %arg5: memref<8x16x128xbf16, #tpu.memory_space<vmem>>, %arg6: memref<16x128xf32, #tpu.memory_space<vmem>>) attributes {dimension_semantics = [#tpu.dimension_semantics<parallel>, #tpu.dimension_semantics<arbitrary>], iteration_bounds = array<i64: 1, 1>, scalar_prefetch = 0 : i64, scratch_operands = 1 : i64, tpu.core_type = #tpu.core_type<tc>, window_params = [{transform_indices = @transform_0, window_bounds = array<i64: 8, 16, 384>}, {pipeline_mode = #tpu.pipeline_mode<synchronous>, transform_indices = @transform_1, window_bounds = array<i64: 128, 384>}, {pipeline_mode = #tpu.pipeline_mode<synchronous>, transform_indices = @transform_2, window_bounds = array<i64: 1, 384>}, {transform_indices = @transform_3, window_bounds = array<i64: 8, 16, 128>}]} {
    %c0_i32 = arith.constant 0 : i32
    %0 = arith.cmpi eq, %arg1, %c0_i32 : i32
    %1 = arith.extui %0 : i1 to i32
    %c0_i32_0 = arith.constant 0 : i32
    %2 = arith.cmpi ne, %1, %c0_i32_0 : i32
    scf.if %2 {
      %cst_92 = arith.constant 0.000000e+00 : f32
      %333 = vector.broadcast %cst_92 : f32 to vector<16x128xf32>
      %c0_93 = arith.constant 0 : index
      %c0_94 = arith.constant 0 : index
      %334 = vector.load %arg6[%c0_93, %c0_94] : memref<16x128xf32, #tpu.memory_space<vmem>>, vector<16x128xf32>
      tpu.vector_store %arg6[%c0_93, %c0_94], %333 {strides = array<i32>} : memref<16x128xf32, #tpu.memory_space<vmem>>, vector<16x128xf32>,
    } else {
    }
    %c0 = arith.constant 0 : index
    %c0_1 = arith.constant 0 : index
    %3 = vector.load %arg3[%c0, %c0_1] : memref<128x384xbf16, #tpu.memory_space<vmem>>, vector<128x384xbf16>
    %c0_2 = arith.constant 0 : index
    %c0_3 = arith.constant 0 : index
    %4 = vector.load %arg4[%c0_2, %c0_3] : memref<1x384xf32, #tpu.memory_space<vmem>>, vector<1x384xf32>
    %c0_i32_4 = arith.constant 0 : i32
    %c0_5 = arith.constant 0 : index
    %c0_6 = arith.constant 0 : index
    %5 = vector.load %arg6[%c0_5, %c0_6] : memref<16x128xf32, #tpu.memory_space<vmem>>, vector<16x128xf32>
    %6 = arith.index_cast %c0_i32_4 : i32 to index
    %c0_7 = arith.constant 0 : index
    %c0_8 = arith.constant 0 : index
    %7 = vector.load %arg2[%6, %c0_7, %c0_8] : memref<8x16x384xbf16, #tpu.memory_space<vmem>>, vector<1x16x384xbf16>
    %8 = vector.shape_cast %7 : vector<1x16x384xbf16> to vector<16x384xbf16>
    %9 = arith.truncf %5 : vector<16x128xf32> to vector<16x128xbf16>
    %cst = arith.constant dense<0.000000e+00> : vector<16x384xf32>
    %10 = tpu.matmul %9, %3, %cst {dimension_numbers = #tpu.dot_dimension_numbers<[1], [0], [0], [1], [0, 0, 1, 1], [], []>} : vector<16x128xbf16>, vector<128x384xbf16>, vector<16x384xf32> -> vector<16x384xf32>
    %11 = vector.broadcast %4 : vector<1x384xf32> to vector<16x384xf32>
    %12 = arith.addf %10, %11 : vector<16x384xf32>
    %13 = vector.extract_strided_slice %8 {offsets = [0, 0], sizes = [16, 128], strides = [1, 1]} : vector<16x384xbf16> to vector<16x128xbf16>
    %14 = vector.extract_strided_slice %12 {offsets = [0, 0], sizes = [16, 128], strides = [1, 1]} : vector<16x384xf32> to vector<16x128xf32>
    %15 = arith.extf %13 : vector<16x128xbf16> to vector<16x128xf32>
    %16 = arith.addf %15, %14 : vector<16x128xf32>
    %17 = arith.negf %16 : vector<16x128xf32>
    %18 = math.exp %17 : vector<16x128xf32>
    %cst_9 = arith.constant 1.000000e+00 : f32
    %19 = vector.broadcast %cst_9 : f32 to vector<16x128xf32>
    %20 = arith.addf %19, %18 : vector<16x128xf32>
    %21 = arith.divf %19, %20 : vector<16x128xf32>
    %22 = vector.extract_strided_slice %8 {offsets = [0, 128], sizes = [16, 128], strides = [1, 1]} : vector<16x384xbf16> to vector<16x128xbf16>
    %23 = vector.extract_strided_slice %12 {offsets = [0, 128], sizes = [16, 128], strides = [1, 1]} : vector<16x384xf32> to vector<16x128xf32>
    %24 = arith.extf %22 : vector<16x128xbf16> to vector<16x128xf32>
    %25 = arith.addf %24, %23 : vector<16x128xf32>
    %26 = arith.negf %25 : vector<16x128xf32>
    %27 = math.exp %26 : vector<16x128xf32>
    %cst_10 = arith.constant 1.000000e+00 : f32
    %28 = vector.broadcast %cst_10 : f32 to vector<16x128xf32>
    %29 = arith.addf %28, %27 : vector<16x128xf32>
    %30 = arith.divf %28, %29 : vector<16x128xf32>
    %31 = vector.extract_strided_slice %8 {offsets = [0, 256], sizes = [16, 128], strides = [1, 1]} : vector<16x384xbf16> to vector<16x128xbf16>
    %32 = vector.extract_strided_slice %12 {offsets = [0, 256], sizes = [16, 128], strides = [1, 1]} : vector<16x384xf32> to vector<16x128xf32>
    %33 = arith.mulf %21, %32 : vector<16x128xf32>
    %34 = arith.extf %31 : vector<16x128xbf16> to vector<16x128xf32>
    %35 = arith.addf %34, %33 : vector<16x128xf32>
    %36 = math.tanh %35 : vector<16x128xf32>
    %37 = arith.subf %5, %36 : vector<16x128xf32>
    %38 = arith.mulf %30, %37 : vector<16x128xf32>
    %39 = arith.addf %36, %38 : vector<16x128xf32>
    %c0_11 = arith.constant 0 : index
    %c0_12 = arith.constant 0 : index
    %40 = vector.load %arg6[%c0_11, %c0_12] : memref<16x128xf32, #tpu.memory_space<vmem>>, vector<16x128xf32>
    tpu.vector_store %arg6[%c0_11, %c0_12], %39 {strides = array<i32>} : memref<16x128xf32, #tpu.memory_space<vmem>>, vector<16x128xf32>,
    %41 = arith.truncf %39 : vector<16x128xf32> to vector<16x128xbf16>
    %42 = arith.index_cast %c0_i32_4 : i32 to index
    %c0_13 = arith.constant 0 : index
    %c0_14 = arith.constant 0 : index
    %43 = vector.load %arg5[%42, %c0_13, %c0_14] : memref<8x16x128xbf16, #tpu.memory_space<vmem>>, vector<1x16x128xbf16>
    %44 = vector.shape_cast %43 : vector<1x16x128xbf16> to vector<16x128xbf16>
    %45 = vector.shape_cast %41 : vector<16x128xbf16> to vector<1x16x128xbf16>
    tpu.vector_store %arg5[%42, %c0_13, %c0_14], %45 {strides = array<i32>} : memref<8x16x128xbf16, #tpu.memory_space<vmem>>, vector<1x16x128xbf16>,
    %c1_i32 = arith.constant 1 : i32
    %c0_15 = arith.constant 0 : index
    %c0_16 = arith.constant 0 : index
    %46 = vector.load %arg6[%c0_15, %c0_16] : memref<16x128xf32, #tpu.memory_space<vmem>>, vector<16x128xf32>
    %47 = arith.index_cast %c1_i32 : i32 to index
    %c0_17 = arith.constant 0 : index
    %c0_18 = arith.constant 0 : index
    %48 = vector.load %arg2[%47, %c0_17, %c0_18] : memref<8x16x384xbf16, #tpu.memory_space<vmem>>, vector<1x16x384xbf16>
    %49 = vector.shape_cast %48 : vector<1x16x384xbf16> to vector<16x384xbf16>
    %50 = arith.truncf %46 : vector<16x128xf32> to vector<16x128xbf16>
    %cst_19 = arith.constant dense<0.000000e+00> : vector<16x384xf32>
    %51 = tpu.matmul %50, %3, %cst_19 {dimension_numbers = #tpu.dot_dimension_numbers<[1], [0], [0], [1], [0, 0, 1, 1], [], []>} : vector<16x128xbf16>, vector<128x384xbf16>, vector<16x384xf32> -> vector<16x384xf32>
    %52 = vector.broadcast %4 : vector<1x384xf32> to vector<16x384xf32>
    %53 = arith.addf %51, %52 : vector<16x384xf32>
    %54 = vector.extract_strided_slice %49 {offsets = [0, 0], sizes = [16, 128], strides = [1, 1]} : vector<16x384xbf16> to vector<16x128xbf16>
    %55 = vector.extract_strided_slice %53 {offsets = [0, 0], sizes = [16, 128], strides = [1, 1]} : vector<16x384xf32> to vector<16x128xf32>
    %56 = arith.extf %54 : vector<16x128xbf16> to vector<16x128xf32>
    %57 = arith.addf %56, %55 : vector<16x128xf32>
    %58 = arith.negf %57 : vector<16x128xf32>
    %59 = math.exp %58 : vector<16x128xf32>
    %cst_20 = arith.constant 1.000000e+00 : f32
    %60 = vector.broadcast %cst_20 : f32 to vector<16x128xf32>
    %61 = arith.addf %60, %59 : vector<16x128xf32>
    %62 = arith.divf %60, %61 : vector<16x128xf32>
    %63 = vector.extract_strided_slice %49 {offsets = [0, 128], sizes = [16, 128], strides = [1, 1]} : vector<16x384xbf16> to vector<16x128xbf16>
    %64 = vector.extract_strided_slice %53 {offsets = [0, 128], sizes = [16, 128], strides = [1, 1]} : vector<16x384xf32> to vector<16x128xf32>
    %65 = arith.extf %63 : vector<16x128xbf16> to vector<16x128xf32>
    %66 = arith.addf %65, %64 : vector<16x128xf32>
    %67 = arith.negf %66 : vector<16x128xf32>
    %68 = math.exp %67 : vector<16x128xf32>
    %cst_21 = arith.constant 1.000000e+00 : f32
    %69 = vector.broadcast %cst_21 : f32 to vector<16x128xf32>
    %70 = arith.addf %69, %68 : vector<16x128xf32>
    %71 = arith.divf %69, %70 : vector<16x128xf32>
    %72 = vector.extract_strided_slice %49 {offsets = [0, 256], sizes = [16, 128], strides = [1, 1]} : vector<16x384xbf16> to vector<16x128xbf16>
    %73 = vector.extract_strided_slice %53 {offsets = [0, 256], sizes = [16, 128], strides = [1, 1]} : vector<16x384xf32> to vector<16x128xf32>
    %74 = arith.mulf %62, %73 : vector<16x128xf32>
    %75 = arith.extf %72 : vector<16x128xbf16> to vector<16x128xf32>
    %76 = arith.addf %75, %74 : vector<16x128xf32>
    %77 = math.tanh %76 : vector<16x128xf32>
    %78 = arith.subf %46, %77 : vector<16x128xf32>
    %79 = arith.mulf %71, %78 : vector<16x128xf32>
    %80 = arith.addf %77, %79 : vector<16x128xf32>
    %c0_22 = arith.constant 0 : index
    %c0_23 = arith.constant 0 : index
    %81 = vector.load %arg6[%c0_22, %c0_23] : memref<16x128xf32, #tpu.memory_space<vmem>>, vector<16x128xf32>
    tpu.vector_store %arg6[%c0_22, %c0_23], %80 {strides = array<i32>} : memref<16x128xf32, #tpu.memory_space<vmem>>, vector<16x128xf32>,
    %82 = arith.truncf %80 : vector<16x128xf32> to vector<16x128xbf16>
    %83 = arith.index_cast %c1_i32 : i32 to index
    %c0_24 = arith.constant 0 : index
    %c0_25 = arith.constant 0 : index
    %84 = vector.load %arg5[%83, %c0_24, %c0_25] : memref<8x16x128xbf16, #tpu.memory_space<vmem>>, vector<1x16x128xbf16>
    %85 = vector.shape_cast %84 : vector<1x16x128xbf16> to vector<16x128xbf16>
    %86 = vector.shape_cast %82 : vector<16x128xbf16> to vector<1x16x128xbf16>
    tpu.vector_store %arg5[%83, %c0_24, %c0_25], %86 {strides = array<i32>} : memref<8x16x128xbf16, #tpu.memory_space<vmem>>, vector<1x16x128xbf16>,
    %c2_i32 = arith.constant 2 : i32
    %c0_26 = arith.constant 0 : index
    %c0_27 = arith.constant 0 : index
    %87 = vector.load %arg6[%c0_26, %c0_27] : memref<16x128xf32, #tpu.memory_space<vmem>>, vector<16x128xf32>
    %88 = arith.index_cast %c2_i32 : i32 to index
    %c0_28 = arith.constant 0 : index
    %c0_29 = arith.constant 0 : index
    %89 = vector.load %arg2[%88, %c0_28, %c0_29] : memref<8x16x384xbf16, #tpu.memory_space<vmem>>, vector<1x16x384xbf16>
    %90 = vector.shape_cast %89 : vector<1x16x384xbf16> to vector<16x384xbf16>
    %91 = arith.truncf %87 : vector<16x128xf32> to vector<16x128xbf16>
    %cst_30 = arith.constant dense<0.000000e+00> : vector<16x384xf32>
    %92 = tpu.matmul %91, %3, %cst_30 {dimension_numbers = #tpu.dot_dimension_numbers<[1], [0], [0], [1], [0, 0, 1, 1], [], []>} : vector<16x128xbf16>, vector<128x384xbf16>, vector<16x384xf32> -> vector<16x384xf32>
    %93 = vector.broadcast %4 : vector<1x384xf32> to vector<16x384xf32>
    %94 = arith.addf %92, %93 : vector<16x384xf32>
    %95 = vector.extract_strided_slice %90 {offsets = [0, 0], sizes = [16, 128], strides = [1, 1]} : vector<16x384xbf16> to vector<16x128xbf16>
    %96 = vector.extract_strided_slice %94 {offsets = [0, 0], sizes = [16, 128], strides = [1, 1]} : vector<16x384xf32> to vector<16x128xf32>
    %97 = arith.extf %95 : vector<16x128xbf16> to vector<16x128xf32>
    %98 = arith.addf %97, %96 : vector<16x128xf32>
    %99 = arith.negf %98 : vector<16x128xf32>
    %100 = math.exp %99 : vector<16x128xf32>
    %cst_31 = arith.constant 1.000000e+00 : f32
    %101 = vector.broadcast %cst_31 : f32 to vector<16x128xf32>
    %102 = arith.addf %101, %100 : vector<16x128xf32>
    %103 = arith.divf %101, %102 : vector<16x128xf32>
    %104 = vector.extract_strided_slice %90 {offsets = [0, 128], sizes = [16, 128], strides = [1, 1]} : vector<16x384xbf16> to vector<16x128xbf16>
    %105 = vector.extract_strided_slice %94 {offsets = [0, 128], sizes = [16, 128], strides = [1, 1]} : vector<16x384xf32> to vector<16x128xf32>
    %106 = arith.extf %104 : vector<16x128xbf16> to vector<16x128xf32>
    %107 = arith.addf %106, %105 : vector<16x128xf32>
    %108 = arith.negf %107 : vector<16x128xf32>
    %109 = math.exp %108 : vector<16x128xf32>
    %cst_32 = arith.constant 1.000000e+00 : f32
    %110 = vector.broadcast %cst_32 : f32 to vector<16x128xf32>
    %111 = arith.addf %110, %109 : vector<16x128xf32>
    %112 = arith.divf %110, %111 : vector<16x128xf32>
    %113 = vector.extract_strided_slice %90 {offsets = [0, 256], sizes = [16, 128], strides = [1, 1]} : vector<16x384xbf16> to vector<16x128xbf16>
    %114 = vector.extract_strided_slice %94 {offsets = [0, 256], sizes = [16, 128], strides = [1, 1]} : vector<16x384xf32> to vector<16x128xf32>
    %115 = arith.mulf %103, %114 : vector<16x128xf32>
    %116 = arith.extf %113 : vector<16x128xbf16> to vector<16x128xf32>
    %117 = arith.addf %116, %115 : vector<16x128xf32>
    %118 = math.tanh %117 : vector<16x128xf32>
    %119 = arith.subf %87, %118 : vector<16x128xf32>
    %120 = arith.mulf %112, %119 : vector<16x128xf32>
    %121 = arith.addf %118, %120 : vector<16x128xf32>
    %c0_33 = arith.constant 0 : index
    %c0_34 = arith.constant 0 : index
    %122 = vector.load %arg6[%c0_33, %c0_34] : memref<16x128xf32, #tpu.memory_space<vmem>>, vector<16x128xf32>
    tpu.vector_store %arg6[%c0_33, %c0_34], %121 {strides = array<i32>} : memref<16x128xf32, #tpu.memory_space<vmem>>, vector<16x128xf32>,
    %123 = arith.truncf %121 : vector<16x128xf32> to vector<16x128xbf16>
    %124 = arith.index_cast %c2_i32 : i32 to index
    %c0_35 = arith.constant 0 : index
    %c0_36 = arith.constant 0 : index
    %125 = vector.load %arg5[%124, %c0_35, %c0_36] : memref<8x16x128xbf16, #tpu.memory_space<vmem>>, vector<1x16x128xbf16>
    %126 = vector.shape_cast %125 : vector<1x16x128xbf16> to vector<16x128xbf16>
    %127 = vector.shape_cast %123 : vector<16x128xbf16> to vector<1x16x128xbf16>
    tpu.vector_store %arg5[%124, %c0_35, %c0_36], %127 {strides = array<i32>} : memref<8x16x128xbf16, #tpu.memory_space<vmem>>, vector<1x16x128xbf16>,
    %c3_i32 = arith.constant 3 : i32
    %c0_37 = arith.constant 0 : index
    %c0_38 = arith.constant 0 : index
    %128 = vector.load %arg6[%c0_37, %c0_38] : memref<16x128xf32, #tpu.memory_space<vmem>>, vector<16x128xf32>
    %129 = arith.index_cast %c3_i32 : i32 to index
    %c0_39 = arith.constant 0 : index
    %c0_40 = arith.constant 0 : index
    %130 = vector.load %arg2[%129, %c0_39, %c0_40] : memref<8x16x384xbf16, #tpu.memory_space<vmem>>, vector<1x16x384xbf16>
    %131 = vector.shape_cast %130 : vector<1x16x384xbf16> to vector<16x384xbf16>
    %132 = arith.truncf %128 : vector<16x128xf32> to vector<16x128xbf16>
    %cst_41 = arith.constant dense<0.000000e+00> : vector<16x384xf32>
    %133 = tpu.matmul %132, %3, %cst_41 {dimension_numbers = #tpu.dot_dimension_numbers<[1], [0], [0], [1], [0, 0, 1, 1], [], []>} : vector<16x128xbf16>, vector<128x384xbf16>, vector<16x384xf32> -> vector<16x384xf32>
    %134 = vector.broadcast %4 : vector<1x384xf32> to vector<16x384xf32>
    %135 = arith.addf %133, %134 : vector<16x384xf32>
    %136 = vector.extract_strided_slice %131 {offsets = [0, 0], sizes = [16, 128], strides = [1, 1]} : vector<16x384xbf16> to vector<16x128xbf16>
    %137 = vector.extract_strided_slice %135 {offsets = [0, 0], sizes = [16, 128], strides = [1, 1]} : vector<16x384xf32> to vector<16x128xf32>
    %138 = arith.extf %136 : vector<16x128xbf16> to vector<16x128xf32>
    %139 = arith.addf %138, %137 : vector<16x128xf32>
    %140 = arith.negf %139 : vector<16x128xf32>
    %141 = math.exp %140 : vector<16x128xf32>
    %cst_42 = arith.constant 1.000000e+00 : f32
    %142 = vector.broadcast %cst_42 : f32 to vector<16x128xf32>
    %143 = arith.addf %142, %141 : vector<16x128xf32>
    %144 = arith.divf %142, %143 : vector<16x128xf32>
    %145 = vector.extract_strided_slice %131 {offsets = [0, 128], sizes = [16, 128], strides = [1, 1]} : vector<16x384xbf16> to vector<16x128xbf16>
    %146 = vector.extract_strided_slice %135 {offsets = [0, 128], sizes = [16, 128], strides = [1, 1]} : vector<16x384xf32> to vector<16x128xf32>
    %147 = arith.extf %145 : vector<16x128xbf16> to vector<16x128xf32>
    %148 = arith.addf %147, %146 : vector<16x128xf32>
    %149 = arith.negf %148 : vector<16x128xf32>
    %150 = math.exp %149 : vector<16x128xf32>
    %cst_43 = arith.constant 1.000000e+00 : f32
    %151 = vector.broadcast %cst_43 : f32 to vector<16x128xf32>
    %152 = arith.addf %151, %150 : vector<16x128xf32>
    %153 = arith.divf %151, %152 : vector<16x128xf32>
    %154 = vector.extract_strided_slice %131 {offsets = [0, 256], sizes = [16, 128], strides = [1, 1]} : vector<16x384xbf16> to vector<16x128xbf16>
    %155 = vector.extract_strided_slice %135 {offsets = [0, 256], sizes = [16, 128], strides = [1, 1]} : vector<16x384xf32> to vector<16x128xf32>
    %156 = arith.mulf %144, %155 : vector<16x128xf32>
    %157 = arith.extf %154 : vector<16x128xbf16> to vector<16x128xf32>
    %158 = arith.addf %157, %156 : vector<16x128xf32>
    %159 = math.tanh %158 : vector<16x128xf32>
    %160 = arith.subf %128, %159 : vector<16x128xf32>
    %161 = arith.mulf %153, %160 : vector<16x128xf32>
    %162 = arith.addf %159, %161 : vector<16x128xf32>
    %c0_44 = arith.constant 0 : index
    %c0_45 = arith.constant 0 : index
    %163 = vector.load %arg6[%c0_44, %c0_45] : memref<16x128xf32, #tpu.memory_space<vmem>>, vector<16x128xf32>
    tpu.vector_store %arg6[%c0_44, %c0_45], %162 {strides = array<i32>} : memref<16x128xf32, #tpu.memory_space<vmem>>, vector<16x128xf32>,
    %164 = arith.truncf %162 : vector<16x128xf32> to vector<16x128xbf16>
    %165 = arith.index_cast %c3_i32 : i32 to index
    %c0_46 = arith.constant 0 : index
    %c0_47 = arith.constant 0 : index
    %166 = vector.load %arg5[%165, %c0_46, %c0_47] : memref<8x16x128xbf16, #tpu.memory_space<vmem>>, vector<1x16x128xbf16>
    %167 = vector.shape_cast %166 : vector<1x16x128xbf16> to vector<16x128xbf16>
    %168 = vector.shape_cast %164 : vector<16x128xbf16> to vector<1x16x128xbf16>
    tpu.vector_store %arg5[%165, %c0_46, %c0_47], %168 {strides = array<i32>} : memref<8x16x128xbf16, #tpu.memory_space<vmem>>, vector<1x16x128xbf16>,
    %c4_i32 = arith.constant 4 : i32
    %c0_48 = arith.constant 0 : index
    %c0_49 = arith.constant 0 : index
    %169 = vector.load %arg6[%c0_48, %c0_49] : memref<16x128xf32, #tpu.memory_space<vmem>>, vector<16x128xf32>
    %170 = arith.index_cast %c4_i32 : i32 to index
    %c0_50 = arith.constant 0 : index
    %c0_51 = arith.constant 0 : index
    %171 = vector.load %arg2[%170, %c0_50, %c0_51] : memref<8x16x384xbf16, #tpu.memory_space<vmem>>, vector<1x16x384xbf16>
    %172 = vector.shape_cast %171 : vector<1x16x384xbf16> to vector<16x384xbf16>
    %173 = arith.truncf %169 : vector<16x128xf32> to vector<16x128xbf16>
    %cst_52 = arith.constant dense<0.000000e+00> : vector<16x384xf32>
    %174 = tpu.matmul %173, %3, %cst_52 {dimension_numbers = #tpu.dot_dimension_numbers<[1], [0], [0], [1], [0, 0, 1, 1], [], []>} : vector<16x128xbf16>, vector<128x384xbf16>, vector<16x384xf32> -> vector<16x384xf32>
    %175 = vector.broadcast %4 : vector<1x384xf32> to vector<16x384xf32>
    %176 = arith.addf %174, %175 : vector<16x384xf32>
    %177 = vector.extract_strided_slice %172 {offsets = [0, 0], sizes = [16, 128], strides = [1, 1]} : vector<16x384xbf16> to vector<16x128xbf16>
    %178 = vector.extract_strided_slice %176 {offsets = [0, 0], sizes = [16, 128], strides = [1, 1]} : vector<16x384xf32> to vector<16x128xf32>
    %179 = arith.extf %177 : vector<16x128xbf16> to vector<16x128xf32>
    %180 = arith.addf %179, %178 : vector<16x128xf32>
    %181 = arith.negf %180 : vector<16x128xf32>
    %182 = math.exp %181 : vector<16x128xf32>
    %cst_53 = arith.constant 1.000000e+00 : f32
    %183 = vector.broadcast %cst_53 : f32 to vector<16x128xf32>
    %184 = arith.addf %183, %182 : vector<16x128xf32>
    %185 = arith.divf %183, %184 : vector<16x128xf32>
    %186 = vector.extract_strided_slice %172 {offsets = [0, 128], sizes = [16, 128], strides = [1, 1]} : vector<16x384xbf16> to vector<16x128xbf16>
    %187 = vector.extract_strided_slice %176 {offsets = [0, 128], sizes = [16, 128], strides = [1, 1]} : vector<16x384xf32> to vector<16x128xf32>
    %188 = arith.extf %186 : vector<16x128xbf16> to vector<16x128xf32>
    %189 = arith.addf %188, %187 : vector<16x128xf32>
    %190 = arith.negf %189 : vector<16x128xf32>
    %191 = math.exp %190 : vector<16x128xf32>
    %cst_54 = arith.constant 1.000000e+00 : f32
    %192 = vector.broadcast %cst_54 : f32 to vector<16x128xf32>
    %193 = arith.addf %192, %191 : vector<16x128xf32>
    %194 = arith.divf %192, %193 : vector<16x128xf32>
    %195 = vector.extract_strided_slice %172 {offsets = [0, 256], sizes = [16, 128], strides = [1, 1]} : vector<16x384xbf16> to vector<16x128xbf16>
    %196 = vector.extract_strided_slice %176 {offsets = [0, 256], sizes = [16, 128], strides = [1, 1]} : vector<16x384xf32> to vector<16x128xf32>
    %197 = arith.mulf %185, %196 : vector<16x128xf32>
    %198 = arith.extf %195 : vector<16x128xbf16> to vector<16x128xf32>
    %199 = arith.addf %198, %197 : vector<16x128xf32>
    %200 = math.tanh %199 : vector<16x128xf32>
    %201 = arith.subf %169, %200 : vector<16x128xf32>
    %202 = arith.mulf %194, %201 : vector<16x128xf32>
    %203 = arith.addf %200, %202 : vector<16x128xf32>
    %c0_55 = arith.constant 0 : index
    %c0_56 = arith.constant 0 : index
    %204 = vector.load %arg6[%c0_55, %c0_56] : memref<16x128xf32, #tpu.memory_space<vmem>>, vector<16x128xf32>
    tpu.vector_store %arg6[%c0_55, %c0_56], %203 {strides = array<i32>} : memref<16x128xf32, #tpu.memory_space<vmem>>, vector<16x128xf32>,
    %205 = arith.truncf %203 : vector<16x128xf32> to vector<16x128xbf16>
    %206 = arith.index_cast %c4_i32 : i32 to index
    %c0_57 = arith.constant 0 : index
    %c0_58 = arith.constant 0 : index
    %207 = vector.load %arg5[%206, %c0_57, %c0_58] : memref<8x16x128xbf16, #tpu.memory_space<vmem>>, vector<1x16x128xbf16>
    %208 = vector.shape_cast %207 : vector<1x16x128xbf16> to vector<16x128xbf16>
    %209 = vector.shape_cast %205 : vector<16x128xbf16> to vector<1x16x128xbf16>
    tpu.vector_store %arg5[%206, %c0_57, %c0_58], %209 {strides = array<i32>} : memref<8x16x128xbf16, #tpu.memory_space<vmem>>, vector<1x16x128xbf16>,
    %c5_i32 = arith.constant 5 : i32
    %c0_59 = arith.constant 0 : index
    %c0_60 = arith.constant 0 : index
    %210 = vector.load %arg6[%c0_59, %c0_60] : memref<16x128xf32, #tpu.memory_space<vmem>>, vector<16x128xf32>
    %211 = arith.index_cast %c5_i32 : i32 to index
    %c0_61 = arith.constant 0 : index
    %c0_62 = arith.constant 0 : index
    %212 = vector.load %arg2[%211, %c0_61, %c0_62] : memref<8x16x384xbf16, #tpu.memory_space<vmem>>, vector<1x16x384xbf16>
    %213 = vector.shape_cast %212 : vector<1x16x384xbf16> to vector<16x384xbf16>
    %214 = arith.truncf %210 : vector<16x128xf32> to vector<16x128xbf16>
    %cst_63 = arith.constant dense<0.000000e+00> : vector<16x384xf32>
    %215 = tpu.matmul %214, %3, %cst_63 {dimension_numbers = #tpu.dot_dimension_numbers<[1], [0], [0], [1], [0, 0, 1, 1], [], []>} : vector<16x128xbf16>, vector<128x384xbf16>, vector<16x384xf32> -> vector<16x384xf32>
    %216 = vector.broadcast %4 : vector<1x384xf32> to vector<16x384xf32>
    %217 = arith.addf %215, %216 : vector<16x384xf32>
    %218 = vector.extract_strided_slice %213 {offsets = [0, 0], sizes = [16, 128], strides = [1, 1]} : vector<16x384xbf16> to vector<16x128xbf16>
    %219 = vector.extract_strided_slice %217 {offsets = [0, 0], sizes = [16, 128], strides = [1, 1]} : vector<16x384xf32> to vector<16x128xf32>
    %220 = arith.extf %218 : vector<16x128xbf16> to vector<16x128xf32>
    %221 = arith.addf %220, %219 : vector<16x128xf32>
    %222 = arith.negf %221 : vector<16x128xf32>
    %223 = math.exp %222 : vector<16x128xf32>
    %cst_64 = arith.constant 1.000000e+00 : f32
    %224 = vector.broadcast %cst_64 : f32 to vector<16x128xf32>
    %225 = arith.addf %224, %223 : vector<16x128xf32>
    %226 = arith.divf %224, %225 : vector<16x128xf32>
    %227 = vector.extract_strided_slice %213 {offsets = [0, 128], sizes = [16, 128], strides = [1, 1]} : vector<16x384xbf16> to vector<16x128xbf16>
    %228 = vector.extract_strided_slice %217 {offsets = [0, 128], sizes = [16, 128], strides = [1, 1]} : vector<16x384xf32> to vector<16x128xf32>
    %229 = arith.extf %227 : vector<16x128xbf16> to vector<16x128xf32>
    %230 = arith.addf %229, %228 : vector<16x128xf32>
    %231 = arith.negf %230 : vector<16x128xf32>
    %232 = math.exp %231 : vector<16x128xf32>
    %cst_65 = arith.constant 1.000000e+00 : f32
    %233 = vector.broadcast %cst_65 : f32 to vector<16x128xf32>
    %234 = arith.addf %233, %232 : vector<16x128xf32>
    %235 = arith.divf %233, %234 : vector<16x128xf32>
    %236 = vector.extract_strided_slice %213 {offsets = [0, 256], sizes = [16, 128], strides = [1, 1]} : vector<16x384xbf16> to vector<16x128xbf16>
    %237 = vector.extract_strided_slice %217 {offsets = [0, 256], sizes = [16, 128], strides = [1, 1]} : vector<16x384xf32> to vector<16x128xf32>
    %238 = arith.mulf %226, %237 : vector<16x128xf32>
    %239 = arith.extf %236 : vector<16x128xbf16> to vector<16x128xf32>
    %240 = arith.addf %239, %238 : vector<16x128xf32>
    %241 = math.tanh %240 : vector<16x128xf32>
    %242 = arith.subf %210, %241 : vector<16x128xf32>
    %243 = arith.mulf %235, %242 : vector<16x128xf32>
    %244 = arith.addf %241, %243 : vector<16x128xf32>
    %c0_66 = arith.constant 0 : index
    %c0_67 = arith.constant 0 : index
    %245 = vector.load %arg6[%c0_66, %c0_67] : memref<16x128xf32, #tpu.memory_space<vmem>>, vector<16x128xf32>
    tpu.vector_store %arg6[%c0_66, %c0_67], %244 {strides = array<i32>} : memref<16x128xf32, #tpu.memory_space<vmem>>, vector<16x128xf32>,
    %246 = arith.truncf %244 : vector<16x128xf32> to vector<16x128xbf16>
    %247 = arith.index_cast %c5_i32 : i32 to index
    %c0_68 = arith.constant 0 : index
    %c0_69 = arith.constant 0 : index
    %248 = vector.load %arg5[%247, %c0_68, %c0_69] : memref<8x16x128xbf16, #tpu.memory_space<vmem>>, vector<1x16x128xbf16>
    %249 = vector.shape_cast %248 : vector<1x16x128xbf16> to vector<16x128xbf16>
    %250 = vector.shape_cast %246 : vector<16x128xbf16> to vector<1x16x128xbf16>
    tpu.vector_store %arg5[%247, %c0_68, %c0_69], %250 {strides = array<i32>} : memref<8x16x128xbf16, #tpu.memory_space<vmem>>, vector<1x16x128xbf16>,
    %c6_i32 = arith.constant 6 : i32
    %c0_70 = arith.constant 0 : index
    %c0_71 = arith.constant 0 : index
    %251 = vector.load %arg6[%c0_70, %c0_71] : memref<16x128xf32, #tpu.memory_space<vmem>>, vector<16x128xf32>
    %252 = arith.index_cast %c6_i32 : i32 to index
    %c0_72 = arith.constant 0 : index
    %c0_73 = arith.constant 0 : index
    %253 = vector.load %arg2[%252, %c0_72, %c0_73] : memref<8x16x384xbf16, #tpu.memory_space<vmem>>, vector<1x16x384xbf16>
    %254 = vector.shape_cast %253 : vector<1x16x384xbf16> to vector<16x384xbf16>
    %255 = arith.truncf %251 : vector<16x128xf32> to vector<16x128xbf16>
    %cst_74 = arith.constant dense<0.000000e+00> : vector<16x384xf32>
    %256 = tpu.matmul %255, %3, %cst_74 {dimension_numbers = #tpu.dot_dimension_numbers<[1], [0], [0], [1], [0, 0, 1, 1], [], []>} : vector<16x128xbf16>, vector<128x384xbf16>, vector<16x384xf32> -> vector<16x384xf32>
    %257 = vector.broadcast %4 : vector<1x384xf32> to vector<16x384xf32>
    %258 = arith.addf %256, %257 : vector<16x384xf32>
    %259 = vector.extract_strided_slice %254 {offsets = [0, 0], sizes = [16, 128], strides = [1, 1]} : vector<16x384xbf16> to vector<16x128xbf16>
    %260 = vector.extract_strided_slice %258 {offsets = [0, 0], sizes = [16, 128], strides = [1, 1]} : vector<16x384xf32> to vector<16x128xf32>
    %261 = arith.extf %259 : vector<16x128xbf16> to vector<16x128xf32>
    %262 = arith.addf %261, %260 : vector<16x128xf32>
    %263 = arith.negf %262 : vector<16x128xf32>
    %264 = math.exp %263 : vector<16x128xf32>
    %cst_75 = arith.constant 1.000000e+00 : f32
    %265 = vector.broadcast %cst_75 : f32 to vector<16x128xf32>
    %266 = arith.addf %265, %264 : vector<16x128xf32>
    %267 = arith.divf %265, %266 : vector<16x128xf32>
    %268 = vector.extract_strided_slice %254 {offsets = [0, 128], sizes = [16, 128], strides = [1, 1]} : vector<16x384xbf16> to vector<16x128xbf16>
    %269 = vector.extract_strided_slice %258 {offsets = [0, 128], sizes = [16, 128], strides = [1, 1]} : vector<16x384xf32> to vector<16x128xf32>
    %270 = arith.extf %268 : vector<16x128xbf16> to vector<16x128xf32>
    %271 = arith.addf %270, %269 : vector<16x128xf32>
    %272 = arith.negf %271 : vector<16x128xf32>
    %273 = math.exp %272 : vector<16x128xf32>
    %cst_76 = arith.constant 1.000000e+00 : f32
    %274 = vector.broadcast %cst_76 : f32 to vector<16x128xf32>
    %275 = arith.addf %274, %273 : vector<16x128xf32>
    %276 = arith.divf %274, %275 : vector<16x128xf32>
    %277 = vector.extract_strided_slice %254 {offsets = [0, 256], sizes = [16, 128], strides = [1, 1]} : vector<16x384xbf16> to vector<16x128xbf16>
    %278 = vector.extract_strided_slice %258 {offsets = [0, 256], sizes = [16, 128], strides = [1, 1]} : vector<16x384xf32> to vector<16x128xf32>
    %279 = arith.mulf %267, %278 : vector<16x128xf32>
    %280 = arith.extf %277 : vector<16x128xbf16> to vector<16x128xf32>
    %281 = arith.addf %280, %279 : vector<16x128xf32>
    %282 = math.tanh %281 : vector<16x128xf32>
    %283 = arith.subf %251, %282 : vector<16x128xf32>
    %284 = arith.mulf %276, %283 : vector<16x128xf32>
    %285 = arith.addf %282, %284 : vector<16x128xf32>
    %c0_77 = arith.constant 0 : index
    %c0_78 = arith.constant 0 : index
    %286 = vector.load %arg6[%c0_77, %c0_78] : memref<16x128xf32, #tpu.memory_space<vmem>>, vector<16x128xf32>
    tpu.vector_store %arg6[%c0_77, %c0_78], %285 {strides = array<i32>} : memref<16x128xf32, #tpu.memory_space<vmem>>, vector<16x128xf32>,
    %287 = arith.truncf %285 : vector<16x128xf32> to vector<16x128xbf16>
    %288 = arith.index_cast %c6_i32 : i32 to index
    %c0_79 = arith.constant 0 : index
    %c0_80 = arith.constant 0 : index
    %289 = vector.load %arg5[%288, %c0_79, %c0_80] : memref<8x16x128xbf16, #tpu.memory_space<vmem>>, vector<1x16x128xbf16>
    %290 = vector.shape_cast %289 : vector<1x16x128xbf16> to vector<16x128xbf16>
    %291 = vector.shape_cast %287 : vector<16x128xbf16> to vector<1x16x128xbf16>
    tpu.vector_store %arg5[%288, %c0_79, %c0_80], %291 {strides = array<i32>} : memref<8x16x128xbf16, #tpu.memory_space<vmem>>, vector<1x16x128xbf16>,
    %c7_i32 = arith.constant 7 : i32
    %c0_81 = arith.constant 0 : index
    %c0_82 = arith.constant 0 : index
    %292 = vector.load %arg6[%c0_81, %c0_82] : memref<16x128xf32, #tpu.memory_space<vmem>>, vector<16x128xf32>
    %293 = arith.index_cast %c7_i32 : i32 to index
    %c0_83 = arith.constant 0 : index
    %c0_84 = arith.constant 0 : index
    %294 = vector.load %arg2[%293, %c0_83, %c0_84] : memref<8x16x384xbf16, #tpu.memory_space<vmem>>, vector<1x16x384xbf16>
    %295 = vector.shape_cast %294 : vector<1x16x384xbf16> to vector<16x384xbf16>
    %296 = arith.truncf %292 : vector<16x128xf32> to vector<16x128xbf16>
    %cst_85 = arith.constant dense<0.000000e+00> : vector<16x384xf32>
    %297 = tpu.matmul %296, %3, %cst_85 {dimension_numbers = #tpu.dot_dimension_numbers<[1], [0], [0], [1], [0, 0, 1, 1], [], []>} : vector<16x128xbf16>, vector<128x384xbf16>, vector<16x384xf32> -> vector<16x384xf32>
    %298 = vector.broadcast %4 : vector<1x384xf32> to vector<16x384xf32>
    %299 = arith.addf %297, %298 : vector<16x384xf32>
    %300 = vector.extract_strided_slice %295 {offsets = [0, 0], sizes = [16, 128], strides = [1, 1]} : vector<16x384xbf16> to vector<16x128xbf16>
    %301 = vector.extract_strided_slice %299 {offsets = [0, 0], sizes = [16, 128], strides = [1, 1]} : vector<16x384xf32> to vector<16x128xf32>
    %302 = arith.extf %300 : vector<16x128xbf16> to vector<16x128xf32>
    %303 = arith.addf %302, %301 : vector<16x128xf32>
    %304 = arith.negf %303 : vector<16x128xf32>
    %305 = math.exp %304 : vector<16x128xf32>
    %cst_86 = arith.constant 1.000000e+00 : f32
    %306 = vector.broadcast %cst_86 : f32 to vector<16x128xf32>
    %307 = arith.addf %306, %305 : vector<16x128xf32>
    %308 = arith.divf %306, %307 : vector<16x128xf32>
    %309 = vector.extract_strided_slice %295 {offsets = [0, 128], sizes = [16, 128], strides = [1, 1]} : vector<16x384xbf16> to vector<16x128xbf16>
    %310 = vector.extract_strided_slice %299 {offsets = [0, 128], sizes = [16, 128], strides = [1, 1]} : vector<16x384xf32> to vector<16x128xf32>
    %311 = arith.extf %309 : vector<16x128xbf16> to vector<16x128xf32>
    %312 = arith.addf %311, %310 : vector<16x128xf32>
    %313 = arith.negf %312 : vector<16x128xf32>
    %314 = math.exp %313 : vector<16x128xf32>
    %cst_87 = arith.constant 1.000000e+00 : f32
    %315 = vector.broadcast %cst_87 : f32 to vector<16x128xf32>
    %316 = arith.addf %315, %314 : vector<16x128xf32>
    %317 = arith.divf %315, %316 : vector<16x128xf32>
    %318 = vector.extract_strided_slice %295 {offsets = [0, 256], sizes = [16, 128], strides = [1, 1]} : vector<16x384xbf16> to vector<16x128xbf16>
    %319 = vector.extract_strided_slice %299 {offsets = [0, 256], sizes = [16, 128], strides = [1, 1]} : vector<16x384xf32> to vector<16x128xf32>
    %320 = arith.mulf %308, %319 : vector<16x128xf32>
    %321 = arith.extf %318 : vector<16x128xbf16> to vector<16x128xf32>
    %322 = arith.addf %321, %320 : vector<16x128xf32>
    %323 = math.tanh %322 : vector<16x128xf32>
    %324 = arith.subf %292, %323 : vector<16x128xf32>
    %325 = arith.mulf %317, %324 : vector<16x128xf32>
    %326 = arith.addf %323, %325 : vector<16x128xf32>
    %c0_88 = arith.constant 0 : index
    %c0_89 = arith.constant 0 : index
    %327 = vector.load %arg6[%c0_88, %c0_89] : memref<16x128xf32, #tpu.memory_space<vmem>>, vector<16x128xf32>
    tpu.vector_store %arg6[%c0_88, %c0_89], %326 {strides = array<i32>} : memref<16x128xf32, #tpu.memory_space<vmem>>, vector<16x128xf32>,
    %328 = arith.truncf %326 : vector<16x128xf32> to vector<16x128xbf16>
    %329 = arith.index_cast %c7_i32 : i32 to index
    %c0_90 = arith.constant 0 : index
    %c0_91 = arith.constant 0 : index
    %330 = vector.load %arg5[%329, %c0_90, %c0_91] : memref<8x16x128xbf16, #tpu.memory_space<vmem>>, vector<1x16x128xbf16>
    %331 = vector.shape_cast %330 : vector<1x16x128xbf16> to vector<16x128xbf16>
    %332 = vector.shape_cast %328 : vector<16x128xbf16> to vector<1x16x128xbf16>
    tpu.vector_store %arg5[%329, %c0_90, %c0_91], %332 {strides = array<i32>} : memref<8x16x128xbf16, #tpu.memory_space<vmem>>, vector<1x16x128xbf16>,
    %c8_i32 = arith.constant 8 : i32
    return
  }
  func.func @transform_0(%arg0: i32, %arg1: i32) -> (i32, i32, i32) {
    %c0_i32 = arith.constant 0 : i32
    %c0_i32_0 = arith.constant 0 : i32
    return %arg1, %arg0, %c0_i32 : i32, i32, i32
  }
  func.func @transform_1(%arg0: i32, %arg1: i32) -> (i32, i32) {
    %c0_i32 = arith.constant 0 : i32
    %c0_i32_0 = arith.constant 0 : i32
    %c0_i32_1 = arith.constant 0 : i32
    return %c0_i32, %c0_i32_0 : i32, i32
  }
  func.func @transform_2(%arg0: i32, %arg1: i32) -> (i32, i32) {
    %c0_i32 = arith.constant 0 : i32
    %c0_i32_0 = arith.constant 0 : i32
    %c0_i32_1 = arith.constant 0 : i32
    return %c0_i32, %c0_i32_0 : i32, i32
  }
  func.func @transform_3(%arg0: i32, %arg1: i32) -> (i32, i32, i32) {
    %c0_i32 = arith.constant 0 : i32
    %c0_i32_0 = arith.constant 0 : i32
    return %arg1, %arg0, %c0_i32 : i32, i32, i32
  }
}

module attributes {stable_mosaic.version = 11 : i64} {
  func.func @_gru_last_fc_kernel(%arg0: i32, %arg1: i32, %arg2: memref<8x16x384xbf16, #tpu.memory_space<vmem>>, %arg3: memref<128x384xbf16, #tpu.memory_space<vmem>>, %arg4: memref<1x384xf32, #tpu.memory_space<vmem>>, %arg5: memref<128x128xbf16, #tpu.memory_space<vmem>>, %arg6: memref<1x128xf32, #tpu.memory_space<vmem>>, %arg7: memref<16x128xf32, #tpu.memory_space<vmem>>, %arg8: memref<16x128xf32, #tpu.memory_space<vmem>>) attributes {dimension_semantics = [#tpu.dimension_semantics<parallel>, #tpu.dimension_semantics<arbitrary>], iteration_bounds = array<i64: 1, 1>, scalar_prefetch = 0 : i64, scratch_operands = 1 : i64, tpu.core_type = #tpu.core_type<tc>, window_params = [{transform_indices = @transform_0, window_bounds = array<i64: 8, 16, 384>}, {pipeline_mode = #tpu.pipeline_mode<synchronous>, transform_indices = @transform_1, window_bounds = array<i64: 128, 384>}, {pipeline_mode = #tpu.pipeline_mode<synchronous>, transform_indices = @transform_2, window_bounds = array<i64: 1, 384>}, {pipeline_mode = #tpu.pipeline_mode<synchronous>, transform_indices = @transform_3, window_bounds = array<i64: 128, 128>}, {pipeline_mode = #tpu.pipeline_mode<synchronous>, transform_indices = @transform_4, window_bounds = array<i64: 1, 128>}, {transform_indices = @transform_5, window_bounds = array<i64: 16, 128>}]} {
    %c0_i32 = arith.constant 0 : i32
    %0 = arith.cmpi eq, %arg1, %c0_i32 : i32
    %1 = arith.extui %0 : i1 to i32
    %c0_i32_0 = arith.constant 0 : i32
    %2 = arith.cmpi ne, %1, %c0_i32_0 : i32
    scf.if %2 {
      %cst_78 = arith.constant 0.000000e+00 : f32
      %296 = vector.broadcast %cst_78 : f32 to vector<16x128xf32>
      %c0_79 = arith.constant 0 : index
      %c0_80 = arith.constant 0 : index
      %297 = vector.load %arg8[%c0_79, %c0_80] : memref<16x128xf32, #tpu.memory_space<vmem>>, vector<16x128xf32>
      tpu.vector_store %arg8[%c0_79, %c0_80], %296 {strides = array<i32>} : memref<16x128xf32, #tpu.memory_space<vmem>>, vector<16x128xf32>,
    } else {
    }
    %c0 = arith.constant 0 : index
    %c0_1 = arith.constant 0 : index
    %3 = vector.load %arg3[%c0, %c0_1] : memref<128x384xbf16, #tpu.memory_space<vmem>>, vector<128x384xbf16>
    %c0_2 = arith.constant 0 : index
    %c0_3 = arith.constant 0 : index
    %4 = vector.load %arg4[%c0_2, %c0_3] : memref<1x384xf32, #tpu.memory_space<vmem>>, vector<1x384xf32>
    %c0_i32_4 = arith.constant 0 : i32
    %c0_5 = arith.constant 0 : index
    %c0_6 = arith.constant 0 : index
    %5 = vector.load %arg8[%c0_5, %c0_6] : memref<16x128xf32, #tpu.memory_space<vmem>>, vector<16x128xf32>
    %6 = arith.index_cast %c0_i32_4 : i32 to index
    %c0_7 = arith.constant 0 : index
    %c0_8 = arith.constant 0 : index
    %7 = vector.load %arg2[%6, %c0_7, %c0_8] : memref<8x16x384xbf16, #tpu.memory_space<vmem>>, vector<1x16x384xbf16>
    %8 = vector.shape_cast %7 : vector<1x16x384xbf16> to vector<16x384xbf16>
    %9 = arith.truncf %5 : vector<16x128xf32> to vector<16x128xbf16>
    %cst = arith.constant dense<0.000000e+00> : vector<16x384xf32>
    %10 = tpu.matmul %9, %3, %cst {dimension_numbers = #tpu.dot_dimension_numbers<[1], [0], [0], [1], [0, 0, 1, 1], [], []>} : vector<16x128xbf16>, vector<128x384xbf16>, vector<16x384xf32> -> vector<16x384xf32>
    %11 = vector.broadcast %4 : vector<1x384xf32> to vector<16x384xf32>
    %12 = arith.addf %10, %11 : vector<16x384xf32>
    %13 = vector.extract_strided_slice %8 {offsets = [0, 0], sizes = [16, 128], strides = [1, 1]} : vector<16x384xbf16> to vector<16x128xbf16>
    %14 = vector.extract_strided_slice %12 {offsets = [0, 0], sizes = [16, 128], strides = [1, 1]} : vector<16x384xf32> to vector<16x128xf32>
    %15 = arith.extf %13 : vector<16x128xbf16> to vector<16x128xf32>
    %16 = arith.addf %15, %14 : vector<16x128xf32>
    %17 = arith.negf %16 : vector<16x128xf32>
    %18 = math.exp %17 : vector<16x128xf32>
    %cst_9 = arith.constant 1.000000e+00 : f32
    %19 = vector.broadcast %cst_9 : f32 to vector<16x128xf32>
    %20 = arith.addf %19, %18 : vector<16x128xf32>
    %21 = arith.divf %19, %20 : vector<16x128xf32>
    %22 = vector.extract_strided_slice %8 {offsets = [0, 128], sizes = [16, 128], strides = [1, 1]} : vector<16x384xbf16> to vector<16x128xbf16>
    %23 = vector.extract_strided_slice %12 {offsets = [0, 128], sizes = [16, 128], strides = [1, 1]} : vector<16x384xf32> to vector<16x128xf32>
    %24 = arith.extf %22 : vector<16x128xbf16> to vector<16x128xf32>
    %25 = arith.addf %24, %23 : vector<16x128xf32>
    %26 = arith.negf %25 : vector<16x128xf32>
    %27 = math.exp %26 : vector<16x128xf32>
    %cst_10 = arith.constant 1.000000e+00 : f32
    %28 = vector.broadcast %cst_10 : f32 to vector<16x128xf32>
    %29 = arith.addf %28, %27 : vector<16x128xf32>
    %30 = arith.divf %28, %29 : vector<16x128xf32>
    %31 = vector.extract_strided_slice %8 {offsets = [0, 256], sizes = [16, 128], strides = [1, 1]} : vector<16x384xbf16> to vector<16x128xbf16>
    %32 = vector.extract_strided_slice %12 {offsets = [0, 256], sizes = [16, 128], strides = [1, 1]} : vector<16x384xf32> to vector<16x128xf32>
    %33 = arith.mulf %21, %32 : vector<16x128xf32>
    %34 = arith.extf %31 : vector<16x128xbf16> to vector<16x128xf32>
    %35 = arith.addf %34, %33 : vector<16x128xf32>
    %36 = math.tanh %35 : vector<16x128xf32>
    %37 = arith.subf %5, %36 : vector<16x128xf32>
    %38 = arith.mulf %30, %37 : vector<16x128xf32>
    %39 = arith.addf %36, %38 : vector<16x128xf32>
    %c0_11 = arith.constant 0 : index
    %c0_12 = arith.constant 0 : index
    %40 = vector.load %arg8[%c0_11, %c0_12] : memref<16x128xf32, #tpu.memory_space<vmem>>, vector<16x128xf32>
    tpu.vector_store %arg8[%c0_11, %c0_12], %39 {strides = array<i32>} : memref<16x128xf32, #tpu.memory_space<vmem>>, vector<16x128xf32>,
    %c1_i32 = arith.constant 1 : i32
    %c0_13 = arith.constant 0 : index
    %c0_14 = arith.constant 0 : index
    %41 = vector.load %arg8[%c0_13, %c0_14] : memref<16x128xf32, #tpu.memory_space<vmem>>, vector<16x128xf32>
    %42 = arith.index_cast %c1_i32 : i32 to index
    %c0_15 = arith.constant 0 : index
    %c0_16 = arith.constant 0 : index
    %43 = vector.load %arg2[%42, %c0_15, %c0_16] : memref<8x16x384xbf16, #tpu.memory_space<vmem>>, vector<1x16x384xbf16>
    %44 = vector.shape_cast %43 : vector<1x16x384xbf16> to vector<16x384xbf16>
    %45 = arith.truncf %41 : vector<16x128xf32> to vector<16x128xbf16>
    %cst_17 = arith.constant dense<0.000000e+00> : vector<16x384xf32>
    %46 = tpu.matmul %45, %3, %cst_17 {dimension_numbers = #tpu.dot_dimension_numbers<[1], [0], [0], [1], [0, 0, 1, 1], [], []>} : vector<16x128xbf16>, vector<128x384xbf16>, vector<16x384xf32> -> vector<16x384xf32>
    %47 = vector.broadcast %4 : vector<1x384xf32> to vector<16x384xf32>
    %48 = arith.addf %46, %47 : vector<16x384xf32>
    %49 = vector.extract_strided_slice %44 {offsets = [0, 0], sizes = [16, 128], strides = [1, 1]} : vector<16x384xbf16> to vector<16x128xbf16>
    %50 = vector.extract_strided_slice %48 {offsets = [0, 0], sizes = [16, 128], strides = [1, 1]} : vector<16x384xf32> to vector<16x128xf32>
    %51 = arith.extf %49 : vector<16x128xbf16> to vector<16x128xf32>
    %52 = arith.addf %51, %50 : vector<16x128xf32>
    %53 = arith.negf %52 : vector<16x128xf32>
    %54 = math.exp %53 : vector<16x128xf32>
    %cst_18 = arith.constant 1.000000e+00 : f32
    %55 = vector.broadcast %cst_18 : f32 to vector<16x128xf32>
    %56 = arith.addf %55, %54 : vector<16x128xf32>
    %57 = arith.divf %55, %56 : vector<16x128xf32>
    %58 = vector.extract_strided_slice %44 {offsets = [0, 128], sizes = [16, 128], strides = [1, 1]} : vector<16x384xbf16> to vector<16x128xbf16>
    %59 = vector.extract_strided_slice %48 {offsets = [0, 128], sizes = [16, 128], strides = [1, 1]} : vector<16x384xf32> to vector<16x128xf32>
    %60 = arith.extf %58 : vector<16x128xbf16> to vector<16x128xf32>
    %61 = arith.addf %60, %59 : vector<16x128xf32>
    %62 = arith.negf %61 : vector<16x128xf32>
    %63 = math.exp %62 : vector<16x128xf32>
    %cst_19 = arith.constant 1.000000e+00 : f32
    %64 = vector.broadcast %cst_19 : f32 to vector<16x128xf32>
    %65 = arith.addf %64, %63 : vector<16x128xf32>
    %66 = arith.divf %64, %65 : vector<16x128xf32>
    %67 = vector.extract_strided_slice %44 {offsets = [0, 256], sizes = [16, 128], strides = [1, 1]} : vector<16x384xbf16> to vector<16x128xbf16>
    %68 = vector.extract_strided_slice %48 {offsets = [0, 256], sizes = [16, 128], strides = [1, 1]} : vector<16x384xf32> to vector<16x128xf32>
    %69 = arith.mulf %57, %68 : vector<16x128xf32>
    %70 = arith.extf %67 : vector<16x128xbf16> to vector<16x128xf32>
    %71 = arith.addf %70, %69 : vector<16x128xf32>
    %72 = math.tanh %71 : vector<16x128xf32>
    %73 = arith.subf %41, %72 : vector<16x128xf32>
    %74 = arith.mulf %66, %73 : vector<16x128xf32>
    %75 = arith.addf %72, %74 : vector<16x128xf32>
    %c0_20 = arith.constant 0 : index
    %c0_21 = arith.constant 0 : index
    %76 = vector.load %arg8[%c0_20, %c0_21] : memref<16x128xf32, #tpu.memory_space<vmem>>, vector<16x128xf32>
    tpu.vector_store %arg8[%c0_20, %c0_21], %75 {strides = array<i32>} : memref<16x128xf32, #tpu.memory_space<vmem>>, vector<16x128xf32>,
    %c2_i32 = arith.constant 2 : i32
    %c0_22 = arith.constant 0 : index
    %c0_23 = arith.constant 0 : index
    %77 = vector.load %arg8[%c0_22, %c0_23] : memref<16x128xf32, #tpu.memory_space<vmem>>, vector<16x128xf32>
    %78 = arith.index_cast %c2_i32 : i32 to index
    %c0_24 = arith.constant 0 : index
    %c0_25 = arith.constant 0 : index
    %79 = vector.load %arg2[%78, %c0_24, %c0_25] : memref<8x16x384xbf16, #tpu.memory_space<vmem>>, vector<1x16x384xbf16>
    %80 = vector.shape_cast %79 : vector<1x16x384xbf16> to vector<16x384xbf16>
    %81 = arith.truncf %77 : vector<16x128xf32> to vector<16x128xbf16>
    %cst_26 = arith.constant dense<0.000000e+00> : vector<16x384xf32>
    %82 = tpu.matmul %81, %3, %cst_26 {dimension_numbers = #tpu.dot_dimension_numbers<[1], [0], [0], [1], [0, 0, 1, 1], [], []>} : vector<16x128xbf16>, vector<128x384xbf16>, vector<16x384xf32> -> vector<16x384xf32>
    %83 = vector.broadcast %4 : vector<1x384xf32> to vector<16x384xf32>
    %84 = arith.addf %82, %83 : vector<16x384xf32>
    %85 = vector.extract_strided_slice %80 {offsets = [0, 0], sizes = [16, 128], strides = [1, 1]} : vector<16x384xbf16> to vector<16x128xbf16>
    %86 = vector.extract_strided_slice %84 {offsets = [0, 0], sizes = [16, 128], strides = [1, 1]} : vector<16x384xf32> to vector<16x128xf32>
    %87 = arith.extf %85 : vector<16x128xbf16> to vector<16x128xf32>
    %88 = arith.addf %87, %86 : vector<16x128xf32>
    %89 = arith.negf %88 : vector<16x128xf32>
    %90 = math.exp %89 : vector<16x128xf32>
    %cst_27 = arith.constant 1.000000e+00 : f32
    %91 = vector.broadcast %cst_27 : f32 to vector<16x128xf32>
    %92 = arith.addf %91, %90 : vector<16x128xf32>
    %93 = arith.divf %91, %92 : vector<16x128xf32>
    %94 = vector.extract_strided_slice %80 {offsets = [0, 128], sizes = [16, 128], strides = [1, 1]} : vector<16x384xbf16> to vector<16x128xbf16>
    %95 = vector.extract_strided_slice %84 {offsets = [0, 128], sizes = [16, 128], strides = [1, 1]} : vector<16x384xf32> to vector<16x128xf32>
    %96 = arith.extf %94 : vector<16x128xbf16> to vector<16x128xf32>
    %97 = arith.addf %96, %95 : vector<16x128xf32>
    %98 = arith.negf %97 : vector<16x128xf32>
    %99 = math.exp %98 : vector<16x128xf32>
    %cst_28 = arith.constant 1.000000e+00 : f32
    %100 = vector.broadcast %cst_28 : f32 to vector<16x128xf32>
    %101 = arith.addf %100, %99 : vector<16x128xf32>
    %102 = arith.divf %100, %101 : vector<16x128xf32>
    %103 = vector.extract_strided_slice %80 {offsets = [0, 256], sizes = [16, 128], strides = [1, 1]} : vector<16x384xbf16> to vector<16x128xbf16>
    %104 = vector.extract_strided_slice %84 {offsets = [0, 256], sizes = [16, 128], strides = [1, 1]} : vector<16x384xf32> to vector<16x128xf32>
    %105 = arith.mulf %93, %104 : vector<16x128xf32>
    %106 = arith.extf %103 : vector<16x128xbf16> to vector<16x128xf32>
    %107 = arith.addf %106, %105 : vector<16x128xf32>
    %108 = math.tanh %107 : vector<16x128xf32>
    %109 = arith.subf %77, %108 : vector<16x128xf32>
    %110 = arith.mulf %102, %109 : vector<16x128xf32>
    %111 = arith.addf %108, %110 : vector<16x128xf32>
    %c0_29 = arith.constant 0 : index
    %c0_30 = arith.constant 0 : index
    %112 = vector.load %arg8[%c0_29, %c0_30] : memref<16x128xf32, #tpu.memory_space<vmem>>, vector<16x128xf32>
    tpu.vector_store %arg8[%c0_29, %c0_30], %111 {strides = array<i32>} : memref<16x128xf32, #tpu.memory_space<vmem>>, vector<16x128xf32>,
    %c3_i32 = arith.constant 3 : i32
    %c0_31 = arith.constant 0 : index
    %c0_32 = arith.constant 0 : index
    %113 = vector.load %arg8[%c0_31, %c0_32] : memref<16x128xf32, #tpu.memory_space<vmem>>, vector<16x128xf32>
    %114 = arith.index_cast %c3_i32 : i32 to index
    %c0_33 = arith.constant 0 : index
    %c0_34 = arith.constant 0 : index
    %115 = vector.load %arg2[%114, %c0_33, %c0_34] : memref<8x16x384xbf16, #tpu.memory_space<vmem>>, vector<1x16x384xbf16>
    %116 = vector.shape_cast %115 : vector<1x16x384xbf16> to vector<16x384xbf16>
    %117 = arith.truncf %113 : vector<16x128xf32> to vector<16x128xbf16>
    %cst_35 = arith.constant dense<0.000000e+00> : vector<16x384xf32>
    %118 = tpu.matmul %117, %3, %cst_35 {dimension_numbers = #tpu.dot_dimension_numbers<[1], [0], [0], [1], [0, 0, 1, 1], [], []>} : vector<16x128xbf16>, vector<128x384xbf16>, vector<16x384xf32> -> vector<16x384xf32>
    %119 = vector.broadcast %4 : vector<1x384xf32> to vector<16x384xf32>
    %120 = arith.addf %118, %119 : vector<16x384xf32>
    %121 = vector.extract_strided_slice %116 {offsets = [0, 0], sizes = [16, 128], strides = [1, 1]} : vector<16x384xbf16> to vector<16x128xbf16>
    %122 = vector.extract_strided_slice %120 {offsets = [0, 0], sizes = [16, 128], strides = [1, 1]} : vector<16x384xf32> to vector<16x128xf32>
    %123 = arith.extf %121 : vector<16x128xbf16> to vector<16x128xf32>
    %124 = arith.addf %123, %122 : vector<16x128xf32>
    %125 = arith.negf %124 : vector<16x128xf32>
    %126 = math.exp %125 : vector<16x128xf32>
    %cst_36 = arith.constant 1.000000e+00 : f32
    %127 = vector.broadcast %cst_36 : f32 to vector<16x128xf32>
    %128 = arith.addf %127, %126 : vector<16x128xf32>
    %129 = arith.divf %127, %128 : vector<16x128xf32>
    %130 = vector.extract_strided_slice %116 {offsets = [0, 128], sizes = [16, 128], strides = [1, 1]} : vector<16x384xbf16> to vector<16x128xbf16>
    %131 = vector.extract_strided_slice %120 {offsets = [0, 128], sizes = [16, 128], strides = [1, 1]} : vector<16x384xf32> to vector<16x128xf32>
    %132 = arith.extf %130 : vector<16x128xbf16> to vector<16x128xf32>
    %133 = arith.addf %132, %131 : vector<16x128xf32>
    %134 = arith.negf %133 : vector<16x128xf32>
    %135 = math.exp %134 : vector<16x128xf32>
    %cst_37 = arith.constant 1.000000e+00 : f32
    %136 = vector.broadcast %cst_37 : f32 to vector<16x128xf32>
    %137 = arith.addf %136, %135 : vector<16x128xf32>
    %138 = arith.divf %136, %137 : vector<16x128xf32>
    %139 = vector.extract_strided_slice %116 {offsets = [0, 256], sizes = [16, 128], strides = [1, 1]} : vector<16x384xbf16> to vector<16x128xbf16>
    %140 = vector.extract_strided_slice %120 {offsets = [0, 256], sizes = [16, 128], strides = [1, 1]} : vector<16x384xf32> to vector<16x128xf32>
    %141 = arith.mulf %129, %140 : vector<16x128xf32>
    %142 = arith.extf %139 : vector<16x128xbf16> to vector<16x128xf32>
    %143 = arith.addf %142, %141 : vector<16x128xf32>
    %144 = math.tanh %143 : vector<16x128xf32>
    %145 = arith.subf %113, %144 : vector<16x128xf32>
    %146 = arith.mulf %138, %145 : vector<16x128xf32>
    %147 = arith.addf %144, %146 : vector<16x128xf32>
    %c0_38 = arith.constant 0 : index
    %c0_39 = arith.constant 0 : index
    %148 = vector.load %arg8[%c0_38, %c0_39] : memref<16x128xf32, #tpu.memory_space<vmem>>, vector<16x128xf32>
    tpu.vector_store %arg8[%c0_38, %c0_39], %147 {strides = array<i32>} : memref<16x128xf32, #tpu.memory_space<vmem>>, vector<16x128xf32>,
    %c4_i32 = arith.constant 4 : i32
    %c0_40 = arith.constant 0 : index
    %c0_41 = arith.constant 0 : index
    %149 = vector.load %arg8[%c0_40, %c0_41] : memref<16x128xf32, #tpu.memory_space<vmem>>, vector<16x128xf32>
    %150 = arith.index_cast %c4_i32 : i32 to index
    %c0_42 = arith.constant 0 : index
    %c0_43 = arith.constant 0 : index
    %151 = vector.load %arg2[%150, %c0_42, %c0_43] : memref<8x16x384xbf16, #tpu.memory_space<vmem>>, vector<1x16x384xbf16>
    %152 = vector.shape_cast %151 : vector<1x16x384xbf16> to vector<16x384xbf16>
    %153 = arith.truncf %149 : vector<16x128xf32> to vector<16x128xbf16>
    %cst_44 = arith.constant dense<0.000000e+00> : vector<16x384xf32>
    %154 = tpu.matmul %153, %3, %cst_44 {dimension_numbers = #tpu.dot_dimension_numbers<[1], [0], [0], [1], [0, 0, 1, 1], [], []>} : vector<16x128xbf16>, vector<128x384xbf16>, vector<16x384xf32> -> vector<16x384xf32>
    %155 = vector.broadcast %4 : vector<1x384xf32> to vector<16x384xf32>
    %156 = arith.addf %154, %155 : vector<16x384xf32>
    %157 = vector.extract_strided_slice %152 {offsets = [0, 0], sizes = [16, 128], strides = [1, 1]} : vector<16x384xbf16> to vector<16x128xbf16>
    %158 = vector.extract_strided_slice %156 {offsets = [0, 0], sizes = [16, 128], strides = [1, 1]} : vector<16x384xf32> to vector<16x128xf32>
    %159 = arith.extf %157 : vector<16x128xbf16> to vector<16x128xf32>
    %160 = arith.addf %159, %158 : vector<16x128xf32>
    %161 = arith.negf %160 : vector<16x128xf32>
    %162 = math.exp %161 : vector<16x128xf32>
    %cst_45 = arith.constant 1.000000e+00 : f32
    %163 = vector.broadcast %cst_45 : f32 to vector<16x128xf32>
    %164 = arith.addf %163, %162 : vector<16x128xf32>
    %165 = arith.divf %163, %164 : vector<16x128xf32>
    %166 = vector.extract_strided_slice %152 {offsets = [0, 128], sizes = [16, 128], strides = [1, 1]} : vector<16x384xbf16> to vector<16x128xbf16>
    %167 = vector.extract_strided_slice %156 {offsets = [0, 128], sizes = [16, 128], strides = [1, 1]} : vector<16x384xf32> to vector<16x128xf32>
    %168 = arith.extf %166 : vector<16x128xbf16> to vector<16x128xf32>
    %169 = arith.addf %168, %167 : vector<16x128xf32>
    %170 = arith.negf %169 : vector<16x128xf32>
    %171 = math.exp %170 : vector<16x128xf32>
    %cst_46 = arith.constant 1.000000e+00 : f32
    %172 = vector.broadcast %cst_46 : f32 to vector<16x128xf32>
    %173 = arith.addf %172, %171 : vector<16x128xf32>
    %174 = arith.divf %172, %173 : vector<16x128xf32>
    %175 = vector.extract_strided_slice %152 {offsets = [0, 256], sizes = [16, 128], strides = [1, 1]} : vector<16x384xbf16> to vector<16x128xbf16>
    %176 = vector.extract_strided_slice %156 {offsets = [0, 256], sizes = [16, 128], strides = [1, 1]} : vector<16x384xf32> to vector<16x128xf32>
    %177 = arith.mulf %165, %176 : vector<16x128xf32>
    %178 = arith.extf %175 : vector<16x128xbf16> to vector<16x128xf32>
    %179 = arith.addf %178, %177 : vector<16x128xf32>
    %180 = math.tanh %179 : vector<16x128xf32>
    %181 = arith.subf %149, %180 : vector<16x128xf32>
    %182 = arith.mulf %174, %181 : vector<16x128xf32>
    %183 = arith.addf %180, %182 : vector<16x128xf32>
    %c0_47 = arith.constant 0 : index
    %c0_48 = arith.constant 0 : index
    %184 = vector.load %arg8[%c0_47, %c0_48] : memref<16x128xf32, #tpu.memory_space<vmem>>, vector<16x128xf32>
    tpu.vector_store %arg8[%c0_47, %c0_48], %183 {strides = array<i32>} : memref<16x128xf32, #tpu.memory_space<vmem>>, vector<16x128xf32>,
    %c5_i32 = arith.constant 5 : i32
    %c0_49 = arith.constant 0 : index
    %c0_50 = arith.constant 0 : index
    %185 = vector.load %arg8[%c0_49, %c0_50] : memref<16x128xf32, #tpu.memory_space<vmem>>, vector<16x128xf32>
    %186 = arith.index_cast %c5_i32 : i32 to index
    %c0_51 = arith.constant 0 : index
    %c0_52 = arith.constant 0 : index
    %187 = vector.load %arg2[%186, %c0_51, %c0_52] : memref<8x16x384xbf16, #tpu.memory_space<vmem>>, vector<1x16x384xbf16>
    %188 = vector.shape_cast %187 : vector<1x16x384xbf16> to vector<16x384xbf16>
    %189 = arith.truncf %185 : vector<16x128xf32> to vector<16x128xbf16>
    %cst_53 = arith.constant dense<0.000000e+00> : vector<16x384xf32>
    %190 = tpu.matmul %189, %3, %cst_53 {dimension_numbers = #tpu.dot_dimension_numbers<[1], [0], [0], [1], [0, 0, 1, 1], [], []>} : vector<16x128xbf16>, vector<128x384xbf16>, vector<16x384xf32> -> vector<16x384xf32>
    %191 = vector.broadcast %4 : vector<1x384xf32> to vector<16x384xf32>
    %192 = arith.addf %190, %191 : vector<16x384xf32>
    %193 = vector.extract_strided_slice %188 {offsets = [0, 0], sizes = [16, 128], strides = [1, 1]} : vector<16x384xbf16> to vector<16x128xbf16>
    %194 = vector.extract_strided_slice %192 {offsets = [0, 0], sizes = [16, 128], strides = [1, 1]} : vector<16x384xf32> to vector<16x128xf32>
    %195 = arith.extf %193 : vector<16x128xbf16> to vector<16x128xf32>
    %196 = arith.addf %195, %194 : vector<16x128xf32>
    %197 = arith.negf %196 : vector<16x128xf32>
    %198 = math.exp %197 : vector<16x128xf32>
    %cst_54 = arith.constant 1.000000e+00 : f32
    %199 = vector.broadcast %cst_54 : f32 to vector<16x128xf32>
    %200 = arith.addf %199, %198 : vector<16x128xf32>
    %201 = arith.divf %199, %200 : vector<16x128xf32>
    %202 = vector.extract_strided_slice %188 {offsets = [0, 128], sizes = [16, 128], strides = [1, 1]} : vector<16x384xbf16> to vector<16x128xbf16>
    %203 = vector.extract_strided_slice %192 {offsets = [0, 128], sizes = [16, 128], strides = [1, 1]} : vector<16x384xf32> to vector<16x128xf32>
    %204 = arith.extf %202 : vector<16x128xbf16> to vector<16x128xf32>
    %205 = arith.addf %204, %203 : vector<16x128xf32>
    %206 = arith.negf %205 : vector<16x128xf32>
    %207 = math.exp %206 : vector<16x128xf32>
    %cst_55 = arith.constant 1.000000e+00 : f32
    %208 = vector.broadcast %cst_55 : f32 to vector<16x128xf32>
    %209 = arith.addf %208, %207 : vector<16x128xf32>
    %210 = arith.divf %208, %209 : vector<16x128xf32>
    %211 = vector.extract_strided_slice %188 {offsets = [0, 256], sizes = [16, 128], strides = [1, 1]} : vector<16x384xbf16> to vector<16x128xbf16>
    %212 = vector.extract_strided_slice %192 {offsets = [0, 256], sizes = [16, 128], strides = [1, 1]} : vector<16x384xf32> to vector<16x128xf32>
    %213 = arith.mulf %201, %212 : vector<16x128xf32>
    %214 = arith.extf %211 : vector<16x128xbf16> to vector<16x128xf32>
    %215 = arith.addf %214, %213 : vector<16x128xf32>
    %216 = math.tanh %215 : vector<16x128xf32>
    %217 = arith.subf %185, %216 : vector<16x128xf32>
    %218 = arith.mulf %210, %217 : vector<16x128xf32>
    %219 = arith.addf %216, %218 : vector<16x128xf32>
    %c0_56 = arith.constant 0 : index
    %c0_57 = arith.constant 0 : index
    %220 = vector.load %arg8[%c0_56, %c0_57] : memref<16x128xf32, #tpu.memory_space<vmem>>, vector<16x128xf32>
    tpu.vector_store %arg8[%c0_56, %c0_57], %219 {strides = array<i32>} : memref<16x128xf32, #tpu.memory_space<vmem>>, vector<16x128xf32>,
    %c6_i32 = arith.constant 6 : i32
    %c0_58 = arith.constant 0 : index
    %c0_59 = arith.constant 0 : index
    %221 = vector.load %arg8[%c0_58, %c0_59] : memref<16x128xf32, #tpu.memory_space<vmem>>, vector<16x128xf32>
    %222 = arith.index_cast %c6_i32 : i32 to index
    %c0_60 = arith.constant 0 : index
    %c0_61 = arith.constant 0 : index
    %223 = vector.load %arg2[%222, %c0_60, %c0_61] : memref<8x16x384xbf16, #tpu.memory_space<vmem>>, vector<1x16x384xbf16>
    %224 = vector.shape_cast %223 : vector<1x16x384xbf16> to vector<16x384xbf16>
    %225 = arith.truncf %221 : vector<16x128xf32> to vector<16x128xbf16>
    %cst_62 = arith.constant dense<0.000000e+00> : vector<16x384xf32>
    %226 = tpu.matmul %225, %3, %cst_62 {dimension_numbers = #tpu.dot_dimension_numbers<[1], [0], [0], [1], [0, 0, 1, 1], [], []>} : vector<16x128xbf16>, vector<128x384xbf16>, vector<16x384xf32> -> vector<16x384xf32>
    %227 = vector.broadcast %4 : vector<1x384xf32> to vector<16x384xf32>
    %228 = arith.addf %226, %227 : vector<16x384xf32>
    %229 = vector.extract_strided_slice %224 {offsets = [0, 0], sizes = [16, 128], strides = [1, 1]} : vector<16x384xbf16> to vector<16x128xbf16>
    %230 = vector.extract_strided_slice %228 {offsets = [0, 0], sizes = [16, 128], strides = [1, 1]} : vector<16x384xf32> to vector<16x128xf32>
    %231 = arith.extf %229 : vector<16x128xbf16> to vector<16x128xf32>
    %232 = arith.addf %231, %230 : vector<16x128xf32>
    %233 = arith.negf %232 : vector<16x128xf32>
    %234 = math.exp %233 : vector<16x128xf32>
    %cst_63 = arith.constant 1.000000e+00 : f32
    %235 = vector.broadcast %cst_63 : f32 to vector<16x128xf32>
    %236 = arith.addf %235, %234 : vector<16x128xf32>
    %237 = arith.divf %235, %236 : vector<16x128xf32>
    %238 = vector.extract_strided_slice %224 {offsets = [0, 128], sizes = [16, 128], strides = [1, 1]} : vector<16x384xbf16> to vector<16x128xbf16>
    %239 = vector.extract_strided_slice %228 {offsets = [0, 128], sizes = [16, 128], strides = [1, 1]} : vector<16x384xf32> to vector<16x128xf32>
    %240 = arith.extf %238 : vector<16x128xbf16> to vector<16x128xf32>
    %241 = arith.addf %240, %239 : vector<16x128xf32>
    %242 = arith.negf %241 : vector<16x128xf32>
    %243 = math.exp %242 : vector<16x128xf32>
    %cst_64 = arith.constant 1.000000e+00 : f32
    %244 = vector.broadcast %cst_64 : f32 to vector<16x128xf32>
    %245 = arith.addf %244, %243 : vector<16x128xf32>
    %246 = arith.divf %244, %245 : vector<16x128xf32>
    %247 = vector.extract_strided_slice %224 {offsets = [0, 256], sizes = [16, 128], strides = [1, 1]} : vector<16x384xbf16> to vector<16x128xbf16>
    %248 = vector.extract_strided_slice %228 {offsets = [0, 256], sizes = [16, 128], strides = [1, 1]} : vector<16x384xf32> to vector<16x128xf32>
    %249 = arith.mulf %237, %248 : vector<16x128xf32>
    %250 = arith.extf %247 : vector<16x128xbf16> to vector<16x128xf32>
    %251 = arith.addf %250, %249 : vector<16x128xf32>
    %252 = math.tanh %251 : vector<16x128xf32>
    %253 = arith.subf %221, %252 : vector<16x128xf32>
    %254 = arith.mulf %246, %253 : vector<16x128xf32>
    %255 = arith.addf %252, %254 : vector<16x128xf32>
    %c0_65 = arith.constant 0 : index
    %c0_66 = arith.constant 0 : index
    %256 = vector.load %arg8[%c0_65, %c0_66] : memref<16x128xf32, #tpu.memory_space<vmem>>, vector<16x128xf32>
    tpu.vector_store %arg8[%c0_65, %c0_66], %255 {strides = array<i32>} : memref<16x128xf32, #tpu.memory_space<vmem>>, vector<16x128xf32>,
    %c7_i32 = arith.constant 7 : i32
    %c0_67 = arith.constant 0 : index
    %c0_68 = arith.constant 0 : index
    %257 = vector.load %arg8[%c0_67, %c0_68] : memref<16x128xf32, #tpu.memory_space<vmem>>, vector<16x128xf32>
    %258 = arith.index_cast %c7_i32 : i32 to index
    %c0_69 = arith.constant 0 : index
    %c0_70 = arith.constant 0 : index
    %259 = vector.load %arg2[%258, %c0_69, %c0_70] : memref<8x16x384xbf16, #tpu.memory_space<vmem>>, vector<1x16x384xbf16>
    %260 = vector.shape_cast %259 : vector<1x16x384xbf16> to vector<16x384xbf16>
    %261 = arith.truncf %257 : vector<16x128xf32> to vector<16x128xbf16>
    %cst_71 = arith.constant dense<0.000000e+00> : vector<16x384xf32>
    %262 = tpu.matmul %261, %3, %cst_71 {dimension_numbers = #tpu.dot_dimension_numbers<[1], [0], [0], [1], [0, 0, 1, 1], [], []>} : vector<16x128xbf16>, vector<128x384xbf16>, vector<16x384xf32> -> vector<16x384xf32>
    %263 = vector.broadcast %4 : vector<1x384xf32> to vector<16x384xf32>
    %264 = arith.addf %262, %263 : vector<16x384xf32>
    %265 = vector.extract_strided_slice %260 {offsets = [0, 0], sizes = [16, 128], strides = [1, 1]} : vector<16x384xbf16> to vector<16x128xbf16>
    %266 = vector.extract_strided_slice %264 {offsets = [0, 0], sizes = [16, 128], strides = [1, 1]} : vector<16x384xf32> to vector<16x128xf32>
    %267 = arith.extf %265 : vector<16x128xbf16> to vector<16x128xf32>
    %268 = arith.addf %267, %266 : vector<16x128xf32>
    %269 = arith.negf %268 : vector<16x128xf32>
    %270 = math.exp %269 : vector<16x128xf32>
    %cst_72 = arith.constant 1.000000e+00 : f32
    %271 = vector.broadcast %cst_72 : f32 to vector<16x128xf32>
    %272 = arith.addf %271, %270 : vector<16x128xf32>
    %273 = arith.divf %271, %272 : vector<16x128xf32>
    %274 = vector.extract_strided_slice %260 {offsets = [0, 128], sizes = [16, 128], strides = [1, 1]} : vector<16x384xbf16> to vector<16x128xbf16>
    %275 = vector.extract_strided_slice %264 {offsets = [0, 128], sizes = [16, 128], strides = [1, 1]} : vector<16x384xf32> to vector<16x128xf32>
    %276 = arith.extf %274 : vector<16x128xbf16> to vector<16x128xf32>
    %277 = arith.addf %276, %275 : vector<16x128xf32>
    %278 = arith.negf %277 : vector<16x128xf32>
    %279 = math.exp %278 : vector<16x128xf32>
    %cst_73 = arith.constant 1.000000e+00 : f32
    %280 = vector.broadcast %cst_73 : f32 to vector<16x128xf32>
    %281 = arith.addf %280, %279 : vector<16x128xf32>
    %282 = arith.divf %280, %281 : vector<16x128xf32>
    %283 = vector.extract_strided_slice %260 {offsets = [0, 256], sizes = [16, 128], strides = [1, 1]} : vector<16x384xbf16> to vector<16x128xbf16>
    %284 = vector.extract_strided_slice %264 {offsets = [0, 256], sizes = [16, 128], strides = [1, 1]} : vector<16x384xf32> to vector<16x128xf32>
    %285 = arith.mulf %273, %284 : vector<16x128xf32>
    %286 = arith.extf %283 : vector<16x128xbf16> to vector<16x128xf32>
    %287 = arith.addf %286, %285 : vector<16x128xf32>
    %288 = math.tanh %287 : vector<16x128xf32>
    %289 = arith.subf %257, %288 : vector<16x128xf32>
    %290 = arith.mulf %282, %289 : vector<16x128xf32>
    %291 = arith.addf %288, %290 : vector<16x128xf32>
    %c0_74 = arith.constant 0 : index
    %c0_75 = arith.constant 0 : index
    %292 = vector.load %arg8[%c0_74, %c0_75] : memref<16x128xf32, #tpu.memory_space<vmem>>, vector<16x128xf32>
    tpu.vector_store %arg8[%c0_74, %c0_75], %291 {strides = array<i32>} : memref<16x128xf32, #tpu.memory_space<vmem>>, vector<16x128xf32>,
    %c8_i32 = arith.constant 8 : i32
    %c0_i32_76 = arith.constant 0 : i32
    %293 = arith.cmpi eq, %arg1, %c0_i32_76 : i32
    %294 = arith.extui %293 : i1 to i32
    %c0_i32_77 = arith.constant 0 : i32
    %295 = arith.cmpi ne, %294, %c0_i32_77 : i32
    scf.if %295 {
      %c0_78 = arith.constant 0 : index
      %c0_79 = arith.constant 0 : index
      %296 = vector.load %arg8[%c0_78, %c0_79] : memref<16x128xf32, #tpu.memory_space<vmem>>, vector<16x128xf32>
      %297 = arith.truncf %296 : vector<16x128xf32> to vector<16x128xbf16>
      %c0_80 = arith.constant 0 : index
      %c0_81 = arith.constant 0 : index
      %298 = vector.load %arg5[%c0_80, %c0_81] : memref<128x128xbf16, #tpu.memory_space<vmem>>, vector<128x128xbf16>
      %cst_82 = arith.constant dense<0.000000e+00> : vector<16x128xf32>
      %299 = tpu.matmul %297, %298, %cst_82 {dimension_numbers = #tpu.dot_dimension_numbers<[1], [0], [0], [1], [0, 0, 1, 1], [], []>} : vector<16x128xbf16>, vector<128x128xbf16>, vector<16x128xf32> -> vector<16x128xf32>
      %c0_83 = arith.constant 0 : index
      %c0_84 = arith.constant 0 : index
      %300 = vector.load %arg6[%c0_83, %c0_84] : memref<1x128xf32, #tpu.memory_space<vmem>>, vector<1x128xf32>
      %301 = vector.broadcast %300 : vector<1x128xf32> to vector<16x128xf32>
      %302 = arith.addf %299, %301 : vector<16x128xf32>
      %c0_85 = arith.constant 0 : index
      %c0_86 = arith.constant 0 : index
      %303 = vector.load %arg7[%c0_85, %c0_86] : memref<16x128xf32, #tpu.memory_space<vmem>>, vector<16x128xf32>
      tpu.vector_store %arg7[%c0_85, %c0_86], %302 {strides = array<i32>} : memref<16x128xf32, #tpu.memory_space<vmem>>, vector<16x128xf32>,
    } else {
    }
    return
  }
  func.func @transform_0(%arg0: i32, %arg1: i32) -> (i32, i32, i32) {
    %c0_i32 = arith.constant 0 : i32
    %c0_i32_0 = arith.constant 0 : i32
    return %arg1, %arg0, %c0_i32 : i32, i32, i32
  }
  func.func @transform_1(%arg0: i32, %arg1: i32) -> (i32, i32) {
    %c0_i32 = arith.constant 0 : i32
    %c0_i32_0 = arith.constant 0 : i32
    %c0_i32_1 = arith.constant 0 : i32
    return %c0_i32, %c0_i32_0 : i32, i32
  }
  func.func @transform_2(%arg0: i32, %arg1: i32) -> (i32, i32) {
    %c0_i32 = arith.constant 0 : i32
    %c0_i32_0 = arith.constant 0 : i32
    %c0_i32_1 = arith.constant 0 : i32
    return %c0_i32, %c0_i32_0 : i32, i32
  }
  func.func @transform_3(%arg0: i32, %arg1: i32) -> (i32, i32) {
    %c0_i32 = arith.constant 0 : i32
    %c0_i32_0 = arith.constant 0 : i32
    %c0_i32_1 = arith.constant 0 : i32
    return %c0_i32, %c0_i32_0 : i32, i32
  }
  func.func @transform_4(%arg0: i32, %arg1: i32) -> (i32, i32) {
    %c0_i32 = arith.constant 0 : i32
    %c0_i32_0 = arith.constant 0 : i32
    %c0_i32_1 = arith.constant 0 : i32
    return %c0_i32, %c0_i32_0 : i32, i32
  }
  func.func @transform_5(%arg0: i32, %arg1: i32) -> (i32, i32) {
    %c0_i32 = arith.constant 0 : i32
    %c0_i32_0 = arith.constant 0 : i32
    return %arg0, %c0_i32 : i32, i32
  }
}

</mosaic_0001>

<bundles_post_ra>
// kernel: rnn_forward.4
= control target key start
LH: loop header
LB: loop body
LE: loop exit
PB: predicated region body
PF: predicated region fallthrough
CT: control target
= control target key end

     0   :  { %v847_v1 = vmov 0   ;;  %v65_v33 = vlaneseq  ;;  %s1125_s1 = inlined_call_operand.vmem [shape: bf16[128,384], index: 1, kind: input, shape index: {}]   ;;  %s1126_s0 = inlined_call_operand.vmem [shape: bf16[128,128], index: 0, kind: input, shape index: {}]   ;;  %s1127_s2 = inlined_call_operand.vmem [shape: f32[1,384], index: 2, kind: input, shape index: {}]   ;;  %s1128_s3 = inlined_call_operand.vmem [shape: bf16[128,384], index: 3, kind: output, shape index: {}]  }
   0x1   :  { %v807_v0 = vld [vmem:[%s1125_s1 + $0xac] ss:$12 sps:$4 sm:$0xff]   ;;  %288 = vmatprep.mubr.bf16.mxu0 %v847_v1  ;;  %v809_v2 = vld [vmem:[%s1125_s1 + $0xa8] ss:$12 sps:$4 sm:$0xff]   ;;  %v812_v4 = vld [vmem:[%s1125_s1 + $0x90] ss:$12 sps:$4 sm:$0xff]  }
   0x2   :  { %256 = vmatprep.subr.bf16.mxu0 %v807_v0  ;;  %v810_v3 = vld [vmem:[%s1125_s1 + $0x94] ss:$12 sps:$4 sm:$0xff]   ;;  %v813_v5 = vld [vmem:[%s1125_s1 + $0x7c] ss:$12 sps:$4 sm:$0xff]   ;;  %v815_v6 = vld [vmem:[%s1125_s1 + $0x78] ss:$12 sps:$4 sm:$0xff]  }
   0x3   :  { %257 = vmatpush1.bf16.msra.mxu0 %v809_v2  ;;  %v816_v7 = vld [vmem:[%s1125_s1 + $0x64] ss:$12 sps:$4 sm:$0xff]   ;;  %v818_v9 = vld [vmem:[%s1125_s1 + $0x60] ss:$12 sps:$4 sm:$0xff]   ;;  %v821_v14 = vld [vmem:[%s1125_s1 + $0x48] ss:$12 sps:$4 sm:$0xff]  }
   0x4   :  { %258 = vmatprep.subr.bf16.mxu0 %v810_v3  ;;  %v828_v8 = vld [vmem:[%s1125_s1 + $0xb0] ss:$12 sps:$4 sm:$0xff]   ;;  %v819_v10 = vld [vmem:[%s1125_s1 + $0x4c] ss:$12 sps:$4 sm:$0xff]   ;;  %v833_v12 = vld [vmem:[%s1126_s0] sm:$0xff]   ;;  %v66_v34 = vshrl.u32 %v65_v33, 7 }
   0x5   :  { %774 = vmatprep.subr.bf16.mxu1 %v828_v8  ;;  %v832_v11 = vld [vmem:[%s1125_s1 + $0x98] ss:$12 sps:$4 sm:$0xff]   ;;  %v834_v13 = vld [vmem:[%s1125_s1 + $0x80] ss:$12 sps:$4 sm:$0xff]   ;;  %790 = vmatprep.mubr.bf16.mxu1 %v833_v12  ;;  %v835_v16 = vld [vmem:[%s1125_s1 + $0x68] ss:$12 sps:$4 sm:$0xff]  }
   0x6   :  { %775 = vmatpush3.bf16.msra.mxu1 %v828_v8  ;;  %v822_v15 = vld [vmem:[%s1125_s1 + $0x34] ss:$12 sps:$4 sm:$0xff]   ;;  %v824_v17 = vld [vmem:[%s1125_s1 + $0x30] ss:$12 sps:$4 sm:$0xff]   ;;  %v827_v20 = vld [vmem:[%s1125_s1 + $0x18] ss:$12 sps:$4 sm:$0xff]  }
   0x7   :  { %259 = vmatpush1.bf16.msra.mxu0 %v812_v4  ;;  %776 = vmatprep.subr.bf16.mxu1 %v832_v11  ;;  %v825_v18 = vld [vmem:[%s1125_s1 + $0x1c] ss:$12 sps:$4 sm:$0xff]   ;;  %v829_v21 = vld [vmem:[%s1125_s1 + $0x4] ss:$12 sps:$4 sm:$0xff]   ;;  %v831_v23 = vld [vmem:[%s1125_s1] ss:$12 sps:$4 sm:$0xff]  }
   0x8   :  { %260 = vmatprep.subr.bf16.mxu0 %v813_v5  ;;  %v837_v19 = vld [vmem:[%s1125_s1 + $0x50] ss:$12 sps:$4 sm:$0xff]   ;;  %v838_v22 = vld [vmem:[%s1125_s1 + $0x38] ss:$12 sps:$4 sm:$0xff]   ;;  %v840_v24 = vld [vmem:[%s1125_s1 + $0x20] ss:$12 sps:$4 sm:$0xff]  }
   0x9   :  { %v841_v25 = vld [vmem:[%s1125_s1 + $0x8] ss:$12 sps:$4 sm:$0xff]   ;;  %v842_v28 = vld [vmem:[%s1126_s0 + $0x18] sm:$0xff]   ;;  %v843_v29 = vld [vmem:[%s1126_s0 + $0x20] sm:$0xff]   ;;  %v67_v35 = vsub.s32 0, %v66_v34  ;;  %v71_v36 = vsub.s32 1, %v66_v34 }
   0xa   :  { %777 = vmatpush3.bf16.msra.mxu1 %v832_v11  ;;  %v836_v26 = vld [vmem:[%s1126_s0 + $0x8] sm:$0xff]   ;;  %v839_v27 = vld [vmem:[%s1126_s0 + $0x10] sm:$0xff]   ;;  %v846_v32 = vld [vmem:[%s1126_s0 + $0x38] sm:$0xff]   ;;  %v75_v44 = vsub.s32 2, %v66_v34 }
   0xb   :  { %261 = vmatpush1.bf16.msra.mxu0 %v815_v6  ;;  %778 = vmatprep.subr.bf16.mxu1 %v834_v13  ;;  %v845_v30 = vld [vmem:[%s1126_s0 + $0x30] sm:$0xff]   ;;  %v844_v31 = vld [vmem:[%s1126_s0 + $0x28] sm:$0xff]   ;;  %v63_v37 = vld [vmem:[%s1127_s2] sm:$0x7] }
   0xc   :  { %262 = vmatprep.subr.bf16.mxu0 %v816_v7  ;;  %v975_v38 = vrot.slane %v63_v37, %v67_v35  ;;  %v977_v39 = vrot.slane %v63_v37, %v71_v36  ;;  %v986_v50 = vrot.slane %v63_v37, %v75_v44 }
   0xe   :  { %779 = vmatpush3.bf16.msra.mxu1 %v834_v13 }
   0xf   :  { %263 = vmatpush1.bf16.msra.mxu0 %v818_v9  ;;  %780 = vmatprep.subr.bf16.mxu1 %v835_v16 }
  0x10   :  { %264 = vmatprep.subr.bf16.mxu0 %v819_v10 }
  0x12   :  { %781 = vmatpush3.bf16.msra.mxu1 %v835_v16 }
  0x13   :  { %265 = vmatpush1.bf16.msra.mxu0 %v821_v14  ;;  %782 = vmatprep.subr.bf16.mxu1 %v837_v19 }
  0x14   :  { %266 = vmatprep.subr.bf16.mxu0 %v822_v15 }
  0x16   :  { %783 = vmatpush3.bf16.msra.mxu1 %v837_v19 }
  0x17   :  { %267 = vmatpush1.bf16.msra.mxu0 %v824_v17  ;;  %784 = vmatprep.subr.bf16.mxu1 %v838_v22 }
  0x18   :  { %268 = vmatprep.subr.bf16.mxu0 %v825_v18 }
  0x1a   :  { %785 = vmatpush3.bf16.msra.mxu1 %v838_v22 }
  0x1b   :  { %269 = vmatpush1.bf16.msra.mxu0 %v827_v20  ;;  %786 = vmatprep.subr.bf16.mxu1 %v840_v24 }
  0x1c   :  { %270 = vmatprep.subr.bf16.mxu0 %v829_v21 }
  0x1e   :  { %787 = vmatpush3.bf16.msra.mxu1 %v840_v24 }
  0x1f   :  { %271 = vmatpush1.bf16.msra.mxu0 %v831_v23  ;;  %788 = vmatprep.subr.bf16.mxu1 %v841_v25 }
  0x22   :  { %289 = vmatmul.mubr.bf16.vlgmr.msra.gmra.mxu0 %v833_v12  ;;  %789 = vmatpush3.bf16.msra.mxu1 %v841_v25 }
  0x23   :  { %298 = vmatprep.mubr.bf16.mxu0 %v847_v1 }
  0x25   :  { %791 = vmatmul.mubr.bf16.vlgmr.msra.gmra.mxu1 %v836_v26 }
  0x26   :  { %794 = vmatprep.mubr.bf16.mxu1 %v839_v27 }
  0x2a   :  { %299 = vmatmul.mubr.bf16.gmra.mxu0 %v836_v26 }
  0x2b   :  { %308 = vmatprep.mubr.bf16.mxu0 %v847_v1 }
  0x2d   :  { %795 = vmatmul.mubr.bf16.gmra.mxu1 %v842_v28 }
  0x2e   :  { %798 = vmatprep.mubr.bf16.mxu1 %v843_v29 }
  0x32   :  { %309 = vmatmul.mubr.bf16.gmra.mxu0 %v839_v27 }
  0x33   :  { %318 = vmatprep.mubr.bf16.mxu0 %v847_v1 }
  0x35   :  { %799 = vmatmul.mubr.bf16.gmra.mxu1 %v844_v31 }
  0x36   :  { %802 = vmatprep.mubr.bf16.mxu1 %v845_v30 }
  0x3a   :  { %319 = vmatmul.mubr.bf16.gmra.mxu0 %v842_v28 }
  0x3b   :  { %328 = vmatprep.mubr.bf16.mxu0 %v847_v1 }
  0x3d   :  { %803 = vmatmul.mubr.bf16.gmra.mxu1 %v846_v32 }
  0x42   :  { %329 = vmatmul.mubr.bf16.gmra.mxu0 %v843_v29 }
  0x43   :  { %338 = vmatprep.mubr.bf16.mxu0 %v847_v1 }
  0x4a   :  { %339 = vmatmul.mubr.bf16.gmra.mxu0 %v844_v31 }
  0x4b   :  { %348 = vmatprep.mubr.bf16.mxu0 %v847_v1 }
  0x52   :  { %349 = vmatmul.mubr.bf16.gmra.mxu0 %v845_v30 }
  0x53   :  { %358 = vmatprep.mubr.bf16.mxu0 %v847_v1 }
  0x5a   :  { %359 = vmatmul.mubr.bf16.gmra.mxu0 %v846_v32 }
  0xe2   :  { %v290_v40 = vpop.f32.mrf.mxu0 }
  0xe3   :  { %v291_v42 = vadd.f32 %v290_v40, %v975_v38 }
  0xe4   :  { %v292_v41 = vpop.f32.mrf.mxu0 }
  0xe5   :  { %v293_v43 = vadd.f32 %v292_v41, %v977_v39  ;;  %v792_v54 = vpop.f32.mrf.mxu1 }
  0xe6   :  { %v294_v45 = vpop.f32.mrf.mxu0  ;;  %v412_v57 = vadd.f32 %v792_v54, %v986_v50 }
  0xe7   :  { %v726_v46 = vpack.c.bf16 %v293_v43, %v291_v42  ;;  %v295_v48 = vadd.f32 %v294_v45, %v975_v38  ;;  %v403_v59 = vpop.f32.mrf.mxu1 }
  0xe8   :  { %v296_v47 = vpop.f32.mrf.mxu0  ;;  %v731_v61 = vpack.c.bf16 %v412_v57, %v412_v57  ;;  %v404_v62 = vadd.f32 %v403_v59, %v986_v50 }
  0xe9   :  { %626 = vst [vmem:[%s1128_s3] sm:$0xff] %v726_v46  ;;  %v297_v49 = vadd.f32 %v296_v47, %v977_v39  ;;  %v793_v0 = vpop.f32.mrf.mxu1 }
  0xea   :  { %v300_v51 = vpop.f32.mrf.mxu0  ;;  %631 = vst [vmem:[%s1128_s3 + $0x20] sm:$0xf] %v731_v61  ;;  %v727_v3 = vpack.c.bf16 %v404_v62, %v404_v62  ;;  %v415_v4 = vadd.f32 %v793_v0, %v986_v50 }
  0xeb   :  { %v728_v52 = vpack.c.bf16 %v297_v49, %v295_v48  ;;  %v301_v55 = vadd.f32 %v300_v51, %v975_v38  ;;  %v406_v6 = vpop.f32.mrf.mxu1 }
  0xec   :  { %v302_v53 = vpop.f32.mrf.mxu0  ;;  %627 = vst [vmem:[%s1128_s3 + $0x8] sm:$0xf] %v727_v3  ;;  %v733_v8 = vpack.c.bf16 %v415_v4, %v415_v4  ;;  %v407_v9 = vadd.f32 %v406_v6, %v986_v50 }
  0xed   :  { %628 = vst [vmem:[%s1128_s3 + $0xc] sm:$0xff] %v728_v52  ;;  %v303_v56 = vadd.f32 %v302_v53, %v977_v39  ;;  %v796_v11 = vpop.f32.mrf.mxu1 }
  0xee   :  { %v304_v58 = vpop.f32.mrf.mxu0  ;;  %633 = vst [vmem:[%s1128_s3 + $0x2c] sm:$0xf] %v733_v8  ;;  %v729_v14 = vpack.c.bf16 %v407_v9, %v407_v9  ;;  %v428_v15 = vadd.f32 %v796_v11, %v986_v50 }
  0xef   :  { %v730_v60 = vpack.c.bf16 %v303_v56, %v301_v55  ;;  %v305_v1 = vadd.f32 %v304_v58, %v975_v38  ;;  %v419_v17 = vpop.f32.mrf.mxu1 }
  0xf0   :  { %v306_v63 = vpop.f32.mrf.mxu0  ;;  %629 = vst [vmem:[%s1128_s3 + $0x14] sm:$0xf] %v729_v14  ;;  %v739_v19 = vpack.c.bf16 %v428_v15, %v428_v15  ;;  %v420_v20 = vadd.f32 %v419_v17, %v986_v50 }
  0xf1   :  { %630 = vst [vmem:[%s1128_s3 + $0x18] sm:$0xff] %v730_v60  ;;  %v307_v2 = vadd.f32 %v306_v63, %v977_v39  ;;  %v797_v22 = vpop.f32.mrf.mxu1 }
  0xf2   :  { %v310_v5 = vpop.f32.mrf.mxu0  ;;  %639 = vst [vmem:[%s1128_s3 + $0x50] sm:$0xf] %v739_v19  ;;  %v735_v25 = vpack.c.bf16 %v420_v20, %v420_v20  ;;  %v431_v26 = vadd.f32 %v797_v22, %v986_v50 }
  0xf3   :  { %v732_v7 = vpack.c.bf16 %v307_v2, %v305_v1  ;;  %v311_v12 = vadd.f32 %v310_v5, %v975_v38  ;;  %v422_v28 = vpop.f32.mrf.mxu1 }
  0xf4   :  { %v312_v10 = vpop.f32.mrf.mxu0  ;;  %635 = vst [vmem:[%s1128_s3 + $0x38] sm:$0xf] %v735_v25  ;;  %v741_v30 = vpack.c.bf16 %v431_v26, %v431_v26  ;;  %v423_v31 = vadd.f32 %v422_v28, %v986_v50 }
  0xf5   :  { %632 = vst [vmem:[%s1128_s3 + $0x24] sm:$0xff] %v732_v7  ;;  %v313_v13 = vadd.f32 %v312_v10, %v977_v39  ;;  %v800_v33 = vpop.f32.mrf.mxu1 }
  0xf6   :  { %v314_v16 = vpop.f32.mrf.mxu0  ;;  %641 = vst [vmem:[%s1128_s3 + $0x5c] sm:$0xf] %v741_v30  ;;  %v737_v36 = vpack.c.bf16 %v423_v31, %v423_v31  ;;  %v444_v37 = vadd.f32 %v800_v33, %v986_v50 }
  0xf7   :  { %v734_v18 = vpack.c.bf16 %v313_v13, %v311_v12  ;;  %v315_v23 = vadd.f32 %v314_v16, %v975_v38  ;;  %v435_v41 = vpop.f32.mrf.mxu1 }
  0xf8   :  { %v316_v21 = vpop.f32.mrf.mxu0  ;;  %637 = vst [vmem:[%s1128_s3 + $0x44] sm:$0xf] %v737_v36  ;;  %v747_v43 = vpack.c.bf16 %v444_v37, %v444_v37  ;;  %v436_v44 = vadd.f32 %v435_v41, %v986_v50 }
  0xf9   :  { %634 = vst [vmem:[%s1128_s3 + $0x30] sm:$0xff] %v734_v18  ;;  %v317_v24 = vadd.f32 %v316_v21, %v977_v39  ;;  %v801_v46 = vpop.f32.mrf.mxu1 }
  0xfa   :  { %v320_v27 = vpop.f32.mrf.mxu0  ;;  %647 = vst [vmem:[%s1128_s3 + $0x80] sm:$0xf] %v747_v43  ;;  %v743_v49 = vpack.c.bf16 %v436_v44, %v436_v44  ;;  %v447_v51 = vadd.f32 %v801_v46, %v986_v50 }
  0xfb   :  { %v736_v29 = vpack.c.bf16 %v317_v24, %v315_v23  ;;  %v321_v34 = vadd.f32 %v320_v27, %v975_v38  ;;  %v438_v53 = vpop.f32.mrf.mxu1 }
  0xfc   :  { %v322_v32 = vpop.f32.mrf.mxu0  ;;  %643 = vst [vmem:[%s1128_s3 + $0x68] sm:$0xf] %v743_v49  ;;  %v749_v55 = vpack.c.bf16 %v447_v51, %v447_v51  ;;  %v439_v56 = vadd.f32 %v438_v53, %v986_v50 }
  0xfd   :  { %636 = vst [vmem:[%s1128_s3 + $0x3c] sm:$0xff] %v736_v29  ;;  %v323_v35 = vadd.f32 %v322_v32, %v977_v39  ;;  %v804_v58 = vpop.f32.mrf.mxu1 }
  0xfe   :  { %v324_v40 = vpop.f32.mrf.mxu0  ;;  %649 = vst [vmem:[%s1128_s3 + $0x8c] sm:$0xf] %v749_v55  ;;  %v745_v61 = vpack.c.bf16 %v439_v56, %v439_v56  ;;  %v460_v62 = vadd.f32 %v804_v58, %v986_v50 }
  0xff   :  { %v738_v42 = vpack.c.bf16 %v323_v35, %v321_v34  ;;  %v325_v47 = vadd.f32 %v324_v40, %v975_v38  ;;  %v451_v0 = vpop.f32.mrf.mxu1 }
 0x100   :  { %v326_v45 = vpop.f32.mrf.mxu0  ;;  %645 = vst [vmem:[%s1128_s3 + $0x74] sm:$0xf] %v745_v61  ;;  %v755_v2 = vpack.c.bf16 %v460_v62, %v460_v62  ;;  %v452_v3 = vadd.f32 %v451_v0, %v986_v50 }
 0x101   :  { %638 = vst [vmem:[%s1128_s3 + $0x48] sm:$0xff] %v738_v42  ;;  %v327_v48 = vadd.f32 %v326_v45, %v977_v39  ;;  %v805_v5 = vpop.f32.mrf.mxu1 }
 0x102   :  { %v330_v52 = vpop.f32.mrf.mxu0  ;;  %655 = vst [vmem:[%s1128_s3 + $0xb0] sm:$0xf] %v755_v2  ;;  %v751_v8 = vpack.c.bf16 %v452_v3, %v452_v3  ;;  %v463_v9 = vadd.f32 %v805_v5, %v986_v50 }
 0x103   :  { %v740_v54 = vpack.c.bf16 %v327_v48, %v325_v47  ;;  %v331_v59 = vadd.f32 %v330_v52, %v975_v38  ;;  %v454_v11 = vpop.f32.mrf.mxu1 }
 0x104   :  { %v332_v57 = vpop.f32.mrf.mxu0  ;;  %651 = vst [vmem:[%s1128_s3 + $0x98] sm:$0xf] %v751_v8  ;;  %v757_v13 = vpack.c.bf16 %v463_v9, %v463_v9  ;;  %v455_v14 = vadd.f32 %v454_v11, %v986_v50 }
 0x105   :  { %640 = vst [vmem:[%s1128_s3 + $0x54] sm:$0xff] %v740_v54  ;;  %v333_v60 = vadd.f32 %v332_v57, %v977_v39 }
 0x106   :  { %v334_v63 = vpop.f32.mrf.mxu0  ;;  %657 = vst [vmem:[%s1128_s3 + $0xbc] sm:$0xf] %v757_v13  ;;  %v753_v18 = vpack.c.bf16 %v455_v14, %v455_v14 }
 0x107   :  { %v742_v1 = vpack.c.bf16 %v333_v60, %v331_v59  ;;  %v335_v6 = vadd.f32 %v334_v63, %v975_v38 }
 0x108   :  { %v336_v4 = vpop.f32.mrf.mxu0  ;;  %653 = vst [vmem:[%s1128_s3 + $0xa4] sm:$0xf] %v753_v18 }
 0x109   :  { %642 = vst [vmem:[%s1128_s3 + $0x60] sm:$0xff] %v742_v1  ;;  %v337_v7 = vadd.f32 %v336_v4, %v977_v39 }
 0x10a   :  { %v340_v10 = vpop.f32.mrf.mxu0 }
 0x10b   :  { %v744_v12 = vpack.c.bf16 %v337_v7, %v335_v6  ;;  %v341_v16 = vadd.f32 %v340_v10, %v975_v38 }
 0x10c   :  { %v342_v15 = vpop.f32.mrf.mxu0 }
 0x10d   :  { %644 = vst [vmem:[%s1128_s3 + $0x6c] sm:$0xff] %v744_v12  ;;  %v343_v17 = vadd.f32 %v342_v15, %v977_v39 }
 0x10e   :  { %v344_v19 = vpop.f32.mrf.mxu0 }
 0x10f   :  { %v746_v20 = vpack.c.bf16 %v343_v17, %v341_v16  ;;  %v345_v21 = vadd.f32 %v344_v19, %v975_v38 }
 0x110   :  { %v346_v50 = vpop.f32.mrf.mxu0 }
 0x111   :  { %646 = vst [vmem:[%s1128_s3 + $0x78] sm:$0xff] %v746_v20  ;;  %v347_v22 = vadd.f32 %v346_v50, %v977_v39 }
 0x112   :  { %v350_v23 = vpop.f32.mrf.mxu0 }
 0x113   :  { %v748_v24 = vpack.c.bf16 %v347_v22, %v345_v21  ;;  %v351_v26 = vadd.f32 %v350_v23, %v975_v38 }
 0x114   :  { %v352_v25 = vpop.f32.mrf.mxu0 }
 0x115   :  { %648 = vst [vmem:[%s1128_s3 + $0x84] sm:$0xff] %v748_v24  ;;  %v353_v27 = vadd.f32 %v352_v25, %v977_v39 }
 0x116   :  { %v354_v28 = vpop.f32.mrf.mxu0 }
 0x117   :  { %v750_v29 = vpack.c.bf16 %v353_v27, %v351_v26  ;;  %v355_v31 = vadd.f32 %v354_v28, %v975_v38 }
 0x118   :  { %v356_v30 = vpop.f32.mrf.mxu0 }
 0x119   :  { %650 = vst [vmem:[%s1128_s3 + $0x90] sm:$0xff] %v750_v29  ;;  %v357_v32 = vadd.f32 %v356_v30, %v977_v39 }
 0x11a   :  { %v360_v33 = vpop.f32.mrf.mxu0 }
 0x11b   :  { %v752_v34 = vpack.c.bf16 %v357_v32, %v355_v31  ;;  %v361_v36 = vadd.f32 %v360_v33, %v975_v38 }
 0x11c   :  { %v362_v35 = vpop.f32.mrf.mxu0 }
 0x11d   :  { %652 = vst [vmem:[%s1128_s3 + $0x9c] sm:$0xff] %v752_v34  ;;  %v363_v37 = vadd.f32 %v362_v35, %v977_v39 }
 0x11e   :  { %v364_v40 = vpop.f32.mrf.mxu0 }
 0x11f   :  { %v754_v41 = vpack.c.bf16 %v363_v37, %v361_v36  ;;  %v365_v43 = vadd.f32 %v364_v40, %v975_v38 }
 0x120   :  { %v366_v42 = vpop.f32.mrf.mxu0 }
 0x121   :  { %654 = vst [vmem:[%s1128_s3 + $0xa8] sm:$0xff] %v754_v41  ;;  %v367_v44 = vadd.f32 %v366_v42, %v977_v39 }
 0x123   :  { %v756_v45 = vpack.c.bf16 %v367_v44, %v365_v43 }
 0x125   :  { %656 = vst [vmem:[%s1128_s3 + $0xb4] sm:$0xff] %v756_v45 }

// kernel: rnn_forward.5
= control target key start
LH: loop header
LB: loop body
LE: loop exit
PB: predicated region body
PF: predicated region fallthrough
CT: control target
= control target key end

     0   :  { %v2085_v1 = vmov 0.0   ;;  %v2086_v2 = vmov 0   ;;  %vm2087_vm0 = vmmov 0   ;;  %v2088_v25 = vmov 0.0|0.0   ;;  %s2838_s1 = inlined_call_operand.vmem [shape: bf16[128,384], index: 1, kind: input, shape index: {}]   ;;  %s2839_s2 = inlined_call_operand.vmem [shape: f32[1,384], index: 2, kind: input, shape index: {}]   ;;  %s2840_s0 = inlined_call_operand.vmem [shape: bf16[8,16,384], index: 0, kind: input, shape index: {}]   ;;  %s2841_s3 = inlined_call_operand.vmem [shape: bf16[8,16,128], index: 3, kind: output, shape index: {}]  }
   0x1   :  { %v2112_v0 = vld [vmem:[%s2838_s1 + $0xac] ss:$12 sps:$4 sm:$0xff]   ;;  %1705 = vmatprep.subr.bf16.mxu1 %v2085_v1  ;;  %237 = vmatprep.mubr.bf16.mxu0 %v2086_v2  ;;  %v2119_v3 = vld [vmem:[%s2838_s1 + $0xa8] ss:$12 sps:$4 sm:$0xff]   ;;  %v2133_v5 = vld [vmem:[%s2838_s1 + $0x90] ss:$12 sps:$4 sm:$0xff]   ;;  %v62_v27 = vlaneseq }
   0x2   :  { %1721 = vmatprep.mubr.msk.bf16.mxu1 %vm2087_vm0, %v2085_v1  ;;  %205 = vmatprep.subr.bf16.mxu0 %v2112_v0  ;;  %v2127_v4 = vld [vmem:[%s2838_s1 + $0x94] ss:$12 sps:$4 sm:$0xff]   ;;  %v2139_v6 = vld [vmem:[%s2838_s1 + $0x7c] ss:$12 sps:$4 sm:$0xff]   ;;  %v2145_v7 = vld [vmem:[%s2838_s1 + $0x78] ss:$12 sps:$4 sm:$0xff]  }
   0x3   :  { %206 = vmatpush1.bf16.msra.mxu0 %v2119_v3  ;;  %v2151_v8 = vld [vmem:[%s2838_s1 + $0x64] ss:$12 sps:$4 sm:$0xff]   ;;  %v2156_v9 = vld [vmem:[%s2838_s1 + $0x60] ss:$12 sps:$4 sm:$0xff]   ;;  %v2181_v13 = vld [vmem:[%s2838_s1 + $0x48] ss:$12 sps:$4 sm:$0xff]  }
   0x4   :  { %207 = vmatprep.subr.bf16.mxu0 %v2127_v4  ;;  %v2162_v10 = vld [vmem:[%s2838_s1 + $0xb0] ss:$12 sps:$4 sm:$0xff]   ;;  %v2168_v11 = vld [vmem:[%s2838_s1 + $0x4c] ss:$12 sps:$4 sm:$0xff]   ;;  %v2187_v14 = vld [vmem:[%s2838_s1 + $0x34] ss:$12 sps:$4 sm:$0xff]  }
   0x5   :  { %1706 = vmatpush3.bf16.msra.mxu1 %v2162_v10  ;;  %v2174_v12 = vld [vmem:[%s2838_s1 + $0x98] ss:$12 sps:$4 sm:$0xff]   ;;  %v2193_v15 = vld [vmem:[%s2838_s1 + $0x80] ss:$12 sps:$4 sm:$0xff]   ;;  %v2200_v16 = vld [vmem:[%s2838_s1 + $0x30] ss:$12 sps:$4 sm:$0xff]  }
   0x6   :  { %1707 = vmatprep.subr.bf16.mxu1 %v2085_v1  ;;  %v2206_v17 = vld [vmem:[%s2838_s1 + $0x1c] ss:$12 sps:$4 sm:$0xff]   ;;  %v2219_v19 = vld [vmem:[%s2838_s1 + $0x18] ss:$12 sps:$4 sm:$0xff]   ;;  %v2238_v22 = vld [vmem:[%s2838_s1] ss:$12 sps:$4 sm:$0xff]  }
   0x7   :  { %208 = vmatpush1.bf16.msra.mxu0 %v2133_v5  ;;  %v2212_v18 = vld [vmem:[%s2838_s1 + $0x68] ss:$12 sps:$4 sm:$0xff]   ;;  %v2225_v20 = vld [vmem:[%s2838_s1 + $0x4] ss:$12 sps:$4 sm:$0xff]   ;;  %v2254_v24 = vld [vmem:[%s2838_s1 + $0x20] ss:$12 sps:$4 sm:$0xff]  }
   0x8   :  { %209 = vmatprep.subr.bf16.mxu0 %v2139_v6  ;;  %v2231_v21 = vld [vmem:[%s2838_s1 + $0x50] ss:$12 sps:$4 sm:$0xff]   ;;  %v2245_v23 = vld [vmem:[%s2838_s1 + $0x38] ss:$12 sps:$4 sm:$0xff]   ;;  %v2264_v26 = vld [vmem:[%s2838_s1 + $0x8] ss:$12 sps:$4 sm:$0xff]  }
   0x9   :  { %1708 = vmatpush3.bf16.msra.mxu1 %v2174_v12  ;;  %v63_v28 = vshrl.u32 %v62_v27, 7  ;;  %v53_v30 = vld [vmem:[%s2839_s2] sm:$0x7]  ;;  %v58_v35 = vld [vmem:[%s2840_s0 + $0xc] sm:$0xff] }
   0xa   :  { %1709 = vmatprep.subr.bf16.mxu1 %v2085_v1  ;;  %v56_v31 = vld [vmem:[%s2840_s0] sm:$0xff]  ;;  %v290_v39 = vunpack.c.l.bf16 %v58_v35  ;;  %v308_v48 = vrot.slane %v58_v35, 4 }
   0xb   :  { %210 = vmatpush1.bf16.msra.mxu0 %v2145_v7  ;;  %v64_v29 = vsub.s32 0, %v63_v28  ;;  %v289_v33 = vunpack.c.l.bf16 %v56_v31  ;;  %v68_v40 = vsub.s32 1, %v63_v28  ;;  %v307_v46 = vrot.slane %v56_v31, 4 }
   0xc   :  { %211 = vmatprep.subr.bf16.mxu0 %v2151_v8  ;;  %v312_v55 = vunpack.c.l.bf16 %v308_v48 }
   0xd   :  { %1710 = vmatpush3.bf16.msra.mxu1 %v2193_v15  ;;  %v2307_v32 = vrot.slane %v53_v30, %v64_v29  ;;  %v2314_v45 = vrot.slane %v53_v30, %v68_v40  ;;  %v311_v52 = vunpack.c.l.bf16 %v307_v46  ;;  %v72_v29 = vsub.s32 2, %v63_v28 }
   0xe   :  { %1711 = vmatprep.subr.bf16.mxu1 %v2085_v1 }
   0xf   :  { %212 = vmatpush1.bf16.msra.mxu0 %v2156_v9  ;;  %v2318_v31 = vrot.slane %v53_v30, %v72_v29 }
  0x10   :  { %213 = vmatprep.subr.bf16.mxu0 %v2168_v11 }
  0x11   :  { %1712 = vmatpush3.bf16.msra.mxu1 %v2212_v18 }
  0x12   :  { %1713 = vmatprep.subr.bf16.mxu1 %v2085_v1 }
  0x13   :  { %214 = vmatpush1.bf16.msra.mxu0 %v2181_v13 }
  0x14   :  { %215 = vmatprep.subr.bf16.mxu0 %v2187_v14 }
  0x15   :  { %1714 = vmatpush3.bf16.msra.mxu1 %v2231_v21 }
  0x16   :  { %1715 = vmatprep.subr.bf16.mxu1 %v2085_v1 }
  0x17   :  { %216 = vmatpush1.bf16.msra.mxu0 %v2200_v16 }
  0x18   :  { %217 = vmatprep.subr.bf16.mxu0 %v2206_v17 }
  0x19   :  { %1716 = vmatpush3.bf16.msra.mxu1 %v2245_v23 }
  0x1a   :  { %1717 = vmatprep.subr.bf16.mxu1 %v2085_v1 }
  0x1b   :  { %218 = vmatpush1.bf16.msra.mxu0 %v2219_v19 }
  0x1c   :  { %219 = vmatprep.subr.bf16.mxu0 %v2225_v20 }
  0x1d   :  { %1718 = vmatpush3.bf16.msra.mxu1 %v2254_v24 }
  0x1e   :  { %1719 = vmatprep.subr.bf16.mxu1 %v2085_v1 }
  0x1f   :  { %220 = vmatpush1.bf16.msra.mxu0 %v2238_v22 }
  0x20   :  { %361 = vmatprep.subr.bf16.mxu0 %v2112_v0 }
  0x21   :  { %1720 = vmatpush3.bf16.msra.mxu1 %v2264_v26 }
  0x22   :  { %238 = vmatmul.mubr.bf16.vlgmr.msra.gmra.mxu0 %v2088_v25  ;;  %1725 = vmatprep.subr.bf16.mxu1 %v2085_v1 }
  0x23   :  { %362 = vmatpush1.bf16.msra.mxu0 %v2119_v3  ;;  %393 = vmatprep.mubr.bf16.mxu0 %v2086_v2 }
  0x24   :  { %363 = vmatprep.subr.bf16.mxu0 %v2127_v4  ;;  %1722 = vmatmul.mubr.bf16.vlgmr.msra.gmra.mxu1 %v2088_v25 }
  0x25   :  { %1726 = vmatpush3.bf16.msra.mxu1 %v2162_v10  ;;  %1741 = vmatprep.mubr.msk.bf16.mxu1 %vm2087_vm0, %v2085_v1 }
  0x26   :  { %1727 = vmatprep.subr.bf16.mxu1 %v2085_v1 }
  0x27   :  { %364 = vmatpush1.bf16.msra.mxu0 %v2133_v5 }
  0x28   :  { %365 = vmatprep.subr.bf16.mxu0 %v2139_v6 }
  0x29   :  { %1728 = vmatpush3.bf16.msra.mxu1 %v2174_v12 }
  0x2a   :  { %1729 = vmatprep.subr.bf16.mxu1 %v2085_v1 }
  0x2b   :  { %366 = vmatpush1.bf16.msra.mxu0 %v2145_v7 }
  0x2c   :  { %367 = vmatprep.subr.bf16.mxu0 %v2151_v8 }
  0x2d   :  { %1730 = vmatpush3.bf16.msra.mxu1 %v2193_v15 }
  0x2e   :  { %1731 = vmatprep.subr.bf16.mxu1 %v2085_v1 }
  0x2f   :  { %368 = vmatpush1.bf16.msra.mxu0 %v2156_v9 }
  0x30   :  { %369 = vmatprep.subr.bf16.mxu0 %v2168_v11 }
  0x31   :  { %1732 = vmatpush3.bf16.msra.mxu1 %v2212_v18 }
  0x32   :  { %1733 = vmatprep.subr.bf16.mxu1 %v2085_v1 }
  0x33   :  { %370 = vmatpush1.bf16.msra.mxu0 %v2181_v13 }
  0x34   :  { %371 = vmatprep.subr.bf16.mxu0 %v2187_v14 }
  0x35   :  { %1734 = vmatpush3.bf16.msra.mxu1 %v2231_v21 }
  0x36   :  { %1735 = vmatprep.subr.bf16.mxu1 %v2085_v1 }
  0x37   :  { %372 = vmatpush1.bf16.msra.mxu0 %v2200_v16 }
  0x38   :  { %373 = vmatprep.subr.bf16.mxu0 %v2206_v17 }
  0x39   :  { %1736 = vmatpush3.bf16.msra.mxu1 %v2245_v23 }
  0x3a   :  { %1737 = vmatprep.subr.bf16.mxu1 %v2085_v1 }
  0x3b   :  { %374 = vmatpush1.bf16.msra.mxu0 %v2219_v19 }
  0x3c   :  { %375 = vmatprep.subr.bf16.mxu0 %v2225_v20 }
  0x3d   :  { %1738 = vmatpush3.bf16.msra.mxu1 %v2254_v24 }
  0x3e   :  { %1739 = vmatprep.subr.bf16.mxu1 %v2085_v1 }
  0x3f   :  { %376 = vmatpush1.bf16.msra.mxu0 %v2238_v22 }
  0x40   :  { %518 = vmatprep.subr.bf16.mxu0 %v2112_v0 }
  0x41   :  { %1740 = vmatpush3.bf16.msra.mxu1 %v2264_v26 }
  0x42   :  { %1745 = vmatprep.subr.bf16.mxu1 %v2085_v1 }
  0xe2   :  { %v239_v34 = vpop.f32.mrf.mxu0 }
  0xe3   :  { %v240_v36 = vadd.f32 %v239_v34, %v2307_v32 }
  0xe4   :  { %v241_v37 = vpop.f32.mrf.mxu0  ;;  %v282_v49 = vpop.f32.mrf.mxu1 }
  0xe5   :  { %v291_v38 = vadd.f32 %v289_v33, %v240_v36  ;;  %v242_v51 = vadd.f32 %v241_v37, %v2314_v45  ;;  %v57_v33 = vld [vmem:[%s2840_s0 + $0x8] ss:$12 sps:$4 sm:$0xff]   ;;  %v283_v34 = vadd.f32 %v282_v49, %v2318_v31 }
  0xe6   :  { %v243_v41 = vpop.f32.mrf.mxu0  ;;  %v1723_v53 = vpop.f32.mrf.mxu1  ;;  %v329_v35 = vunpack.c.l.bf16 %v57_v33 }
  0xe7   :  { %v1480_v42 = vmul.f32 -1.442695, %v291_v38  ;;  %v244_v43 = vadd.f32 %v243_v41, %v2307_v32  ;;  %v313_v57 = vadd.f32 %v311_v52, %v242_v51 }
  0xe8   :  { %v245_v50 = vpop.f32.mrf.mxu0  ;;  %v285_v56 = vpop.f32.mrf.mxu1 }
  0xe9   :  { %1901 = vpow2.f32 %v1480_v42  ;;  %v292_v44 = vadd.f32 %v290_v39, %v244_v43  ;;  %v246_v54 = vadd.f32 %v245_v50, %v2314_v45  ;;  %v1482_v61 = vmul.f32 -1.442695, %v313_v57 }
  0xea   :  { %v1724_v58 = vpop.f32.mrf.mxu1  ;;  %v286_v41 = vadd.f32 %v285_v56, %v2318_v31  ;;  %v330_v42 = vunpack.c.h.bf16 %v57_v33 }
  0xeb   :  { %v1481_v47 = vmul.f32 -1.442695, %v292_v44  ;;  %v314_v59 = vadd.f32 %v312_v55, %v246_v54  ;;  %v1486_v58 = vld [vmem:[%s2840_s0 + $0x18] sm:$0xff] }
  0xed   :  { %1903 = vpow2.f32 %v1481_v47  ;;  %v1483_v63 = vmul.f32 -1.442695, %v314_v59  ;;  %v445_v59 = vunpack.c.l.bf16 %v1486_v58 }
  0xf6   :  { %v1902_v60 = vpop.eup %1901 }
  0xf7   :  { %v299_v62 = vadd.f32 1.0, %v1902_v60 }
  0xf9   :  { %1905 = vrcp.f32 %v299_v62  ;;  %v1488_v62 = vld [vmem:[%s2840_s0 + $0x24] sm:$0xff] }
  0xfa   :  { %v1904_v25 = vpop.eup %1903  ;;  %1907 = vpow2.f32 %v1482_v61  ;;  %v446_v33 = vunpack.c.l.bf16 %v1488_v62 }
  0xfb   :  { %v300_v27 = vadd.f32 1.0, %v1904_v25  ;;  %1909 = vpow2.f32 %v1483_v63 }
  0xfd   :  { %1911 = vrcp.f32 %v300_v27 }
 0x106   :  { %v1906_v36 = vpop.eup %1905 }
 0x107   :  { %v1908_v37 = vpop.eup %1907  ;;  %v327_v38 = vmul.f32 %v1906_v36, %v283_v34 }
 0x108   :  { %v1910_v39 = vpop.eup %1909  ;;  %v321_v43 = vadd.f32 1.0, %v1908_v37 }
 0x109   :  { %v331_v40 = vadd.f32 %v329_v35, %v327_v38  ;;  %v322_v44 = vadd.f32 1.0, %v1910_v39 }
 0x10a   :  { %v1912_v28 = vpop.eup %1911 }
 0x10b   :  { %1913 = vtanh.f32 %v331_v40  ;;  %v328_v30 = vmul.f32 %v1912_v28, %v286_v41  ;;  %v463_v40 = vrot.slane %v1486_v58, 4 }
 0x10c   :  { %1915 = vrcp.f32 %v321_v43 }
 0x10d   :  { %v332_v46 = vadd.f32 %v330_v42, %v328_v30  ;;  %v464_v42 = vrot.slane %v1488_v62, 4  ;;  %v467_v30 = vunpack.c.l.bf16 %v463_v40 }
 0x10f   :  { %1917 = vtanh.f32 %v332_v46  ;;  %v468_v46 = vunpack.c.l.bf16 %v464_v42 }
 0x110   :  { %1919 = vrcp.f32 %v322_v44 }
 0x118   :  { %v1914_v47 = vpop.eup %1913 }
 0x119   :  { %v335_v48 = vsub.f32 0.0, %v1914_v47  ;;  %v1916_v49 = vpop.eup %1915 }
 0x11b   :  { %v337_v52 = vmul.f32 %v1916_v49, %v335_v48 }
 0x11c   :  { %v1918_v50 = vpop.eup %1917 }
 0x11d   :  { %v336_v51 = vsub.f32 0.0, %v1918_v50  ;;  %v1920_v53 = vpop.eup %1919  ;;  %v2325_v55 = vadd.f32 %v1914_v47, %v337_v52 }
 0x11f   :  { %v338_v54 = vmul.f32 %v1920_v53, %v336_v51 }
 0x121   :  { %v2327_v56 = vadd.f32 %v1918_v50, %v338_v54 }
 0x123   :  { %v1589_v57 = vpack.c.bf16 %v2327_v56, %v2325_v55 }
 0x125   :  { %1590 = vst [vmem:[%s2841_s3] sm:$0xff] %v1589_v57   ;;  %394 = vmatmul.mubr.bf16.vlgmr.msra.gmra.mxu0 %v1589_v57  ;;  %1742 = vmatmul.mubr.bf16.vlgmr.msra.gmra.mxu1 %v1589_v57  ;;  %v1487_v57 = vld [vmem:[%s2840_s0 + $0x20] ss:$12 sps:$4 sm:$0xff]  }
 0x126   :  { %519 = vmatpush1.bf16.msra.mxu0 %v2119_v3  ;;  %1746 = vmatpush3.bf16.msra.mxu1 %v2162_v10 }
 0x127   :  { %520 = vmatprep.subr.bf16.mxu0 %v2127_v4  ;;  %1747 = vmatprep.subr.bf16.mxu1 %v2085_v1 }
 0x128   :  { %550 = vmatprep.mubr.bf16.mxu0 %v2086_v2  ;;  %1761 = vmatprep.mubr.msk.bf16.mxu1 %vm2087_vm0, %v2085_v1 }
 0x12a   :  { %521 = vmatpush1.bf16.msra.mxu0 %v2133_v5  ;;  %1748 = vmatpush3.bf16.msra.mxu1 %v2174_v12 }
 0x12b   :  { %522 = vmatprep.subr.bf16.mxu0 %v2139_v6  ;;  %1749 = vmatprep.subr.bf16.mxu1 %v2085_v1 }
 0x12e   :  { %523 = vmatpush1.bf16.msra.mxu0 %v2145_v7  ;;  %1750 = vmatpush3.bf16.msra.mxu1 %v2193_v15 }
 0x12f   :  { %524 = vmatprep.subr.bf16.mxu0 %v2151_v8  ;;  %1751 = vmatprep.subr.bf16.mxu1 %v2085_v1 }
 0x132   :  { %525 = vmatpush1.bf16.msra.mxu0 %v2156_v9  ;;  %1752 = vmatpush3.bf16.msra.mxu1 %v2212_v18 }
 0x133   :  { %526 = vmatprep.subr.bf16.mxu0 %v2168_v11  ;;  %1753 = vmatprep.subr.bf16.mxu1 %v2085_v1 }
 0x136   :  { %527 = vmatpush1.bf16.msra.mxu0 %v2181_v13  ;;  %1754 = vmatpush3.bf16.msra.mxu1 %v2231_v21 }
 0x137   :  { %528 = vmatprep.subr.bf16.mxu0 %v2187_v14  ;;  %1755 = vmatprep.subr.bf16.mxu1 %v2085_v1 }
 0x13a   :  { %529 = vmatpush1.bf16.msra.mxu0 %v2200_v16  ;;  %1756 = vmatpush3.bf16.msra.mxu1 %v2245_v23 }
 0x13b   :  { %530 = vmatprep.subr.bf16.mxu0 %v2206_v17  ;;  %1757 = vmatprep.subr.bf16.mxu1 %v2085_v1 }
 0x13e   :  { %531 = vmatpush1.bf16.msra.mxu0 %v2219_v19  ;;  %1758 = vmatpush3.bf16.msra.mxu1 %v2254_v24 }
 0x13f   :  { %532 = vmatprep.subr.bf16.mxu0 %v2225_v20  ;;  %1759 = vmatprep.subr.bf16.mxu1 %v2085_v1 }
 0x142   :  { %533 = vmatpush1.bf16.msra.mxu0 %v2238_v22  ;;  %1760 = vmatpush3.bf16.msra.mxu1 %v2264_v26 }
 0x143   :  { %675 = vmatprep.subr.bf16.mxu0 %v2112_v0  ;;  %1765 = vmatprep.subr.bf16.mxu1 %v2085_v1 }
 0x1e5   :  { %v395_v60 = vpop.f32.mrf.mxu0  ;;  %v438_v61 = vpop.f32.mrf.mxu1 }
 0x1e6   :  { %v396_v63 = vadd.f32 %v395_v60, %v2307_v32  ;;  %v439_v58 = vadd.f32 %v438_v61, %v2318_v31 }
 0x1e7   :  { %v397_v25 = vpop.f32.mrf.mxu0  ;;  %v1743_v27 = vpop.f32.mrf.mxu1 }
 0x1e8   :  { %v447_v29 = vadd.f32 %v445_v59, %v396_v63  ;;  %v398_v43 = vadd.f32 %v397_v25, %v2314_v45  ;;  %v485_v59 = vunpack.c.l.bf16 %v1487_v57 }
 0x1e9   :  { %v399_v34 = vpop.f32.mrf.mxu0  ;;  %v441_v35 = vpop.f32.mrf.mxu1 }
 0x1ea   :  { %v1490_v36 = vmul.f32 -1.442695, %v447_v29  ;;  %v400_v37 = vadd.f32 %v399_v34, %v2307_v32  ;;  %v469_v47 = vadd.f32 %v467_v30, %v398_v43  ;;  %v442_v29 = vadd.f32 %v441_v35, %v2318_v31 }
 0x1eb   :  { %v1744_v38 = vpop.f32.mrf.mxu1  ;;  %v401_v28 = vpop.f32.mrf.mxu0 }
 0x1ec   :  { %1921 = vpow2.f32 %v1490_v36  ;;  %v448_v39 = vadd.f32 %v446_v33, %v400_v37  ;;  %v402_v44 = vadd.f32 %v401_v28, %v2314_v45  ;;  %v1492_v50 = vmul.f32 -1.442695, %v469_v47 }
 0x1ed   :  { %v486_v33 = vunpack.c.h.bf16 %v1487_v57 }
 0x1ee   :  { %v1491_v41 = vmul.f32 -1.442695, %v448_v39  ;;  %v470_v48 = vadd.f32 %v468_v46, %v402_v44 }
 0x1f0   :  { %1923 = vpow2.f32 %v1491_v41  ;;  %v1493_v52 = vmul.f32 -1.442695, %v470_v48 }
 0x1f9   :  { %v1922_v49 = vpop.eup %1921 }
 0x1fa   :  { %v455_v51 = vadd.f32 1.0, %v1922_v49 }
 0x1fc   :  { %1925 = vrcp.f32 %v455_v51 }
 0x1fd   :  { %v1924_v53 = vpop.eup %1923  ;;  %1927 = vpow2.f32 %v1492_v50  ;;  %v1500_v50 = vld [vmem:[%s2840_s0 + $0x3c] sm:$0xff] }
 0x1fe   :  { %v456_v54 = vadd.f32 1.0, %v1924_v53  ;;  %1929 = vpow2.f32 %v1493_v52  ;;  %v603_v57 = vunpack.c.l.bf16 %v1500_v50 }
 0x200   :  { %1931 = vrcp.f32 %v456_v54 }
 0x209   :  { %v1926_v60 = vpop.eup %1925 }
 0x20a   :  { %v1928_v62 = vpop.eup %1927  ;;  %v483_v63 = vmul.f32 %v1926_v60, %v439_v58 }
 0x20b   :  { %v1930_v25 = vpop.eup %1929  ;;  %v477_v36 = vadd.f32 1.0, %v1928_v62 }
 0x20c   :  { %v487_v27 = vadd.f32 %v485_v59, %v483_v63  ;;  %v478_v39 = vadd.f32 1.0, %v1930_v25 }
 0x20d   :  { %v1932_v34 = vpop.eup %1931 }
 0x20e   :  { %1933 = vtanh.f32 %v487_v27  ;;  %v484_v37 = vmul.f32 %v1932_v34, %v442_v29 }
 0x20f   :  { %1935 = vrcp.f32 %v477_v36 }
 0x210   :  { %v488_v38 = vadd.f32 %v486_v33, %v484_v37  ;;  %v621_v33 = vrot.slane %v1500_v50, 4 }
 0x212   :  { %1937 = vtanh.f32 %v488_v38 }
 0x213   :  { %1939 = vrcp.f32 %v478_v39  ;;  %v625_v39 = vunpack.c.l.bf16 %v621_v33 }
 0x21b   :  { %v1934_v40 = vpop.eup %1933 }
 0x21c   :  { %v491_v61 = vsub.f32 %v2325_v55, %v1934_v40  ;;  %v1936_v41 = vpop.eup %1935  ;;  %v1498_v55 = vld [vmem:[%s2840_s0 + $0x30] sm:$0xff] }
 0x21d   :  { %v620_v27 = vrot.slane %v1498_v55, 4 }
 0x21e   :  { %v493_v43 = vmul.f32 %v1936_v41, %v491_v61 }
 0x21f   :  { %v1938_v42 = vpop.eup %1937  ;;  %v624_v37 = vunpack.c.l.bf16 %v620_v27 }
 0x220   :  { %v492_v28 = vsub.f32 %v2327_v56, %v1938_v42  ;;  %v1940_v30 = vpop.eup %1939  ;;  %v2386_v44 = vadd.f32 %v1934_v40, %v493_v43  ;;  %v602_v56 = vunpack.c.l.bf16 %v1498_v55 }
 0x222   :  { %v494_v35 = vmul.f32 %v1940_v30, %v492_v28 }
 0x224   :  { %v2388_v46 = vadd.f32 %v1938_v42, %v494_v35 }
 0x226   :  { %v1594_v47 = vpack.c.bf16 %v2388_v46, %v2386_v44 }
 0x228   :  { %1626 = vst [vmem:[%s2841_s3 + $0x8] sm:$0xff] %v1594_v47   ;;  %551 = vmatmul.mubr.bf16.vlgmr.msra.gmra.mxu0 %v1594_v47  ;;  %1762 = vmatmul.mubr.bf16.vlgmr.msra.gmra.mxu1 %v1594_v47  ;;  %v1499_v47 = vld [vmem:[%s2840_s0 + $0x38] ss:$12 sps:$4 sm:$0xff]  }
 0x229   :  { %676 = vmatpush1.bf16.msra.mxu0 %v2119_v3  ;;  %1766 = vmatpush3.bf16.msra.mxu1 %v2162_v10 }
 0x22a   :  { %677 = vmatprep.subr.bf16.mxu0 %v2127_v4  ;;  %1767 = vmatprep.subr.bf16.mxu1 %v2085_v1 }
 0x22b   :  { %707 = vmatprep.mubr.bf16.mxu0 %v2086_v2  ;;  %1781 = vmatprep.mubr.msk.bf16.mxu1 %vm2087_vm0, %v2085_v1 }
 0x22d   :  { %678 = vmatpush1.bf16.msra.mxu0 %v2133_v5  ;;  %1768 = vmatpush3.bf16.msra.mxu1 %v2174_v12 }
 0x22e   :  { %679 = vmatprep.subr.bf16.mxu0 %v2139_v6  ;;  %1769 = vmatprep.subr.bf16.mxu1 %v2085_v1 }
 0x231   :  { %680 = vmatpush1.bf16.msra.mxu0 %v2145_v7  ;;  %1770 = vmatpush3.bf16.msra.mxu1 %v2193_v15 }
 0x232   :  { %681 = vmatprep.subr.bf16.mxu0 %v2151_v8  ;;  %1771 = vmatprep.subr.bf16.mxu1 %v2085_v1 }
 0x235   :  { %682 = vmatpush1.bf16.msra.mxu0 %v2156_v9  ;;  %1772 = vmatpush3.bf16.msra.mxu1 %v2212_v18 }
 0x236   :  { %683 = vmatprep.subr.bf16.mxu0 %v2168_v11  ;;  %1773 = vmatprep.subr.bf16.mxu1 %v2085_v1 }
 0x239   :  { %684 = vmatpush1.bf16.msra.mxu0 %v2181_v13  ;;  %1774 = vmatpush3.bf16.msra.mxu1 %v2231_v21 }
 0x23a   :  { %685 = vmatprep.subr.bf16.mxu0 %v2187_v14  ;;  %1775 = vmatprep.subr.bf16.mxu1 %v2085_v1 }
 0x23d   :  { %686 = vmatpush1.bf16.msra.mxu0 %v2200_v16  ;;  %1776 = vmatpush3.bf16.msra.mxu1 %v2245_v23 }
 0x23e   :  { %687 = vmatprep.subr.bf16.mxu0 %v2206_v17  ;;  %1777 = vmatprep.subr.bf16.mxu1 %v2085_v1 }
 0x241   :  { %688 = vmatpush1.bf16.msra.mxu0 %v2219_v19  ;;  %1778 = vmatpush3.bf16.msra.mxu1 %v2254_v24 }
 0x242   :  { %689 = vmatprep.subr.bf16.mxu0 %v2225_v20  ;;  %1779 = vmatprep.subr.bf16.mxu1 %v2085_v1 }
 0x245   :  { %690 = vmatpush1.bf16.msra.mxu0 %v2238_v22  ;;  %1780 = vmatpush3.bf16.msra.mxu1 %v2264_v26 }
 0x246   :  { %832 = vmatprep.subr.bf16.mxu0 %v2112_v0  ;;  %1785 = vmatprep.subr.bf16.mxu1 %v2085_v1 }
 0x2e8   :  { %v552_v48 = vpop.f32.mrf.mxu0  ;;  %v595_v49 = vpop.f32.mrf.mxu1 }
 0x2e9   :  { %v553_v51 = vadd.f32 %v552_v48, %v2307_v32  ;;  %v596_v55 = vadd.f32 %v595_v49, %v2318_v31 }
 0x2ea   :  { %v554_v52 = vpop.f32.mrf.mxu0  ;;  %v1763_v53 = vpop.f32.mrf.mxu1 }
 0x2eb   :  { %v604_v54 = vadd.f32 %v602_v56, %v553_v51  ;;  %v555_v36 = vadd.f32 %v554_v52, %v2314_v45  ;;  %v642_v56 = vunpack.c.l.bf16 %v1499_v47 }
 0x2ec   :  { %v556_v58 = vpop.f32.mrf.mxu0  ;;  %v598_v59 = vpop.f32.mrf.mxu1 }
 0x2ed   :  { %v1502_v60 = vmul.f32 -1.442695, %v604_v54  ;;  %v557_v62 = vadd.f32 %v556_v58, %v2307_v32  ;;  %v626_v40 = vadd.f32 %v624_v37, %v555_v36  ;;  %v599_v54 = vadd.f32 %v598_v59, %v2318_v31 }
 0x2ee   :  { %v1764_v63 = vpop.f32.mrf.mxu1  ;;  %v558_v34 = vpop.f32.mrf.mxu0 }
 0x2ef   :  { %1941 = vpow2.f32 %v1502_v60  ;;  %v605_v25 = vadd.f32 %v603_v57, %v557_v62  ;;  %v559_v38 = vadd.f32 %v558_v34, %v2314_v45  ;;  %v1504_v42 = vmul.f32 -1.442695, %v626_v40 }
 0x2f0   :  { %v643_v57 = vunpack.c.h.bf16 %v1499_v47 }
 0x2f1   :  { %v1503_v29 = vmul.f32 -1.442695, %v605_v25  ;;  %v627_v61 = vadd.f32 %v625_v39, %v559_v38 }
 0x2f3   :  { %1943 = vpow2.f32 %v1503_v29  ;;  %v1505_v43 = vmul.f32 -1.442695, %v627_v61 }
 0x2fc   :  { %v1942_v41 = vpop.eup %1941 }
 0x2fd   :  { %v612_v28 = vadd.f32 1.0, %v1942_v41 }
 0x2ff   :  { %1945 = vrcp.f32 %v612_v28 }
 0x300   :  { %v1944_v30 = vpop.eup %1943  ;;  %1947 = vpow2.f32 %v1504_v42 }
 0x301   :  { %v613_v35 = vadd.f32 1.0, %v1944_v30  ;;  %1949 = vpow2.f32 %v1505_v43 }
 0x303   :  { %1951 = vrcp.f32 %v613_v35 }
 0x30c   :  { %v1946_v48 = vpop.eup %1945 }
 0x30d   :  { %v1948_v50 = vpop.eup %1947  ;;  %v640_v51 = vmul.f32 %v1946_v48, %v596_v55 }
 0x30e   :  { %v1950_v52 = vpop.eup %1949  ;;  %v634_v60 = vadd.f32 1.0, %v1948_v50 }
 0x30f   :  { %v644_v53 = vadd.f32 %v642_v56, %v640_v51  ;;  %v635_v25 = vadd.f32 1.0, %v1950_v52 }
 0x310   :  { %v1952_v58 = vpop.eup %1951 }
 0x311   :  { %1953 = vtanh.f32 %v644_v53  ;;  %v641_v62 = vmul.f32 %v1952_v58, %v599_v54 }
 0x312   :  { %1955 = vrcp.f32 %v634_v60 }
 0x313   :  { %v645_v63 = vadd.f32 %v643_v57, %v641_v62 }
 0x315   :  { %1957 = vtanh.f32 %v645_v63 }
 0x316   :  { %1959 = vrcp.f32 %v635_v25 }
 0x31e   :  { %v1954_v27 = vpop.eup %1953 }
 0x31f   :  { %v648_v49 = vsub.f32 %v2386_v44, %v1954_v27  ;;  %v1956_v29 = vpop.eup %1955 }
 0x321   :  { %v650_v36 = vmul.f32 %v1956_v29, %v648_v49  ;;  %v1511_v49 = vld [vmem:[%s2840_s0 + $0x50] ss:$12 sps:$4 sm:$0xff]  }
 0x322   :  { %v1958_v33 = vpop.eup %1957 }
 0x323   :  { %v649_v34 = vsub.f32 %v2388_v46, %v1958_v33  ;;  %v1960_v37 = vpop.eup %1959  ;;  %v2447_v38 = vadd.f32 %v1954_v27, %v650_v36 }
 0x325   :  { %v651_v59 = vmul.f32 %v1960_v37, %v649_v34 }
 0x327   :  { %v2449_v39 = vadd.f32 %v1958_v33, %v651_v59  ;;  %v799_v33 = vunpack.c.l.bf16 %v1511_v49 }
 0x329   :  { %v1599_v40 = vpack.c.bf16 %v2449_v39, %v2447_v38 }
 0x32b   :  { %1627 = vst [vmem:[%s2841_s3 + $0x10] sm:$0xff] %v1599_v40   ;;  %708 = vmatmul.mubr.bf16.vlgmr.msra.gmra.mxu0 %v1599_v40  ;;  %1782 = vmatmul.mubr.bf16.vlgmr.msra.gmra.mxu1 %v1599_v40 }
 0x32c   :  { %833 = vmatpush1.bf16.msra.mxu0 %v2119_v3  ;;  %1786 = vmatpush3.bf16.msra.mxu1 %v2162_v10  ;;  %v1510_v3 = vld [vmem:[%s2840_s0 + $0x48] sm:$0xff] }
 0x32d   :  { %834 = vmatprep.subr.bf16.mxu0 %v2127_v4  ;;  %1787 = vmatprep.subr.bf16.mxu1 %v2085_v1  ;;  %v759_v4 = vunpack.c.l.bf16 %v1510_v3  ;;  %v777_v47 = vrot.slane %v1510_v3, 4 }
 0x32e   :  { %864 = vmatprep.mubr.bf16.mxu0 %v2086_v2  ;;  %1801 = vmatprep.mubr.msk.bf16.mxu1 %vm2087_vm0, %v2085_v1 }
 0x32f   :  { %v781_v51 = vunpack.c.l.bf16 %v777_v47 }
 0x330   :  { %835 = vmatpush1.bf16.msra.mxu0 %v2133_v5  ;;  %1788 = vmatpush3.bf16.msra.mxu1 %v2174_v12 }
 0x331   :  { %836 = vmatprep.subr.bf16.mxu0 %v2139_v6  ;;  %1789 = vmatprep.subr.bf16.mxu1 %v2085_v1 }
 0x334   :  { %837 = vmatpush1.bf16.msra.mxu0 %v2145_v7  ;;  %1790 = vmatpush3.bf16.msra.mxu1 %v2193_v15  ;;  %v1512_v7 = vld [vmem:[%s2840_s0 + $0x54] sm:$0xff] }
 0x335   :  { %838 = vmatprep.subr.bf16.mxu0 %v2151_v8  ;;  %1791 = vmatprep.subr.bf16.mxu1 %v2085_v1  ;;  %v760_v41 = vunpack.c.l.bf16 %v1512_v7  ;;  %v778_v56 = vrot.slane %v1512_v7, 4 }
 0x337   :  { %v782_v53 = vunpack.c.l.bf16 %v778_v56  ;;  %v2537_v56 = vld [vmem:[%s2838_s1 + $0x90] ss:$12 sps:$4 sm:$0xff]  }
 0x338   :  { %839 = vmatpush1.bf16.msra.mxu0 %v2156_v9  ;;  %1792 = vmatpush3.bf16.msra.mxu1 %v2212_v18 }
 0x339   :  { %840 = vmatprep.subr.bf16.mxu0 %v2168_v11  ;;  %1793 = vmatprep.subr.bf16.mxu1 %v2085_v1 }
 0x33c   :  { %841 = vmatpush1.bf16.msra.mxu0 %v2181_v13  ;;  %1794 = vmatpush3.bf16.msra.mxu1 %v2231_v21 }
 0x33d   :  { %842 = vmatprep.subr.bf16.mxu0 %v2187_v14  ;;  %1795 = vmatprep.subr.bf16.mxu1 %v2085_v1 }
 0x340   :  { %843 = vmatpush1.bf16.msra.mxu0 %v2200_v16  ;;  %1796 = vmatpush3.bf16.msra.mxu1 %v2245_v23 }
 0x341   :  { %844 = vmatprep.subr.bf16.mxu0 %v2206_v17  ;;  %1797 = vmatprep.subr.bf16.mxu1 %v2085_v1 }
 0x344   :  { %845 = vmatpush1.bf16.msra.mxu0 %v2219_v19  ;;  %1798 = vmatpush3.bf16.msra.mxu1 %v2254_v24 }
 0x345   :  { %846 = vmatprep.subr.bf16.mxu0 %v2225_v20  ;;  %1799 = vmatprep.subr.bf16.mxu1 %v2085_v1 }
 0x348   :  { %847 = vmatpush1.bf16.msra.mxu0 %v2238_v22  ;;  %1800 = vmatpush3.bf16.msra.mxu1 %v2264_v26 }
 0x349   :  { %989 = vmatprep.subr.bf16.mxu0 %v2112_v0  ;;  %1805 = vmatprep.subr.bf16.mxu1 %v2085_v1 }
 0x3eb   :  { %v709_v5 = vpop.f32.mrf.mxu0  ;;  %v752_v6 = vpop.f32.mrf.mxu1 }
 0x3ec   :  { %v710_v8 = vadd.f32 %v709_v5, %v2307_v32  ;;  %v753_v29 = vadd.f32 %v752_v6, %v2318_v31 }
 0x3ed   :  { %v711_v44 = vpop.f32.mrf.mxu0  ;;  %v1783_v46 = vpop.f32.mrf.mxu1 }
 0x3ee   :  { %v761_v61 = vadd.f32 %v759_v4, %v710_v8  ;;  %v712_v50 = vadd.f32 %v711_v44, %v2314_v45  ;;  %v800_v4 = vunpack.c.h.bf16 %v1511_v49 }
 0x3ef   :  { %v713_v0 = vpop.f32.mrf.mxu0  ;;  %v755_v42 = vpop.f32.mrf.mxu1 }
 0x3f0   :  { %v1514_v28 = vmul.f32 -1.442695, %v761_v61  ;;  %v714_v43 = vadd.f32 %v713_v0, %v2307_v32  ;;  %v783_v54 = vadd.f32 %v781_v51, %v712_v50  ;;  %v756_v3 = vadd.f32 %v755_v42, %v2318_v31 }
 0x3f1   :  { %v1784_v30 = vpop.f32.mrf.mxu1  ;;  %v715_v48 = vpop.f32.mrf.mxu0 }
 0x3f2   :  { %1961 = vpow2.f32 %v1514_v28  ;;  %v762_v35 = vadd.f32 %v760_v41, %v714_v43  ;;  %v716_v52 = vadd.f32 %v715_v48, %v2314_v45  ;;  %v1516_v60 = vmul.f32 -1.442695, %v783_v54  ;;  %v2551_v48 = vld [vmem:[%s2838_s1 + $0x78] ss:$12 sps:$4 sm:$0xff]  }
 0x3f4   :  { %v1515_v55 = vmul.f32 -1.442695, %v762_v35  ;;  %v784_v57 = vadd.f32 %v782_v53, %v716_v52 }
 0x3f6   :  { %1963 = vpow2.f32 %v1515_v55  ;;  %v1517_v63 = vmul.f32 -1.442695, %v784_v57 }
 0x3ff   :  { %v1962_v58 = vpop.eup %1961 }
 0x400   :  { %v769_v62 = vadd.f32 1.0, %v1962_v58 }
 0x402   :  { %1965 = vrcp.f32 %v769_v62 }
 0x403   :  { %v1964_v25 = vpop.eup %1963  ;;  %1967 = vpow2.f32 %v1516_v60 }
 0x404   :  { %v770_v27 = vadd.f32 1.0, %v1964_v25  ;;  %1969 = vpow2.f32 %v1517_v63 }
 0x406   :  { %1971 = vrcp.f32 %v770_v27 }
 0x40f   :  { %v1966_v34 = vpop.eup %1965 }
 0x410   :  { %v1968_v36 = vpop.eup %1967  ;;  %v797_v37 = vmul.f32 %v1966_v34, %v753_v29 }
 0x411   :  { %v1970_v59 = vpop.eup %1969  ;;  %v791_v7 = vadd.f32 1.0, %v1968_v36 }
 0x412   :  { %v801_v40 = vadd.f32 %v799_v33, %v797_v37  ;;  %v792_v46 = vadd.f32 1.0, %v1970_v59  ;;  %v1523_v59 = vld [vmem:[%s2840_s0 + $0x68] ss:$12 sps:$4 sm:$0xff]  }
 0x413   :  { %v1972_v5 = vpop.eup %1971 }
 0x414   :  { %1973 = vtanh.f32 %v801_v40  ;;  %v798_v8 = vmul.f32 %v1972_v5, %v756_v3  ;;  %v956_v3 = vunpack.c.l.bf16 %v1523_v59 }
 0x415   :  { %1975 = vrcp.f32 %v791_v7 }
 0x416   :  { %v802_v44 = vadd.f32 %v800_v4, %v798_v8 }
 0x418   :  { %1977 = vtanh.f32 %v802_v44 }
 0x419   :  { %1979 = vrcp.f32 %v792_v46 }
 0x421   :  { %v1974_v61 = vpop.eup %1973 }
 0x422   :  { %v805_v6 = vsub.f32 %v2447_v38, %v1974_v61  ;;  %v1976_v41 = vpop.eup %1975  ;;  %v2520_v38 = vld [vmem:[%s2838_s1 + $0xa8] ss:$12 sps:$4 sm:$0xff]  }
 0x424   :  { %v807_v43 = vmul.f32 %v1976_v41, %v805_v6 }
 0x425   :  { %v1978_v0 = vpop.eup %1977 }
 0x426   :  { %v806_v28 = vsub.f32 %v2449_v39, %v1978_v0  ;;  %v1980_v30 = vpop.eup %1979  ;;  %v2508_v35 = vadd.f32 %v1974_v61, %v807_v43  ;;  %v2527_v39 = vld [vmem:[%s2838_s1 + $0x94] ss:$12 sps:$4 sm:$0xff]   ;;  %v957_v61 = vunpack.c.h.bf16 %v1523_v59 }
 0x428   :  { %v808_v42 = vmul.f32 %v1980_v30, %v806_v28 }
 0x42a   :  { %v2510_v47 = vadd.f32 %v1978_v0, %v808_v42 }
 0x42c   :  { %v1604_v55 = vpack.c.bf16 %v2510_v47, %v2508_v35 }
 0x42e   :  { %1628 = vst [vmem:[%s2841_s3 + $0x18] sm:$0xff] %v1604_v55   ;;  %865 = vmatmul.mubr.bf16.vlgmr.msra.gmra.mxu0 %v1604_v55  ;;  %1802 = vmatmul.mubr.bf16.vlgmr.msra.gmra.mxu1 %v1604_v55 }
 0x42f   :  { %990 = vmatpush1.bf16.msra.mxu0 %v2520_v38  ;;  %1806 = vmatpush3.bf16.msra.mxu1 %v2162_v10  ;;  %v2544_v10 = vld [vmem:[%s2838_s1 + $0x7c] ss:$12 sps:$4 sm:$0xff]  }
 0x430   :  { %991 = vmatprep.subr.bf16.mxu0 %v2527_v39  ;;  %1807 = vmatprep.subr.bf16.mxu1 %v2085_v1 }
 0x431   :  { %1021 = vmatprep.mubr.bf16.mxu0 %v2086_v2  ;;  %1821 = vmatprep.mubr.msk.bf16.mxu1 %vm2087_vm0, %v2085_v1 }
 0x433   :  { %992 = vmatpush1.bf16.msra.mxu0 %v2537_v56  ;;  %1808 = vmatpush3.bf16.msra.mxu1 %v2174_v12  ;;  %v2558_v12 = vld [vmem:[%s2838_s1 + $0x64] ss:$12 sps:$4 sm:$0xff]  }
 0x434   :  { %993 = vmatprep.subr.bf16.mxu0 %v2544_v10  ;;  %1809 = vmatprep.subr.bf16.mxu1 %v2085_v1 }
 0x437   :  { %994 = vmatpush1.bf16.msra.mxu0 %v2551_v48  ;;  %1810 = vmatpush3.bf16.msra.mxu1 %v2193_v15 }
 0x438   :  { %995 = vmatprep.subr.bf16.mxu0 %v2558_v12  ;;  %1811 = vmatprep.subr.bf16.mxu1 %v2085_v1 }
 0x43b   :  { %996 = vmatpush1.bf16.msra.mxu0 %v2156_v9  ;;  %1812 = vmatpush3.bf16.msra.mxu1 %v2212_v18  ;;  %v2583_v9 = vld [vmem:[%s2838_s1 + $0xac] ss:$12 sps:$4 sm:$0xff]  }
 0x43c   :  { %997 = vmatprep.subr.bf16.mxu0 %v2168_v11  ;;  %1813 = vmatprep.subr.bf16.mxu1 %v2085_v1  ;;  %v1522_v11 = vld [vmem:[%s2840_s0 + $0x60] sm:$0xff] }
 0x43d   :  { %v934_v52 = vrot.slane %v1522_v11, 4 }
 0x43f   :  { %998 = vmatpush1.bf16.msra.mxu0 %v2181_v13  ;;  %1814 = vmatpush3.bf16.msra.mxu1 %v2231_v21  ;;  %v916_v13 = vunpack.c.l.bf16 %v1522_v11  ;;  %v938_v60 = vunpack.c.l.bf16 %v934_v52  ;;  %v2690_v52 = vld [vmem:[%s2838_s1 + $0x38] ss:$12 sps:$4 sm:$0xff]  }
 0x440   :  { %999 = vmatprep.subr.bf16.mxu0 %v2187_v14  ;;  %1815 = vmatprep.subr.bf16.mxu1 %v2085_v1 }
 0x443   :  { %1000 = vmatpush1.bf16.msra.mxu0 %v2200_v16  ;;  %1816 = vmatpush3.bf16.msra.mxu1 %v2245_v23  ;;  %v1524_v16 = vld [vmem:[%s2840_s0 + $0x6c] sm:$0xff] }
 0x444   :  { %1001 = vmatprep.subr.bf16.mxu0 %v2206_v17  ;;  %1817 = vmatprep.subr.bf16.mxu1 %v2085_v1  ;;  %v917_v21 = vunpack.c.l.bf16 %v1524_v16  ;;  %v935_v54 = vrot.slane %v1524_v16, 4 }
 0x446   :  { %v939_v63 = vunpack.c.l.bf16 %v935_v54  ;;  %v2703_v54 = vld [vmem:[%s2838_s1 + $0x18] ss:$12 sps:$4 sm:$0xff]  }
 0x447   :  { %1002 = vmatpush1.bf16.msra.mxu0 %v2219_v19  ;;  %1818 = vmatpush3.bf16.msra.mxu1 %v2254_v24 }
 0x448   :  { %1003 = vmatprep.subr.bf16.mxu0 %v2225_v20  ;;  %1819 = vmatprep.subr.bf16.mxu1 %v2085_v1 }
 0x44b   :  { %1004 = vmatpush1.bf16.msra.mxu0 %v2238_v22  ;;  %1820 = vmatpush3.bf16.msra.mxu1 %v2264_v26 }
 0x44c   :  { %1146 = vmatprep.subr.bf16.mxu0 %v2583_v9  ;;  %1825 = vmatprep.subr.bf16.mxu1 %v2085_v1 }
 0x4ee   :  { %v866_v14 = vpop.f32.mrf.mxu0  ;;  %v909_v15 = vpop.f32.mrf.mxu1 }
 0x4ef   :  { %v867_v17 = vadd.f32 %v866_v14, %v2307_v32  ;;  %v910_v40 = vadd.f32 %v909_v15, %v2318_v31 }
 0x4f0   :  { %v868_v18 = vpop.f32.mrf.mxu0  ;;  %v1803_v19 = vpop.f32.mrf.mxu1 }
 0x4f1   :  { %v918_v20 = vadd.f32 %v916_v13, %v867_v17  ;;  %v869_v58 = vadd.f32 %v868_v18, %v2314_v45 }
 0x4f2   :  { %v870_v22 = vpop.f32.mrf.mxu0  ;;  %v912_v23 = vpop.f32.mrf.mxu1 }
 0x4f3   :  { %v1526_v24 = vmul.f32 -1.442695, %v918_v20  ;;  %v871_v26 = vadd.f32 %v870_v22, %v2307_v32  ;;  %v940_v25 = vadd.f32 %v938_v60, %v869_v58  ;;  %v913_v46 = vadd.f32 %v912_v23, %v2318_v31  ;;  %v2638_v20 = vld [vmem:[%s2838_s1 + $0x80] ss:$12 sps:$4 sm:$0xff]   ;;  %v2652_v22 = vld [vmem:[%s2838_s1 + $0x68] ss:$12 sps:$4 sm:$0xff]  }
 0x4f4   :  { %v1804_v50 = vpop.f32.mrf.mxu1  ;;  %v872_v57 = vpop.f32.mrf.mxu0  ;;  %v2658_v23 = vld [vmem:[%s2838_s1 + $0x4c] ss:$12 sps:$4 sm:$0xff]   ;;  %v2715_v58 = vld [vmem:[%s2838_s1 + $0x4] ss:$12 sps:$4 sm:$0xff]  }
 0x4f5   :  { %1981 = vpow2.f32 %v1526_v24  ;;  %v919_v51 = vadd.f32 %v917_v21, %v871_v26  ;;  %v873_v62 = vadd.f32 %v872_v57, %v2314_v45  ;;  %v1528_v29 = vmul.f32 -1.442695, %v940_v25  ;;  %v2646_v21 = vld [vmem:[%s2838_s1 + $0x60] ss:$12 sps:$4 sm:$0xff]   ;;  %v2665_v24 = vld [vmem:[%s2838_s1 + $0x48] ss:$12 sps:$4 sm:$0xff]  }
 0x4f6   :  { %v2671_v26 = vld [vmem:[%s2838_s1 + $0x50] ss:$12 sps:$4 sm:$0xff]   ;;  %v2677_v50 = vld [vmem:[%s2838_s1 + $0x34] ss:$12 sps:$4 sm:$0xff]  }
 0x4f7   :  { %v1527_v53 = vmul.f32 -1.442695, %v919_v51  ;;  %v941_v27 = vadd.f32 %v939_v63, %v873_v62  ;;  %v2684_v51 = vld [vmem:[%s2838_s1 + $0x30] ss:$12 sps:$4 sm:$0xff]   ;;  %v2709_v57 = vld [vmem:[%s2838_s1 + $0x20] ss:$12 sps:$4 sm:$0xff]  }
 0x4f8   :  { %v2722_v60 = vld [vmem:[%s2838_s1] ss:$12 sps:$4 sm:$0xff]   ;;  %v2728_v62 = vld [vmem:[%s2838_s1 + $0x8] ss:$12 sps:$4 sm:$0xff]   ;;  %v1534_v63 = vld [vmem:[%s2840_s0 + $0x78] sm:$0xff] }
 0x4f9   :  { %1983 = vpow2.f32 %v1527_v53  ;;  %v1529_v34 = vmul.f32 -1.442695, %v941_v27  ;;  %v2696_v53 = vld [vmem:[%s2838_s1 + $0x1c] ss:$12 sps:$4 sm:$0xff]   ;;  %v1073_v25 = vunpack.c.l.bf16 %v1534_v63 }
 0x502   :  { %v1982_v49 = vpop.eup %1981 }
 0x503   :  { %v926_v33 = vadd.f32 1.0, %v1982_v49 }
 0x505   :  { %1985 = vrcp.f32 %v926_v33 }
 0x506   :  { %v1984_v36 = vpop.eup %1983  ;;  %1987 = vpow2.f32 %v1528_v29  ;;  %v1536_v29 = vld [vmem:[%s2840_s0 + $0x84] sm:$0xff] }
 0x507   :  { %v927_v37 = vadd.f32 1.0, %v1984_v36  ;;  %1989 = vpow2.f32 %v1529_v34  ;;  %v1074_v59 = vunpack.c.l.bf16 %v1536_v29 }
 0x509   :  { %1991 = vrcp.f32 %v927_v37 }
 0x512   :  { %v1986_v4 = vpop.eup %1985 }
 0x513   :  { %v1988_v5 = vpop.eup %1987  ;;  %v954_v7 = vmul.f32 %v1986_v4, %v910_v40 }
 0x514   :  { %v1990_v8 = vpop.eup %1989  ;;  %v948_v41 = vadd.f32 1.0, %v1988_v5 }
 0x515   :  { %v958_v44 = vadd.f32 %v956_v3, %v954_v7  ;;  %v949_v43 = vadd.f32 1.0, %v1990_v8  ;;  %v1091_v8 = vrot.slane %v1534_v63, 4 }
 0x516   :  { %v1992_v6 = vpop.eup %1991 }
 0x517   :  { %1993 = vtanh.f32 %v958_v44  ;;  %v955_v0 = vmul.f32 %v1992_v6, %v913_v46  ;;  %v1092_v46 = vrot.slane %v1536_v29, 4 }
 0x518   :  { %1995 = vrcp.f32 %v948_v41  ;;  %v1095_v41 = vunpack.c.l.bf16 %v1091_v8 }
 0x519   :  { %v959_v28 = vadd.f32 %v957_v61, %v955_v0 }
 0x51b   :  { %1997 = vtanh.f32 %v959_v28  ;;  %v1096_v28 = vunpack.c.l.bf16 %v1092_v46 }
 0x51c   :  { %1999 = vrcp.f32 %v949_v43 }
 0x524   :  { %v1994_v30 = vpop.eup %1993 }
 0x525   :  { %v962_v42 = vsub.f32 %v2508_v35, %v1994_v30  ;;  %v1996_v55 = vpop.eup %1995  ;;  %v2617_v35 = vld [vmem:[%s2838_s1 + $0xb0] ss:$12 sps:$4 sm:$0xff]  }
 0x527   :  { %v964_v14 = vmul.f32 %v1996_v55, %v962_v42 }
 0x528   :  { %v1998_v11 = vpop.eup %1997 }
 0x529   :  { %v963_v13 = vsub.f32 %v2510_v47, %v1998_v11  ;;  %v2000_v15 = vpop.eup %1999  ;;  %v2604_v17 = vadd.f32 %v1994_v30, %v964_v14  ;;  %v2629_v47 = vld [vmem:[%s2838_s1 + $0x98] ss:$12 sps:$4 sm:$0xff]  }
 0x52b   :  { %v965_v16 = vmul.f32 %v2000_v15, %v963_v13 }
 0x52d   :  { %v2606_v18 = vadd.f32 %v1998_v11, %v965_v16  ;;  %v1535_v16 = vld [vmem:[%s2840_s0 + $0x80] ss:$12 sps:$4 sm:$0xff]  }
 0x52e   :  { %v1113_v63 = vunpack.c.l.bf16 %v1535_v16 }
 0x52f   :  { %v1609_v19 = vpack.c.bf16 %v2606_v18, %v2604_v17 }
 0x531   :  { %1629 = vst [vmem:[%s2841_s3 + $0x20] sm:$0xff] %v1609_v19   ;;  %1022 = vmatmul.mubr.bf16.vlgmr.msra.gmra.mxu0 %v1609_v19  ;;  %1822 = vmatmul.mubr.bf16.vlgmr.msra.gmra.mxu1 %v1609_v19 }
 0x532   :  { %1147 = vmatpush1.bf16.msra.mxu0 %v2520_v38  ;;  %1826 = vmatpush3.bf16.msra.mxu1 %v2617_v35 }
 0x533   :  { %1148 = vmatprep.subr.bf16.mxu0 %v2527_v39  ;;  %1827 = vmatprep.subr.bf16.mxu1 %v2085_v1 }
 0x534   :  { %1178 = vmatprep.mubr.bf16.mxu0 %v2086_v2  ;;  %1841 = vmatprep.mubr.msk.bf16.mxu1 %vm2087_vm0, %v2085_v1 }
 0x536   :  { %1149 = vmatpush1.bf16.msra.mxu0 %v2537_v56  ;;  %1828 = vmatpush3.bf16.msra.mxu1 %v2629_v47 }
 0x537   :  { %1150 = vmatprep.subr.bf16.mxu0 %v2544_v10  ;;  %1829 = vmatprep.subr.bf16.mxu1 %v2085_v1 }
 0x53a   :  { %1151 = vmatpush1.bf16.msra.mxu0 %v2551_v48  ;;  %1830 = vmatpush3.bf16.msra.mxu1 %v2638_v20 }
 0x53b   :  { %1152 = vmatprep.subr.bf16.mxu0 %v2558_v12  ;;  %1831 = vmatprep.subr.bf16.mxu1 %v2085_v1 }
 0x53e   :  { %1153 = vmatpush1.bf16.msra.mxu0 %v2646_v21  ;;  %1832 = vmatpush3.bf16.msra.mxu1 %v2652_v22 }
 0x53f   :  { %1154 = vmatprep.subr.bf16.mxu0 %v2658_v23  ;;  %1833 = vmatprep.subr.bf16.mxu1 %v2085_v1 }
 0x542   :  { %1155 = vmatpush1.bf16.msra.mxu0 %v2665_v24  ;;  %1834 = vmatpush3.bf16.msra.mxu1 %v2671_v26 }
 0x543   :  { %1156 = vmatprep.subr.bf16.mxu0 %v2677_v50  ;;  %1835 = vmatprep.subr.bf16.mxu1 %v2085_v1 }
 0x546   :  { %1157 = vmatpush1.bf16.msra.mxu0 %v2684_v51  ;;  %1836 = vmatpush3.bf16.msra.mxu1 %v2690_v52 }
 0x547   :  { %1158 = vmatprep.subr.bf16.mxu0 %v2696_v53  ;;  %1837 = vmatprep.subr.bf16.mxu1 %v2085_v1 }
 0x54a   :  { %1159 = vmatpush1.bf16.msra.mxu0 %v2703_v54  ;;  %1838 = vmatpush3.bf16.msra.mxu1 %v2709_v57 }
 0x54b   :  { %1160 = vmatprep.subr.bf16.mxu0 %v2715_v58  ;;  %1839 = vmatprep.subr.bf16.mxu1 %v2085_v1 }
 0x54e   :  { %1161 = vmatpush1.bf16.msra.mxu0 %v2722_v60  ;;  %1840 = vmatpush3.bf16.msra.mxu1 %v2728_v62 }
 0x54f   :  { %1303 = vmatprep.subr.bf16.mxu0 %v2583_v9  ;;  %1845 = vmatprep.subr.bf16.mxu1 %v2085_v1 }
 0x5f1   :  { %v1023_v27 = vpop.f32.mrf.mxu0  ;;  %v1066_v49 = vpop.f32.mrf.mxu1 }
 0x5f2   :  { %v1024_v33 = vadd.f32 %v1023_v27, %v2307_v32  ;;  %v1067_v19 = vadd.f32 %v1066_v49, %v2318_v31 }
 0x5f3   :  { %v1025_v34 = vpop.f32.mrf.mxu0  ;;  %v1823_v36 = vpop.f32.mrf.mxu1 }
 0x5f4   :  { %v1075_v37 = vadd.f32 %v1073_v25, %v1024_v33  ;;  %v1026_v6 = vadd.f32 %v1025_v34, %v2314_v45 }
 0x5f5   :  { %v1027_v9 = vpop.f32.mrf.mxu0  ;;  %v1069_v40 = vpop.f32.mrf.mxu1 }
 0x5f6   :  { %v1538_v3 = vmul.f32 -1.442695, %v1075_v37  ;;  %v1028_v4 = vadd.f32 %v1027_v9, %v2307_v32  ;;  %v1097_v43 = vadd.f32 %v1095_v41, %v1026_v6  ;;  %v1070_v36 = vadd.f32 %v1069_v40, %v2318_v31 }
 0x5f7   :  { %v1824_v5 = vpop.f32.mrf.mxu1  ;;  %v1029_v61 = vpop.f32.mrf.mxu0  ;;  %v1114_v37 = vunpack.c.h.bf16 %v1535_v16 }
 0x5f8   :  { %2001 = vpow2.f32 %v1538_v3  ;;  %v1076_v7 = vadd.f32 %v1074_v59, %v1028_v4  ;;  %v1030_v0 = vadd.f32 %v1029_v61, %v2314_v45  ;;  %v1540_v55 = vmul.f32 -1.442695, %v1097_v43 }
 0x5fa   :  { %v1539_v44 = vmul.f32 -1.442695, %v1076_v7  ;;  %v1098_v30 = vadd.f32 %v1096_v28, %v1030_v0 }
 0x5fc   :  { %2003 = vpow2.f32 %v1539_v44  ;;  %v1541_v13 = vmul.f32 -1.442695, %v1098_v30 }
 0x605   :  { %v2002_v42 = vpop.eup %2001 }
 0x606   :  { %v1083_v11 = vadd.f32 1.0, %v2002_v42 }
 0x608   :  { %2005 = vrcp.f32 %v1083_v11 }
 0x609   :  { %v2004_v14 = vpop.eup %2003  ;;  %2007 = vpow2.f32 %v1540_v55 }
 0x60a   :  { %v1084_v15 = vadd.f32 1.0, %v2004_v14  ;;  %2009 = vpow2.f32 %v1541_v13  ;;  %v1547_v13 = vld [vmem:[%s2840_s0 + $0x98] ss:$12 sps:$4 sm:$0xff]  }
 0x60c   :  { %2011 = vrcp.f32 %v1084_v15  ;;  %v1270_v15 = vunpack.c.l.bf16 %v1547_v13 }
 0x615   :  { %v2006_v25 = vpop.eup %2005 }
 0x616   :  { %v2008_v27 = vpop.eup %2007  ;;  %v1111_v29 = vmul.f32 %v2006_v25, %v1067_v19 }
 0x617   :  { %v2010_v33 = vpop.eup %2009  ;;  %v1105_v9 = vadd.f32 1.0, %v2008_v27 }
 0x618   :  { %v1115_v34 = vadd.f32 %v1113_v63, %v1111_v29  ;;  %v1106_v5 = vadd.f32 1.0, %v2010_v33  ;;  %v1271_v33 = vunpack.c.h.bf16 %v1547_v13 }
 0x619   :  { %v2012_v59 = vpop.eup %2011 }
 0x61a   :  { %2013 = vtanh.f32 %v1115_v34  ;;  %v1112_v3 = vmul.f32 %v2012_v59, %v1070_v36 }
 0x61b   :  { %2015 = vrcp.f32 %v1105_v9 }
 0x61c   :  { %v1116_v4 = vadd.f32 %v1114_v37, %v1112_v3 }
 0x61e   :  { %2017 = vtanh.f32 %v1116_v4 }
 0x61f   :  { %2019 = vrcp.f32 %v1106_v5 }
 0x627   :  { %v2014_v7 = vpop.eup %2013 }
 0x628   :  { %v1119_v49 = vsub.f32 %v2604_v17, %v2014_v7  ;;  %v2016_v8 = vpop.eup %2015 }
 0x62a   :  { %v1121_v61 = vmul.f32 %v2016_v8, %v1119_v49 }
 0x62b   :  { %v2018_v44 = vpop.eup %2017 }
 0x62c   :  { %v1120_v46 = vsub.f32 %v2606_v18, %v2018_v44  ;;  %v2020_v6 = vpop.eup %2019  ;;  %v2750_v41 = vadd.f32 %v2014_v7, %v1121_v61 }
 0x62e   :  { %v1122_v40 = vmul.f32 %v2020_v6, %v1120_v46 }
 0x630   :  { %v2752_v0 = vadd.f32 %v2018_v44, %v1122_v40 }
 0x632   :  { %v1614_v28 = vpack.c.bf16 %v2752_v0, %v2750_v41 }
 0x634   :  { %1630 = vst [vmem:[%s2841_s3 + $0x28] sm:$0xff] %v1614_v28   ;;  %1179 = vmatmul.mubr.bf16.vlgmr.msra.gmra.mxu0 %v1614_v28  ;;  %1842 = vmatmul.mubr.bf16.vlgmr.msra.gmra.mxu1 %v1614_v28 }
 0x635   :  { %1304 = vmatpush1.bf16.msra.mxu0 %v2520_v38  ;;  %1846 = vmatpush3.bf16.msra.mxu1 %v2617_v35 }
 0x636   :  { %1305 = vmatprep.subr.bf16.mxu0 %v2527_v39  ;;  %1847 = vmatprep.subr.bf16.mxu1 %v2085_v1 }
 0x637   :  { %1335 = vmatprep.mubr.bf16.mxu0 %v2086_v2  ;;  %1861 = vmatprep.mubr.msk.bf16.mxu1 %vm2087_vm0, %v2085_v1  ;;  %v1546_v2 = vld [vmem:[%s2840_s0 + $0x90] sm:$0xff] }
 0x638   :  { %v1230_v38 = vunpack.c.l.bf16 %v1546_v2 }
 0x639   :  { %1306 = vmatpush1.bf16.msra.mxu0 %v2537_v56  ;;  %1848 = vmatpush3.bf16.msra.mxu1 %v2629_v47 }
 0x63a   :  { %1307 = vmatprep.subr.bf16.mxu0 %v2544_v10  ;;  %1849 = vmatprep.subr.bf16.mxu1 %v2085_v1  ;;  %v1548_v10 = vld [vmem:[%s2840_s0 + $0x9c] sm:$0xff] }
 0x63b   :  { %v1231_v18 = vunpack.c.l.bf16 %v1548_v10 }
 0x63d   :  { %1308 = vmatpush1.bf16.msra.mxu0 %v2551_v48  ;;  %1850 = vmatpush3.bf16.msra.mxu1 %v2638_v20 }
 0x63e   :  { %1309 = vmatprep.subr.bf16.mxu0 %v2558_v12  ;;  %1851 = vmatprep.subr.bf16.mxu1 %v2085_v1 }
 0x641   :  { %1310 = vmatpush1.bf16.msra.mxu0 %v2646_v21  ;;  %1852 = vmatpush3.bf16.msra.mxu1 %v2652_v22 }
 0x642   :  { %1311 = vmatprep.subr.bf16.mxu0 %v2658_v23  ;;  %1853 = vmatprep.subr.bf16.mxu1 %v2085_v1 }
 0x645   :  { %1312 = vmatpush1.bf16.msra.mxu0 %v2665_v24  ;;  %1854 = vmatpush3.bf16.msra.mxu1 %v2671_v26  ;;  %v1248_v24 = vrot.slane %v1546_v2, 4 }
 0x646   :  { %1313 = vmatprep.subr.bf16.mxu0 %v2677_v50  ;;  %1855 = vmatprep.subr.bf16.mxu1 %v2085_v1  ;;  %v1249_v50 = vrot.slane %v1548_v10, 4 }
 0x649   :  { %1314 = vmatpush1.bf16.msra.mxu0 %v2684_v51  ;;  %1856 = vmatpush3.bf16.msra.mxu1 %v2690_v52 }
 0x64a   :  { %1315 = vmatprep.subr.bf16.mxu0 %v2696_v53  ;;  %1857 = vmatprep.subr.bf16.mxu1 %v2085_v1  ;;  %v1252_v53 = vunpack.c.l.bf16 %v1248_v24 }
 0x64d   :  { %1316 = vmatpush1.bf16.msra.mxu0 %v2703_v54  ;;  %1858 = vmatpush3.bf16.msra.mxu1 %v2709_v57  ;;  %v1253_v57 = vunpack.c.l.bf16 %v1249_v50 }
 0x64e   :  { %1317 = vmatprep.subr.bf16.mxu0 %v2715_v58  ;;  %1859 = vmatprep.subr.bf16.mxu1 %v2085_v1 }
 0x651   :  { %1318 = vmatpush1.bf16.msra.mxu0 %v2722_v60  ;;  %1860 = vmatpush3.bf16.msra.mxu1 %v2728_v62 }
 0x6f4   :  { %v1180_v39 = vpop.f32.mrf.mxu0  ;;  %v1223_v56 = vpop.f32.mrf.mxu1 }
 0x6f5   :  { %v1181_v48 = vadd.f32 %v1180_v39, %v2307_v32  ;;  %v1224_v14 = vadd.f32 %v1223_v56, %v2318_v31 }
 0x6f6   :  { %v1182_v12 = vpop.f32.mrf.mxu0  ;;  %v1843_v17 = vpop.f32.mrf.mxu1 }
 0x6f7   :  { %v1232_v1 = vadd.f32 %v1230_v38, %v1181_v48  ;;  %v1183_v52 = vadd.f32 %v1182_v12, %v2314_v45  ;;  %v1560_v38 = vld [vmem:[%s2840_s0 + $0xb4] sm:$0xff] }
 0x6f8   :  { %v1184_v35 = vpop.f32.mrf.mxu0  ;;  %v1226_v47 = vpop.f32.mrf.mxu1  ;;  %v1388_v12 = vunpack.c.l.bf16 %v1560_v38 }
 0x6f9   :  { %v1550_v20 = vmul.f32 -1.442695, %v1232_v1  ;;  %v1185_v21 = vadd.f32 %v1184_v35, %v2307_v32  ;;  %v1254_v58 = vadd.f32 %v1252_v53, %v1183_v52  ;;  %v1227_v29 = vadd.f32 %v1226_v47, %v2318_v31 }
 0x6fa   :  { %v1844_v22 = vpop.f32.mrf.mxu1  ;;  %v1186_v51 = vpop.f32.mrf.mxu0 }
 0x6fb   :  { %2021 = vpow2.f32 %v1550_v20  ;;  %v1233_v23 = vadd.f32 %v1231_v18, %v1185_v21  ;;  %v1187_v54 = vadd.f32 %v1186_v51, %v2314_v45  ;;  %v1552_v43 = vmul.f32 -1.442695, %v1254_v58 }
 0x6fd   :  { %v1551_v26 = vmul.f32 -1.442695, %v1233_v23  ;;  %v1255_v60 = vadd.f32 %v1253_v57, %v1187_v54  ;;  %v1406_v23 = vrot.slane %v1560_v38, 4 }
 0x6ff   :  { %2023 = vpow2.f32 %v1551_v26  ;;  %v1553_v42 = vmul.f32 -1.442695, %v1255_v60  ;;  %v1410_v52 = vunpack.c.l.bf16 %v1406_v23 }
 0x708   :  { %v2022_v62 = vpop.eup %2021 }
 0x709   :  { %v1240_v30 = vadd.f32 1.0, %v2022_v62 }
 0x70b   :  { %2025 = vrcp.f32 %v1240_v30  ;;  %v1559_v30 = vld [vmem:[%s2840_s0 + $0xb0] ss:$12 sps:$4 sm:$0xff]  }
 0x70c   :  { %v2024_v55 = vpop.eup %2023  ;;  %2027 = vpow2.f32 %v1552_v43 }
 0x70d   :  { %v1241_v11 = vadd.f32 1.0, %v2024_v55  ;;  %2029 = vpow2.f32 %v1553_v42 }
 0x70f   :  { %2031 = vrcp.f32 %v1241_v11 }
 0x718   :  { %v2026_v16 = vpop.eup %2025 }
 0x719   :  { %v2028_v19 = vpop.eup %2027  ;;  %v1268_v63 = vmul.f32 %v2026_v16, %v1224_v14 }
 0x71a   :  { %v2030_v25 = vpop.eup %2029  ;;  %v1262_v36 = vadd.f32 1.0, %v2028_v19  ;;  %v1428_v19 = vunpack.c.h.bf16 %v1559_v30 }
 0x71b   :  { %v1272_v27 = vadd.f32 %v1270_v15, %v1268_v63  ;;  %v1263_v9 = vadd.f32 1.0, %v2030_v25 }
 0x71c   :  { %v2032_v34 = vpop.eup %2031 }
 0x71d   :  { %2033 = vtanh.f32 %v1272_v27  ;;  %v1269_v37 = vmul.f32 %v2032_v34, %v1227_v29 }
 0x71e   :  { %2035 = vrcp.f32 %v1262_v36 }
 0x71f   :  { %v1273_v59 = vadd.f32 %v1271_v33, %v1269_v37 }
 0x721   :  { %2037 = vtanh.f32 %v1273_v59 }
 0x722   :  { %2039 = vrcp.f32 %v1263_v9 }
 0x72a   :  { %v2034_v3 = vpop.eup %2033 }
 0x72b   :  { %v1276_v4 = vsub.f32 %v2750_v41, %v2034_v3  ;;  %v2036_v5 = vpop.eup %2035  ;;  %v1558_v41 = vld [vmem:[%s2840_s0 + $0xa8] sm:$0xff] }
 0x72c   :  { %v1405_v21 = vrot.slane %v1558_v41, 4 }
 0x72d   :  { %v1278_v8 = vmul.f32 %v2036_v5, %v1276_v4 }
 0x72e   :  { %v2038_v7 = vpop.eup %2037  ;;  %v1409_v50 = vunpack.c.l.bf16 %v1405_v21 }
 0x72f   :  { %v1277_v49 = vsub.f32 %v2752_v0, %v2038_v7  ;;  %v2040_v44 = vpop.eup %2039  ;;  %v2809_v61 = vadd.f32 %v2034_v3, %v1278_v8  ;;  %v1387_v0 = vunpack.c.l.bf16 %v1558_v41 }
 0x731   :  { %v1279_v46 = vmul.f32 %v2040_v44, %v1277_v49 }
 0x733   :  { %v2811_v6 = vadd.f32 %v2038_v7, %v1279_v46 }
 0x735   :  { %v1619_v40 = vpack.c.bf16 %v2811_v6, %v2809_v61 }
 0x737   :  { %1631 = vst [vmem:[%s2841_s3 + $0x30] sm:$0xff] %v1619_v40   ;;  %1336 = vmatmul.mubr.bf16.vlgmr.msra.gmra.mxu0 %v1619_v40  ;;  %1862 = vmatmul.mubr.bf16.vlgmr.msra.gmra.mxu1 %v1619_v40 }
 0x7f7   :  { %v1337_v28 = vpop.f32.mrf.mxu0  ;;  %v1380_v2 = vpop.f32.mrf.mxu1 }
 0x7f8   :  { %v1338_v39 = vadd.f32 %v1337_v28, %v2307_v32  ;;  %v1381_v42 = vadd.f32 %v1380_v2, %v2318_v31 }
 0x7f9   :  { %v1339_v56 = vpop.f32.mrf.mxu0  ;;  %v1863_v10 = vpop.f32.mrf.mxu1 }
 0x7fa   :  { %v1389_v48 = vadd.f32 %v1387_v0, %v1338_v39  ;;  %v1340_v26 = vadd.f32 %v1339_v56, %v2314_v45 }
 0x7fb   :  { %v1341_v17 = vpop.f32.mrf.mxu0  ;;  %v1383_v1 = vpop.f32.mrf.mxu1 }
 0x7fc   :  { %v1562_v18 = vmul.f32 -1.442695, %v1389_v48  ;;  %v1342_v35 = vadd.f32 %v1341_v17, %v2307_v32  ;;  %v1411_v53 = vadd.f32 %v1409_v50, %v1340_v26  ;;  %v1384_v16 = vadd.f32 %v1383_v1, %v2318_v31 }
 0x7fd   :  { %v1864_v47 = vpop.f32.mrf.mxu1  ;;  %v1343_v24 = vpop.f32.mrf.mxu0 }
 0x7fe   :  { %2041 = vpow2.f32 %v1562_v18  ;;  %v1390_v20 = vadd.f32 %v1388_v12, %v1342_v35  ;;  %v1344_v51 = vadd.f32 %v1343_v24, %v2314_v45  ;;  %v1564_v58 = vmul.f32 -1.442695, %v1411_v53 }
 0x7ff   :  { %v1427_v45 = vunpack.c.l.bf16 %v1559_v30 }
 0x800   :  { %v1563_v22 = vmul.f32 -1.442695, %v1390_v20  ;;  %v1412_v54 = vadd.f32 %v1410_v52, %v1344_v51 }
 0x802   :  { %2043 = vpow2.f32 %v1563_v22  ;;  %v1565_v32 = vmul.f32 -1.442695, %v1412_v54 }
 0x80b   :  { %v2042_v57 = vpop.eup %2041 }
 0x80c   :  { %v1397_v60 = vadd.f32 1.0, %v2042_v57 }
 0x80e   :  { %2045 = vrcp.f32 %v1397_v60 }
 0x80f   :  { %v2044_v62 = vpop.eup %2043  ;;  %2047 = vpow2.f32 %v1564_v58 }
 0x810   :  { %v1398_v43 = vadd.f32 1.0, %v2044_v62  ;;  %2049 = vpow2.f32 %v1565_v32 }
 0x812   :  { %2051 = vrcp.f32 %v1398_v43 }
 0x81b   :  { %v2046_v55 = vpop.eup %2045 }
 0x81c   :  { %v2048_v11 = vpop.eup %2047  ;;  %v1425_v13 = vmul.f32 %v2046_v55, %v1381_v42 }
 0x81d   :  { %v2050_v14 = vpop.eup %2049  ;;  %v1419_v25 = vadd.f32 1.0, %v2048_v11 }
 0x81e   :  { %v1429_v15 = vadd.f32 %v1427_v45, %v1425_v13  ;;  %v1420_v33 = vadd.f32 1.0, %v2050_v14 }
 0x81f   :  { %v2052_v63 = vpop.eup %2051 }
 0x820   :  { %2053 = vtanh.f32 %v1429_v15  ;;  %v1426_v27 = vmul.f32 %v2052_v63, %v1384_v16 }
 0x821   :  { %2055 = vrcp.f32 %v1419_v25 }
 0x822   :  { %v1430_v29 = vadd.f32 %v1428_v19, %v1426_v27 }
 0x824   :  { %2057 = vtanh.f32 %v1430_v29 }
 0x825   :  { %2059 = vrcp.f32 %v1420_v33 }
 0x82d   :  { %v2054_v34 = vpop.eup %2053 }
 0x82e   :  { %v1433_v36 = vsub.f32 %v2809_v61, %v2054_v34  ;;  %v2056_v37 = vpop.eup %2055 }
 0x830   :  { %v1435_v9 = vmul.f32 %v2056_v37, %v1433_v36 }
 0x831   :  { %v2058_v59 = vpop.eup %2057 }
 0x832   :  { %v1434_v3 = vsub.f32 %v2811_v6, %v2058_v59  ;;  %v2060_v4 = vpop.eup %2059  ;;  %v1437_v5 = vadd.f32 %v2054_v34, %v1435_v9 }
 0x834   :  { %v1436_v31 = vmul.f32 %v2060_v4, %v1434_v3 }
 0x836   :  { %v1438_v7 = vadd.f32 %v2058_v59, %v1436_v31 }
 0x838   :  { %v1624_v49 = vpack.c.bf16 %v1438_v7, %v1437_v5 }
 0x83a   :  { %1632 = vst [vmem:[%s2841_s3 + $0x38] sm:$0xff] %v1624_v49  }

// kernel: rnn_forward.7
= control target key start
LH: loop header
LB: loop body
LE: loop exit
PB: predicated region body
PF: predicated region fallthrough
CT: control target
= control target key end

     0   :  { %v2077_v1 = vmov 0.0   ;;  %v2078_v2 = vmov 0   ;;  %vm2079_vm0 = vmmov 0   ;;  %v2080_v25 = vmov 0.0|0.0   ;;  %s2859_s1 = inlined_call_operand.vmem [shape: bf16[128,384], index: 1, kind: input, shape index: {}]   ;;  %s2860_s2 = inlined_call_operand.vmem [shape: f32[1,384], index: 2, kind: input, shape index: {}]   ;;  %s2861_s0 = inlined_call_operand.vmem [shape: bf16[8,16,384], index: 0, kind: input, shape index: {}]   ;;  %s2862_s3 = inlined_call_operand.vmem [shape: bf16[128,128], index: 3, kind: input, shape index: {}]   ;;  %s2863_s4 = inlined_call_operand.vmem [shape: f32[1,128], index: 4, kind: input, shape index: {}]   ;;  %s2864_s5 = inlined_call_operand.vmem [shape: f32[16,128], index: 5, kind: output, shape index: {}]  }
   0x1   :  { %v2114_v0 = vld [vmem:[%s2859_s1 + $0xac] ss:$12 sps:$4 sm:$0xff]   ;;  %1669 = vmatprep.subr.bf16.mxu1 %v2077_v1  ;;  %243 = vmatprep.mubr.bf16.mxu0 %v2078_v2  ;;  %v2121_v3 = vld [vmem:[%s2859_s1 + $0xa8] ss:$12 sps:$4 sm:$0xff]   ;;  %v2135_v5 = vld [vmem:[%s2859_s1 + $0x90] ss:$12 sps:$4 sm:$0xff]   ;;  %v68_v27 = vlaneseq }
   0x2   :  { %1685 = vmatprep.mubr.msk.bf16.mxu1 %vm2079_vm0, %v2077_v1  ;;  %211 = vmatprep.subr.bf16.mxu0 %v2114_v0  ;;  %v2129_v4 = vld [vmem:[%s2859_s1 + $0x94] ss:$12 sps:$4 sm:$0xff]   ;;  %v2141_v6 = vld [vmem:[%s2859_s1 + $0x7c] ss:$12 sps:$4 sm:$0xff]   ;;  %v2147_v7 = vld [vmem:[%s2859_s1 + $0x78] ss:$12 sps:$4 sm:$0xff]  }
   0x3   :  { %212 = vmatpush1.bf16.msra.mxu0 %v2121_v3  ;;  %v2153_v8 = vld [vmem:[%s2859_s1 + $0x64] ss:$12 sps:$4 sm:$0xff]   ;;  %v2158_v9 = vld [vmem:[%s2859_s1 + $0x60] ss:$12 sps:$4 sm:$0xff]   ;;  %v2183_v13 = vld [vmem:[%s2859_s1 + $0x48] ss:$12 sps:$4 sm:$0xff]  }
   0x4   :  { %213 = vmatprep.subr.bf16.mxu0 %v2129_v4  ;;  %v2164_v10 = vld [vmem:[%s2859_s1 + $0xb0] ss:$12 sps:$4 sm:$0xff]   ;;  %v2170_v11 = vld [vmem:[%s2859_s1 + $0x4c] ss:$12 sps:$4 sm:$0xff]   ;;  %v2189_v14 = vld [vmem:[%s2859_s1 + $0x34] ss:$12 sps:$4 sm:$0xff]  }
   0x5   :  { %1670 = vmatpush3.bf16.msra.mxu1 %v2164_v10  ;;  %v2176_v12 = vld [vmem:[%s2859_s1 + $0x98] ss:$12 sps:$4 sm:$0xff]   ;;  %v2195_v15 = vld [vmem:[%s2859_s1 + $0x80] ss:$12 sps:$4 sm:$0xff]   ;;  %v2202_v16 = vld [vmem:[%s2859_s1 + $0x30] ss:$12 sps:$4 sm:$0xff]  }
   0x6   :  { %1671 = vmatprep.subr.bf16.mxu1 %v2077_v1  ;;  %v2208_v17 = vld [vmem:[%s2859_s1 + $0x1c] ss:$12 sps:$4 sm:$0xff]   ;;  %v2221_v19 = vld [vmem:[%s2859_s1 + $0x18] ss:$12 sps:$4 sm:$0xff]   ;;  %v2240_v22 = vld [vmem:[%s2859_s1] ss:$12 sps:$4 sm:$0xff]  }
   0x7   :  { %214 = vmatpush1.bf16.msra.mxu0 %v2135_v5  ;;  %v2214_v18 = vld [vmem:[%s2859_s1 + $0x68] ss:$12 sps:$4 sm:$0xff]   ;;  %v2227_v20 = vld [vmem:[%s2859_s1 + $0x4] ss:$12 sps:$4 sm:$0xff]   ;;  %v2256_v24 = vld [vmem:[%s2859_s1 + $0x20] ss:$12 sps:$4 sm:$0xff]  }
   0x8   :  { %215 = vmatprep.subr.bf16.mxu0 %v2141_v6  ;;  %v2233_v21 = vld [vmem:[%s2859_s1 + $0x50] ss:$12 sps:$4 sm:$0xff]   ;;  %v2247_v23 = vld [vmem:[%s2859_s1 + $0x38] ss:$12 sps:$4 sm:$0xff]   ;;  %v2266_v26 = vld [vmem:[%s2859_s1 + $0x8] ss:$12 sps:$4 sm:$0xff]  }
   0x9   :  { %1672 = vmatpush3.bf16.msra.mxu1 %v2176_v12  ;;  %v69_v28 = vshrl.u32 %v68_v27, 7  ;;  %v59_v30 = vld [vmem:[%s2860_s2] sm:$0x7]  ;;  %v64_v35 = vld [vmem:[%s2861_s0 + $0xc] sm:$0xff] }
   0xa   :  { %1673 = vmatprep.subr.bf16.mxu1 %v2077_v1  ;;  %v62_v31 = vld [vmem:[%s2861_s0] sm:$0xff]  ;;  %v296_v39 = vunpack.c.l.bf16 %v64_v35  ;;  %v314_v48 = vrot.slane %v64_v35, 4 }
   0xb   :  { %216 = vmatpush1.bf16.msra.mxu0 %v2147_v7  ;;  %v70_v29 = vsub.s32 0, %v69_v28  ;;  %v295_v33 = vunpack.c.l.bf16 %v62_v31  ;;  %v74_v40 = vsub.s32 1, %v69_v28  ;;  %v313_v46 = vrot.slane %v62_v31, 4 }
   0xc   :  { %217 = vmatprep.subr.bf16.mxu0 %v2153_v8  ;;  %v318_v55 = vunpack.c.l.bf16 %v314_v48 }
   0xd   :  { %1674 = vmatpush3.bf16.msra.mxu1 %v2195_v15  ;;  %v2309_v32 = vrot.slane %v59_v30, %v70_v29  ;;  %v2316_v45 = vrot.slane %v59_v30, %v74_v40  ;;  %v317_v52 = vunpack.c.l.bf16 %v313_v46  ;;  %v78_v29 = vsub.s32 2, %v69_v28 }
   0xe   :  { %1675 = vmatprep.subr.bf16.mxu1 %v2077_v1 }
   0xf   :  { %218 = vmatpush1.bf16.msra.mxu0 %v2158_v9  ;;  %v2320_v31 = vrot.slane %v59_v30, %v78_v29 }
  0x10   :  { %219 = vmatprep.subr.bf16.mxu0 %v2170_v11 }
  0x11   :  { %1676 = vmatpush3.bf16.msra.mxu1 %v2214_v18 }
  0x12   :  { %1677 = vmatprep.subr.bf16.mxu1 %v2077_v1 }
  0x13   :  { %220 = vmatpush1.bf16.msra.mxu0 %v2183_v13 }
  0x14   :  { %221 = vmatprep.subr.bf16.mxu0 %v2189_v14 }
  0x15   :  { %1678 = vmatpush3.bf16.msra.mxu1 %v2233_v21 }
  0x16   :  { %1679 = vmatprep.subr.bf16.mxu1 %v2077_v1 }
  0x17   :  { %222 = vmatpush1.bf16.msra.mxu0 %v2202_v16 }
  0x18   :  { %223 = vmatprep.subr.bf16.mxu0 %v2208_v17 }
  0x19   :  { %1680 = vmatpush3.bf16.msra.mxu1 %v2247_v23 }
  0x1a   :  { %1681 = vmatprep.subr.bf16.mxu1 %v2077_v1 }
  0x1b   :  { %224 = vmatpush1.bf16.msra.mxu0 %v2221_v19 }
  0x1c   :  { %225 = vmatprep.subr.bf16.mxu0 %v2227_v20 }
  0x1d   :  { %1682 = vmatpush3.bf16.msra.mxu1 %v2256_v24 }
  0x1e   :  { %1683 = vmatprep.subr.bf16.mxu1 %v2077_v1 }
  0x1f   :  { %226 = vmatpush1.bf16.msra.mxu0 %v2240_v22 }
  0x20   :  { %357 = vmatprep.subr.bf16.mxu0 %v2114_v0 }
  0x21   :  { %1684 = vmatpush3.bf16.msra.mxu1 %v2266_v26 }
  0x22   :  { %244 = vmatmul.mubr.bf16.vlgmr.msra.gmra.mxu0 %v2080_v25  ;;  %1689 = vmatprep.subr.bf16.mxu1 %v2077_v1 }
  0x23   :  { %358 = vmatpush1.bf16.msra.mxu0 %v2121_v3  ;;  %389 = vmatprep.mubr.bf16.mxu0 %v2078_v2 }
  0x24   :  { %359 = vmatprep.subr.bf16.mxu0 %v2129_v4  ;;  %1686 = vmatmul.mubr.bf16.vlgmr.msra.gmra.mxu1 %v2080_v25 }
  0x25   :  { %1690 = vmatpush3.bf16.msra.mxu1 %v2164_v10  ;;  %1705 = vmatprep.mubr.msk.bf16.mxu1 %vm2079_vm0, %v2077_v1 }
  0x26   :  { %1691 = vmatprep.subr.bf16.mxu1 %v2077_v1 }
  0x27   :  { %360 = vmatpush1.bf16.msra.mxu0 %v2135_v5 }
  0x28   :  { %361 = vmatprep.subr.bf16.mxu0 %v2141_v6 }
  0x29   :  { %1692 = vmatpush3.bf16.msra.mxu1 %v2176_v12 }
  0x2a   :  { %1693 = vmatprep.subr.bf16.mxu1 %v2077_v1 }
  0x2b   :  { %362 = vmatpush1.bf16.msra.mxu0 %v2147_v7 }
  0x2c   :  { %363 = vmatprep.subr.bf16.mxu0 %v2153_v8 }
  0x2d   :  { %1694 = vmatpush3.bf16.msra.mxu1 %v2195_v15 }
  0x2e   :  { %1695 = vmatprep.subr.bf16.mxu1 %v2077_v1 }
  0x2f   :  { %364 = vmatpush1.bf16.msra.mxu0 %v2158_v9 }
  0x30   :  { %365 = vmatprep.subr.bf16.mxu0 %v2170_v11 }
  0x31   :  { %1696 = vmatpush3.bf16.msra.mxu1 %v2214_v18 }
  0x32   :  { %1697 = vmatprep.subr.bf16.mxu1 %v2077_v1 }
  0x33   :  { %366 = vmatpush1.bf16.msra.mxu0 %v2183_v13 }
  0x34   :  { %367 = vmatprep.subr.bf16.mxu0 %v2189_v14 }
  0x35   :  { %1698 = vmatpush3.bf16.msra.mxu1 %v2233_v21 }
  0x36   :  { %1699 = vmatprep.subr.bf16.mxu1 %v2077_v1 }
  0x37   :  { %368 = vmatpush1.bf16.msra.mxu0 %v2202_v16 }
  0x38   :  { %369 = vmatprep.subr.bf16.mxu0 %v2208_v17 }
  0x39   :  { %1700 = vmatpush3.bf16.msra.mxu1 %v2247_v23 }
  0x3a   :  { %1701 = vmatprep.subr.bf16.mxu1 %v2077_v1 }
  0x3b   :  { %370 = vmatpush1.bf16.msra.mxu0 %v2221_v19 }
  0x3c   :  { %371 = vmatprep.subr.bf16.mxu0 %v2227_v20 }
  0x3d   :  { %1702 = vmatpush3.bf16.msra.mxu1 %v2256_v24 }
  0x3e   :  { %1703 = vmatprep.subr.bf16.mxu1 %v2077_v1 }
  0x3f   :  { %372 = vmatpush1.bf16.msra.mxu0 %v2240_v22 }
  0x40   :  { %503 = vmatprep.subr.bf16.mxu0 %v2114_v0 }
  0x41   :  { %1704 = vmatpush3.bf16.msra.mxu1 %v2266_v26 }
  0x42   :  { %1709 = vmatprep.subr.bf16.mxu1 %v2077_v1 }
  0xe2   :  { %v245_v34 = vpop.f32.mrf.mxu0 }
  0xe3   :  { %v246_v36 = vadd.f32 %v245_v34, %v2309_v32 }
  0xe4   :  { %v247_v37 = vpop.f32.mrf.mxu0  ;;  %v288_v49 = vpop.f32.mrf.mxu1 }
  0xe5   :  { %v297_v38 = vadd.f32 %v295_v33, %v246_v36  ;;  %v248_v51 = vadd.f32 %v247_v37, %v2316_v45  ;;  %v63_v33 = vld [vmem:[%s2861_s0 + $0x8] ss:$12 sps:$4 sm:$0xff]   ;;  %v289_v34 = vadd.f32 %v288_v49, %v2320_v31 }
  0xe6   :  { %v249_v41 = vpop.f32.mrf.mxu0  ;;  %v1687_v53 = vpop.f32.mrf.mxu1  ;;  %v335_v35 = vunpack.c.l.bf16 %v63_v33 }
  0xe7   :  { %v1519_v42 = vmul.f32 -1.442695, %v297_v38  ;;  %v250_v43 = vadd.f32 %v249_v41, %v2309_v32  ;;  %v319_v57 = vadd.f32 %v317_v52, %v248_v51 }
  0xe8   :  { %v251_v50 = vpop.f32.mrf.mxu0  ;;  %v291_v56 = vpop.f32.mrf.mxu1 }
  0xe9   :  { %1893 = vpow2.f32 %v1519_v42  ;;  %v298_v44 = vadd.f32 %v296_v39, %v250_v43  ;;  %v252_v54 = vadd.f32 %v251_v50, %v2316_v45  ;;  %v1521_v61 = vmul.f32 -1.442695, %v319_v57 }
  0xea   :  { %v1688_v58 = vpop.f32.mrf.mxu1  ;;  %v292_v41 = vadd.f32 %v291_v56, %v2320_v31  ;;  %v336_v42 = vunpack.c.h.bf16 %v63_v33 }
  0xeb   :  { %v1520_v47 = vmul.f32 -1.442695, %v298_v44  ;;  %v320_v59 = vadd.f32 %v318_v55, %v252_v54  ;;  %v1523_v58 = vld [vmem:[%s2861_s0 + $0x18] sm:$0xff] }
  0xed   :  { %1895 = vpow2.f32 %v1520_v47  ;;  %v1522_v63 = vmul.f32 -1.442695, %v320_v59  ;;  %v441_v59 = vunpack.c.l.bf16 %v1523_v58 }
  0xf6   :  { %v1894_v60 = vpop.eup %1893 }
  0xf7   :  { %v305_v62 = vadd.f32 1.0, %v1894_v60 }
  0xf9   :  { %1897 = vrcp.f32 %v305_v62  ;;  %v1525_v62 = vld [vmem:[%s2861_s0 + $0x24] sm:$0xff] }
  0xfa   :  { %v1896_v25 = vpop.eup %1895  ;;  %1899 = vpow2.f32 %v1521_v61  ;;  %v442_v33 = vunpack.c.l.bf16 %v1525_v62 }
  0xfb   :  { %v306_v27 = vadd.f32 1.0, %v1896_v25  ;;  %1901 = vpow2.f32 %v1522_v63 }
  0xfd   :  { %1903 = vrcp.f32 %v306_v27 }
 0x106   :  { %v1898_v36 = vpop.eup %1897 }
 0x107   :  { %v1900_v37 = vpop.eup %1899  ;;  %v333_v38 = vmul.f32 %v1898_v36, %v289_v34 }
 0x108   :  { %v1902_v39 = vpop.eup %1901  ;;  %v327_v43 = vadd.f32 1.0, %v1900_v37 }
 0x109   :  { %v337_v40 = vadd.f32 %v335_v35, %v333_v38  ;;  %v328_v44 = vadd.f32 1.0, %v1902_v39 }
 0x10a   :  { %v1904_v28 = vpop.eup %1903 }
 0x10b   :  { %1905 = vtanh.f32 %v337_v40  ;;  %v334_v30 = vmul.f32 %v1904_v28, %v292_v41  ;;  %v459_v40 = vrot.slane %v1523_v58, 4 }
 0x10c   :  { %1907 = vrcp.f32 %v327_v43 }
 0x10d   :  { %v338_v46 = vadd.f32 %v336_v42, %v334_v30  ;;  %v460_v42 = vrot.slane %v1525_v62, 4  ;;  %v463_v30 = vunpack.c.l.bf16 %v459_v40 }
 0x10f   :  { %1909 = vtanh.f32 %v338_v46  ;;  %v464_v46 = vunpack.c.l.bf16 %v460_v42 }
 0x110   :  { %1911 = vrcp.f32 %v328_v44 }
 0x118   :  { %v1906_v47 = vpop.eup %1905 }
 0x119   :  { %v341_v48 = vsub.f32 0.0, %v1906_v47  ;;  %v1908_v49 = vpop.eup %1907 }
 0x11b   :  { %v343_v52 = vmul.f32 %v1908_v49, %v341_v48 }
 0x11c   :  { %v1910_v50 = vpop.eup %1909 }
 0x11d   :  { %v342_v51 = vsub.f32 0.0, %v1910_v50  ;;  %v1912_v53 = vpop.eup %1911  ;;  %v2327_v55 = vadd.f32 %v1906_v47, %v343_v52 }
 0x11f   :  { %v344_v54 = vmul.f32 %v1912_v53, %v342_v51 }
 0x121   :  { %v2329_v56 = vadd.f32 %v1910_v50, %v344_v54 }
 0x123   :  { %v356_v57 = vpack.c.bf16 %v2329_v56, %v2327_v55 }
 0x125   :  { %390 = vmatmul.mubr.bf16.vlgmr.msra.gmra.mxu0 %v356_v57  ;;  %1706 = vmatmul.mubr.bf16.vlgmr.msra.gmra.mxu1 %v356_v57  ;;  %v1524_v57 = vld [vmem:[%s2861_s0 + $0x20] ss:$12 sps:$4 sm:$0xff]  }
 0x126   :  { %504 = vmatpush1.bf16.msra.mxu0 %v2121_v3  ;;  %1710 = vmatpush3.bf16.msra.mxu1 %v2164_v10 }
 0x127   :  { %505 = vmatprep.subr.bf16.mxu0 %v2129_v4  ;;  %1711 = vmatprep.subr.bf16.mxu1 %v2077_v1 }
 0x128   :  { %535 = vmatprep.mubr.bf16.mxu0 %v2078_v2  ;;  %1725 = vmatprep.mubr.msk.bf16.mxu1 %vm2079_vm0, %v2077_v1 }
 0x12a   :  { %506 = vmatpush1.bf16.msra.mxu0 %v2135_v5  ;;  %1712 = vmatpush3.bf16.msra.mxu1 %v2176_v12 }
 0x12b   :  { %507 = vmatprep.subr.bf16.mxu0 %v2141_v6  ;;  %1713 = vmatprep.subr.bf16.mxu1 %v2077_v1 }
 0x12e   :  { %508 = vmatpush1.bf16.msra.mxu0 %v2147_v7  ;;  %1714 = vmatpush3.bf16.msra.mxu1 %v2195_v15 }
 0x12f   :  { %509 = vmatprep.subr.bf16.mxu0 %v2153_v8  ;;  %1715 = vmatprep.subr.bf16.mxu1 %v2077_v1 }
 0x132   :  { %510 = vmatpush1.bf16.msra.mxu0 %v2158_v9  ;;  %1716 = vmatpush3.bf16.msra.mxu1 %v2214_v18 }
 0x133   :  { %511 = vmatprep.subr.bf16.mxu0 %v2170_v11  ;;  %1717 = vmatprep.subr.bf16.mxu1 %v2077_v1 }
 0x136   :  { %512 = vmatpush1.bf16.msra.mxu0 %v2183_v13  ;;  %1718 = vmatpush3.bf16.msra.mxu1 %v2233_v21 }
 0x137   :  { %513 = vmatprep.subr.bf16.mxu0 %v2189_v14  ;;  %1719 = vmatprep.subr.bf16.mxu1 %v2077_v1 }
 0x13a   :  { %514 = vmatpush1.bf16.msra.mxu0 %v2202_v16  ;;  %1720 = vmatpush3.bf16.msra.mxu1 %v2247_v23 }
 0x13b   :  { %515 = vmatprep.subr.bf16.mxu0 %v2208_v17  ;;  %1721 = vmatprep.subr.bf16.mxu1 %v2077_v1 }
 0x13e   :  { %516 = vmatpush1.bf16.msra.mxu0 %v2221_v19  ;;  %1722 = vmatpush3.bf16.msra.mxu1 %v2256_v24 }
 0x13f   :  { %517 = vmatprep.subr.bf16.mxu0 %v2227_v20  ;;  %1723 = vmatprep.subr.bf16.mxu1 %v2077_v1 }
 0x142   :  { %518 = vmatpush1.bf16.msra.mxu0 %v2240_v22  ;;  %1724 = vmatpush3.bf16.msra.mxu1 %v2266_v26 }
 0x143   :  { %649 = vmatprep.subr.bf16.mxu0 %v2114_v0  ;;  %1729 = vmatprep.subr.bf16.mxu1 %v2077_v1 }
 0x1e5   :  { %v391_v60 = vpop.f32.mrf.mxu0  ;;  %v434_v61 = vpop.f32.mrf.mxu1 }
 0x1e6   :  { %v392_v63 = vadd.f32 %v391_v60, %v2309_v32  ;;  %v435_v58 = vadd.f32 %v434_v61, %v2320_v31 }
 0x1e7   :  { %v393_v25 = vpop.f32.mrf.mxu0  ;;  %v1707_v27 = vpop.f32.mrf.mxu1 }
 0x1e8   :  { %v443_v29 = vadd.f32 %v441_v59, %v392_v63  ;;  %v394_v43 = vadd.f32 %v393_v25, %v2316_v45  ;;  %v481_v59 = vunpack.c.l.bf16 %v1524_v57 }
 0x1e9   :  { %v395_v34 = vpop.f32.mrf.mxu0  ;;  %v437_v35 = vpop.f32.mrf.mxu1 }
 0x1ea   :  { %v1527_v36 = vmul.f32 -1.442695, %v443_v29  ;;  %v396_v37 = vadd.f32 %v395_v34, %v2309_v32  ;;  %v465_v47 = vadd.f32 %v463_v30, %v394_v43  ;;  %v438_v29 = vadd.f32 %v437_v35, %v2320_v31 }
 0x1eb   :  { %v1708_v38 = vpop.f32.mrf.mxu1  ;;  %v397_v28 = vpop.f32.mrf.mxu0 }
 0x1ec   :  { %1913 = vpow2.f32 %v1527_v36  ;;  %v444_v39 = vadd.f32 %v442_v33, %v396_v37  ;;  %v398_v44 = vadd.f32 %v397_v28, %v2316_v45  ;;  %v1529_v50 = vmul.f32 -1.442695, %v465_v47 }
 0x1ed   :  { %v482_v33 = vunpack.c.h.bf16 %v1524_v57 }
 0x1ee   :  { %v1528_v41 = vmul.f32 -1.442695, %v444_v39  ;;  %v466_v48 = vadd.f32 %v464_v46, %v398_v44 }
 0x1f0   :  { %1915 = vpow2.f32 %v1528_v41  ;;  %v1530_v52 = vmul.f32 -1.442695, %v466_v48 }
 0x1f9   :  { %v1914_v49 = vpop.eup %1913 }
 0x1fa   :  { %v451_v51 = vadd.f32 1.0, %v1914_v49 }
 0x1fc   :  { %1917 = vrcp.f32 %v451_v51 }
 0x1fd   :  { %v1916_v53 = vpop.eup %1915  ;;  %1919 = vpow2.f32 %v1529_v50  ;;  %v1533_v50 = vld [vmem:[%s2861_s0 + $0x3c] sm:$0xff] }
 0x1fe   :  { %v452_v54 = vadd.f32 1.0, %v1916_v53  ;;  %1921 = vpow2.f32 %v1530_v52  ;;  %v588_v57 = vunpack.c.l.bf16 %v1533_v50 }
 0x200   :  { %1923 = vrcp.f32 %v452_v54 }
 0x209   :  { %v1918_v60 = vpop.eup %1917 }
 0x20a   :  { %v1920_v62 = vpop.eup %1919  ;;  %v479_v63 = vmul.f32 %v1918_v60, %v435_v58 }
 0x20b   :  { %v1922_v25 = vpop.eup %1921  ;;  %v473_v36 = vadd.f32 1.0, %v1920_v62 }
 0x20c   :  { %v483_v27 = vadd.f32 %v481_v59, %v479_v63  ;;  %v474_v39 = vadd.f32 1.0, %v1922_v25 }
 0x20d   :  { %v1924_v34 = vpop.eup %1923 }
 0x20e   :  { %1925 = vtanh.f32 %v483_v27  ;;  %v480_v37 = vmul.f32 %v1924_v34, %v438_v29 }
 0x20f   :  { %1927 = vrcp.f32 %v473_v36 }
 0x210   :  { %v484_v38 = vadd.f32 %v482_v33, %v480_v37  ;;  %v606_v33 = vrot.slane %v1533_v50, 4 }
 0x212   :  { %1929 = vtanh.f32 %v484_v38 }
 0x213   :  { %1931 = vrcp.f32 %v474_v39  ;;  %v610_v39 = vunpack.c.l.bf16 %v606_v33 }
 0x21b   :  { %v1926_v40 = vpop.eup %1925 }
 0x21c   :  { %v487_v61 = vsub.f32 %v2327_v55, %v1926_v40  ;;  %v1928_v41 = vpop.eup %1927  ;;  %v1531_v55 = vld [vmem:[%s2861_s0 + $0x30] sm:$0xff] }
 0x21d   :  { %v605_v27 = vrot.slane %v1531_v55, 4 }
 0x21e   :  { %v489_v43 = vmul.f32 %v1928_v41, %v487_v61 }
 0x21f   :  { %v1930_v42 = vpop.eup %1929  ;;  %v609_v37 = vunpack.c.l.bf16 %v605_v27 }
 0x220   :  { %v488_v28 = vsub.f32 %v2329_v56, %v1930_v42  ;;  %v1932_v30 = vpop.eup %1931  ;;  %v2385_v44 = vadd.f32 %v1926_v40, %v489_v43  ;;  %v587_v56 = vunpack.c.l.bf16 %v1531_v55 }
 0x222   :  { %v490_v35 = vmul.f32 %v1932_v30, %v488_v28 }
 0x224   :  { %v2387_v46 = vadd.f32 %v1930_v42, %v490_v35 }
 0x226   :  { %v502_v47 = vpack.c.bf16 %v2387_v46, %v2385_v44 }
 0x228   :  { %536 = vmatmul.mubr.bf16.vlgmr.msra.gmra.mxu0 %v502_v47  ;;  %1726 = vmatmul.mubr.bf16.vlgmr.msra.gmra.mxu1 %v502_v47  ;;  %v1532_v47 = vld [vmem:[%s2861_s0 + $0x38] ss:$12 sps:$4 sm:$0xff]  }
 0x229   :  { %650 = vmatpush1.bf16.msra.mxu0 %v2121_v3  ;;  %1730 = vmatpush3.bf16.msra.mxu1 %v2164_v10 }
 0x22a   :  { %651 = vmatprep.subr.bf16.mxu0 %v2129_v4  ;;  %1731 = vmatprep.subr.bf16.mxu1 %v2077_v1 }
 0x22b   :  { %681 = vmatprep.mubr.bf16.mxu0 %v2078_v2  ;;  %1745 = vmatprep.mubr.msk.bf16.mxu1 %vm2079_vm0, %v2077_v1 }
 0x22d   :  { %652 = vmatpush1.bf16.msra.mxu0 %v2135_v5  ;;  %1732 = vmatpush3.bf16.msra.mxu1 %v2176_v12 }
 0x22e   :  { %653 = vmatprep.subr.bf16.mxu0 %v2141_v6  ;;  %1733 = vmatprep.subr.bf16.mxu1 %v2077_v1 }
 0x231   :  { %654 = vmatpush1.bf16.msra.mxu0 %v2147_v7  ;;  %1734 = vmatpush3.bf16.msra.mxu1 %v2195_v15 }
 0x232   :  { %655 = vmatprep.subr.bf16.mxu0 %v2153_v8  ;;  %1735 = vmatprep.subr.bf16.mxu1 %v2077_v1 }
 0x235   :  { %656 = vmatpush1.bf16.msra.mxu0 %v2158_v9  ;;  %1736 = vmatpush3.bf16.msra.mxu1 %v2214_v18 }
 0x236   :  { %657 = vmatprep.subr.bf16.mxu0 %v2170_v11  ;;  %1737 = vmatprep.subr.bf16.mxu1 %v2077_v1 }
 0x239   :  { %658 = vmatpush1.bf16.msra.mxu0 %v2183_v13  ;;  %1738 = vmatpush3.bf16.msra.mxu1 %v2233_v21 }
 0x23a   :  { %659 = vmatprep.subr.bf16.mxu0 %v2189_v14  ;;  %1739 = vmatprep.subr.bf16.mxu1 %v2077_v1 }
 0x23d   :  { %660 = vmatpush1.bf16.msra.mxu0 %v2202_v16  ;;  %1740 = vmatpush3.bf16.msra.mxu1 %v2247_v23 }
 0x23e   :  { %661 = vmatprep.subr.bf16.mxu0 %v2208_v17  ;;  %1741 = vmatprep.subr.bf16.mxu1 %v2077_v1 }
 0x241   :  { %662 = vmatpush1.bf16.msra.mxu0 %v2221_v19  ;;  %1742 = vmatpush3.bf16.msra.mxu1 %v2256_v24 }
 0x242   :  { %663 = vmatprep.subr.bf16.mxu0 %v2227_v20  ;;  %1743 = vmatprep.subr.bf16.mxu1 %v2077_v1 }
 0x245   :  { %664 = vmatpush1.bf16.msra.mxu0 %v2240_v22  ;;  %1744 = vmatpush3.bf16.msra.mxu1 %v2266_v26 }
 0x246   :  { %795 = vmatprep.subr.bf16.mxu0 %v2114_v0  ;;  %1749 = vmatprep.subr.bf16.mxu1 %v2077_v1 }
 0x2e8   :  { %v537_v48 = vpop.f32.mrf.mxu0  ;;  %v580_v49 = vpop.f32.mrf.mxu1 }
 0x2e9   :  { %v538_v51 = vadd.f32 %v537_v48, %v2309_v32  ;;  %v581_v55 = vadd.f32 %v580_v49, %v2320_v31 }
 0x2ea   :  { %v539_v52 = vpop.f32.mrf.mxu0  ;;  %v1727_v53 = vpop.f32.mrf.mxu1 }
 0x2eb   :  { %v589_v54 = vadd.f32 %v587_v56, %v538_v51  ;;  %v540_v36 = vadd.f32 %v539_v52, %v2316_v45  ;;  %v627_v56 = vunpack.c.l.bf16 %v1532_v47 }
 0x2ec   :  { %v541_v58 = vpop.f32.mrf.mxu0  ;;  %v583_v59 = vpop.f32.mrf.mxu1 }
 0x2ed   :  { %v1535_v60 = vmul.f32 -1.442695, %v589_v54  ;;  %v542_v62 = vadd.f32 %v541_v58, %v2309_v32  ;;  %v611_v40 = vadd.f32 %v609_v37, %v540_v36  ;;  %v584_v54 = vadd.f32 %v583_v59, %v2320_v31 }
 0x2ee   :  { %v1728_v63 = vpop.f32.mrf.mxu1  ;;  %v543_v34 = vpop.f32.mrf.mxu0 }
 0x2ef   :  { %1933 = vpow2.f32 %v1535_v60  ;;  %v590_v25 = vadd.f32 %v588_v57, %v542_v62  ;;  %v544_v38 = vadd.f32 %v543_v34, %v2316_v45  ;;  %v1537_v42 = vmul.f32 -1.442695, %v611_v40 }
 0x2f0   :  { %v628_v57 = vunpack.c.h.bf16 %v1532_v47 }
 0x2f1   :  { %v1536_v29 = vmul.f32 -1.442695, %v590_v25  ;;  %v612_v61 = vadd.f32 %v610_v39, %v544_v38 }
 0x2f3   :  { %1935 = vpow2.f32 %v1536_v29  ;;  %v1538_v43 = vmul.f32 -1.442695, %v612_v61 }
 0x2fc   :  { %v1934_v41 = vpop.eup %1933 }
 0x2fd   :  { %v597_v28 = vadd.f32 1.0, %v1934_v41 }
 0x2ff   :  { %1937 = vrcp.f32 %v597_v28 }
 0x300   :  { %v1936_v30 = vpop.eup %1935  ;;  %1939 = vpow2.f32 %v1537_v42 }
 0x301   :  { %v598_v35 = vadd.f32 1.0, %v1936_v30  ;;  %1941 = vpow2.f32 %v1538_v43 }
 0x303   :  { %1943 = vrcp.f32 %v598_v35 }
 0x30c   :  { %v1938_v48 = vpop.eup %1937 }
 0x30d   :  { %v1940_v50 = vpop.eup %1939  ;;  %v625_v51 = vmul.f32 %v1938_v48, %v581_v55 }
 0x30e   :  { %v1942_v52 = vpop.eup %1941  ;;  %v619_v60 = vadd.f32 1.0, %v1940_v50 }
 0x30f   :  { %v629_v53 = vadd.f32 %v627_v56, %v625_v51  ;;  %v620_v25 = vadd.f32 1.0, %v1942_v52 }
 0x310   :  { %v1944_v58 = vpop.eup %1943 }
 0x311   :  { %1945 = vtanh.f32 %v629_v53  ;;  %v626_v62 = vmul.f32 %v1944_v58, %v584_v54 }
 0x312   :  { %1947 = vrcp.f32 %v619_v60 }
 0x313   :  { %v630_v63 = vadd.f32 %v628_v57, %v626_v62 }
 0x315   :  { %1949 = vtanh.f32 %v630_v63 }
 0x316   :  { %1951 = vrcp.f32 %v620_v25 }
 0x31e   :  { %v1946_v27 = vpop.eup %1945 }
 0x31f   :  { %v633_v49 = vsub.f32 %v2385_v44, %v1946_v27  ;;  %v1948_v29 = vpop.eup %1947  ;;  %v1541_v44 = vld [vmem:[%s2861_s0 + $0x54] sm:$0xff] }
 0x320   :  { %v734_v28 = vunpack.c.l.bf16 %v1541_v44  ;;  %v752_v50 = vrot.slane %v1541_v44, 4 }
 0x321   :  { %v635_v36 = vmul.f32 %v1948_v29, %v633_v49 }
 0x322   :  { %v1950_v33 = vpop.eup %1949  ;;  %v756_v57 = vunpack.c.l.bf16 %v752_v50 }
 0x323   :  { %v634_v34 = vsub.f32 %v2387_v46, %v1950_v33  ;;  %v1952_v37 = vpop.eup %1951  ;;  %v2443_v38 = vadd.f32 %v1946_v27, %v635_v36 }
 0x325   :  { %v636_v59 = vmul.f32 %v1952_v37, %v634_v34 }
 0x327   :  { %v2445_v39 = vadd.f32 %v1950_v33, %v636_v59  ;;  %v1540_v33 = vld [vmem:[%s2861_s0 + $0x50] ss:$12 sps:$4 sm:$0xff]  }
 0x328   :  { %v773_v36 = vunpack.c.l.bf16 %v1540_v33  ;;  %v774_v44 = vunpack.c.h.bf16 %v1540_v33 }
 0x329   :  { %v648_v40 = vpack.c.bf16 %v2445_v39, %v2443_v38 }
 0x32b   :  { %682 = vmatmul.mubr.bf16.vlgmr.msra.gmra.mxu0 %v648_v40  ;;  %1746 = vmatmul.mubr.bf16.vlgmr.msra.gmra.mxu1 %v648_v40 }
 0x32c   :  { %796 = vmatpush1.bf16.msra.mxu0 %v2121_v3  ;;  %1750 = vmatpush3.bf16.msra.mxu1 %v2164_v10  ;;  %v1539_v3 = vld [vmem:[%s2861_s0 + $0x48] sm:$0xff] }
 0x32d   :  { %797 = vmatprep.subr.bf16.mxu0 %v2129_v4  ;;  %1751 = vmatprep.subr.bf16.mxu1 %v2077_v1  ;;  %v733_v4 = vunpack.c.l.bf16 %v1539_v3  ;;  %v751_v56 = vrot.slane %v1539_v3, 4 }
 0x32e   :  { %827 = vmatprep.mubr.bf16.mxu0 %v2078_v2  ;;  %1765 = vmatprep.mubr.msk.bf16.mxu1 %vm2079_vm0, %v2077_v1 }
 0x32f   :  { %v755_v53 = vunpack.c.l.bf16 %v751_v56 }
 0x330   :  { %798 = vmatpush1.bf16.msra.mxu0 %v2135_v5  ;;  %1752 = vmatpush3.bf16.msra.mxu1 %v2176_v12 }
 0x331   :  { %799 = vmatprep.subr.bf16.mxu0 %v2141_v6  ;;  %1753 = vmatprep.subr.bf16.mxu1 %v2077_v1 }
 0x334   :  { %800 = vmatpush1.bf16.msra.mxu0 %v2147_v7  ;;  %1754 = vmatpush3.bf16.msra.mxu1 %v2195_v15 }
 0x335   :  { %801 = vmatprep.subr.bf16.mxu0 %v2153_v8  ;;  %1755 = vmatprep.subr.bf16.mxu1 %v2077_v1 }
 0x338   :  { %802 = vmatpush1.bf16.msra.mxu0 %v2158_v9  ;;  %1756 = vmatpush3.bf16.msra.mxu1 %v2214_v18 }
 0x339   :  { %803 = vmatprep.subr.bf16.mxu0 %v2170_v11  ;;  %1757 = vmatprep.subr.bf16.mxu1 %v2077_v1 }
 0x33c   :  { %804 = vmatpush1.bf16.msra.mxu0 %v2183_v13  ;;  %1758 = vmatpush3.bf16.msra.mxu1 %v2233_v21 }
 0x33d   :  { %805 = vmatprep.subr.bf16.mxu0 %v2189_v14  ;;  %1759 = vmatprep.subr.bf16.mxu1 %v2077_v1 }
 0x340   :  { %806 = vmatpush1.bf16.msra.mxu0 %v2202_v16  ;;  %1760 = vmatpush3.bf16.msra.mxu1 %v2247_v23 }
 0x341   :  { %807 = vmatprep.subr.bf16.mxu0 %v2208_v17  ;;  %1761 = vmatprep.subr.bf16.mxu1 %v2077_v1 }
 0x344   :  { %808 = vmatpush1.bf16.msra.mxu0 %v2221_v19  ;;  %1762 = vmatpush3.bf16.msra.mxu1 %v2256_v24 }
 0x345   :  { %809 = vmatprep.subr.bf16.mxu0 %v2227_v20  ;;  %1763 = vmatprep.subr.bf16.mxu1 %v2077_v1 }
 0x348   :  { %810 = vmatpush1.bf16.msra.mxu0 %v2240_v22  ;;  %1764 = vmatpush3.bf16.msra.mxu1 %v2266_v26 }
 0x349   :  { %941 = vmatprep.subr.bf16.mxu0 %v2114_v0  ;;  %1769 = vmatprep.subr.bf16.mxu1 %v2077_v1 }
 0x3eb   :  { %v683_v5 = vpop.f32.mrf.mxu0  ;;  %v726_v6 = vpop.f32.mrf.mxu1 }
 0x3ec   :  { %v684_v46 = vadd.f32 %v683_v5, %v2309_v32  ;;  %v727_v34 = vadd.f32 %v726_v6, %v2320_v31 }
 0x3ed   :  { %v685_v61 = vpop.f32.mrf.mxu0  ;;  %v1747_v41 = vpop.f32.mrf.mxu1 }
 0x3ee   :  { %v735_v42 = vadd.f32 %v733_v4, %v684_v46  ;;  %v686_v52 = vadd.f32 %v685_v61, %v2316_v45 }
 0x3ef   :  { %v687_v0 = vpop.f32.mrf.mxu0  ;;  %v729_v43 = vpop.f32.mrf.mxu1 }
 0x3f0   :  { %v1543_v30 = vmul.f32 -1.442695, %v735_v42  ;;  %v688_v35 = vadd.f32 %v687_v0, %v2309_v32  ;;  %v757_v58 = vadd.f32 %v755_v53, %v686_v52  ;;  %v730_v5 = vadd.f32 %v729_v43, %v2320_v31  ;;  %v2527_v52 = vld [vmem:[%s2859_s1 + $0x90] ss:$12 sps:$4 sm:$0xff]  }
 0x3f1   :  { %v1748_v47 = vpop.f32.mrf.mxu1  ;;  %v689_v51 = vpop.f32.mrf.mxu0 }
 0x3f2   :  { %1953 = vpow2.f32 %v1543_v30  ;;  %v736_v55 = vadd.f32 %v734_v28, %v688_v35  ;;  %v690_v54 = vadd.f32 %v689_v51, %v2316_v45  ;;  %v1545_v63 = vmul.f32 -1.442695, %v757_v58 }
 0x3f4   :  { %v1544_v48 = vmul.f32 -1.442695, %v736_v55  ;;  %v758_v60 = vadd.f32 %v756_v57, %v690_v54 }
 0x3f6   :  { %1955 = vpow2.f32 %v1544_v48  ;;  %v1546_v27 = vmul.f32 -1.442695, %v758_v60 }
 0x3ff   :  { %v1954_v62 = vpop.eup %1953 }
 0x400   :  { %v743_v25 = vadd.f32 1.0, %v1954_v62 }
 0x402   :  { %1957 = vrcp.f32 %v743_v25 }
 0x403   :  { %v1956_v49 = vpop.eup %1955  ;;  %1959 = vpow2.f32 %v1545_v63 }
 0x404   :  { %v744_v29 = vadd.f32 1.0, %v1956_v49  ;;  %1961 = vpow2.f32 %v1546_v27 }
 0x406   :  { %1963 = vrcp.f32 %v744_v29 }
 0x40f   :  { %v1958_v37 = vpop.eup %1957 }
 0x410   :  { %v1960_v59 = vpop.eup %1959  ;;  %v771_v40 = vmul.f32 %v1958_v37, %v727_v34 }
 0x411   :  { %v1962_v3 = vpop.eup %1961  ;;  %v765_v61 = vadd.f32 1.0, %v1960_v59  ;;  %v1548_v59 = vld [vmem:[%s2861_s0 + $0x68] ss:$12 sps:$4 sm:$0xff]  }
 0x412   :  { %v775_v4 = vadd.f32 %v773_v36, %v771_v40  ;;  %v766_v28 = vadd.f32 1.0, %v1962_v3  ;;  %v919_v3 = vunpack.c.l.bf16 %v1548_v59 }
 0x413   :  { %v1964_v46 = vpop.eup %1963 }
 0x414   :  { %1965 = vtanh.f32 %v775_v4  ;;  %v772_v41 = vmul.f32 %v1964_v46, %v730_v5 }
 0x415   :  { %1967 = vrcp.f32 %v765_v61 }
 0x416   :  { %v776_v42 = vadd.f32 %v774_v44, %v772_v41 }
 0x418   :  { %1969 = vtanh.f32 %v776_v42  ;;  %v920_v42 = vunpack.c.h.bf16 %v1548_v59 }
 0x419   :  { %1971 = vrcp.f32 %v766_v28 }
 0x421   :  { %v1966_v0 = vpop.eup %1965 }
 0x422   :  { %v779_v6 = vsub.f32 %v2443_v38, %v1966_v0  ;;  %v1968_v30 = vpop.eup %1967  ;;  %v2510_v38 = vld [vmem:[%s2859_s1 + $0xa8] ss:$12 sps:$4 sm:$0xff]  }
 0x424   :  { %v781_v55 = vmul.f32 %v1968_v30, %v779_v6 }
 0x425   :  { %v1970_v35 = vpop.eup %1969 }
 0x426   :  { %v780_v47 = vsub.f32 %v2445_v39, %v1970_v35  ;;  %v1972_v56 = vpop.eup %1971  ;;  %v2501_v48 = vadd.f32 %v1966_v0, %v781_v55  ;;  %v2517_v39 = vld [vmem:[%s2859_s1 + $0x94] ss:$12 sps:$4 sm:$0xff]  }
 0x428   :  { %v782_v43 = vmul.f32 %v1972_v56, %v780_v47 }
 0x42a   :  { %v2503_v50 = vadd.f32 %v1970_v35, %v782_v43 }
 0x42c   :  { %v794_v51 = vpack.c.bf16 %v2503_v50, %v2501_v48 }
 0x42e   :  { %828 = vmatmul.mubr.bf16.vlgmr.msra.gmra.mxu0 %v794_v51  ;;  %1766 = vmatmul.mubr.bf16.vlgmr.msra.gmra.mxu1 %v794_v51 }
 0x42f   :  { %942 = vmatpush1.bf16.msra.mxu0 %v2510_v38  ;;  %1770 = vmatpush3.bf16.msra.mxu1 %v2164_v10  ;;  %v2534_v10 = vld [vmem:[%s2859_s1 + $0x7c] ss:$12 sps:$4 sm:$0xff]  }
 0x430   :  { %943 = vmatprep.subr.bf16.mxu0 %v2517_v39  ;;  %1771 = vmatprep.subr.bf16.mxu1 %v2077_v1 }
 0x431   :  { %973 = vmatprep.mubr.bf16.mxu0 %v2078_v2  ;;  %1785 = vmatprep.mubr.msk.bf16.mxu1 %vm2079_vm0, %v2077_v1 }
 0x433   :  { %944 = vmatpush1.bf16.msra.mxu0 %v2527_v52  ;;  %1772 = vmatpush3.bf16.msra.mxu1 %v2176_v12 }
 0x434   :  { %945 = vmatprep.subr.bf16.mxu0 %v2534_v10  ;;  %1773 = vmatprep.subr.bf16.mxu1 %v2077_v1 }
 0x437   :  { %946 = vmatpush1.bf16.msra.mxu0 %v2147_v7  ;;  %1774 = vmatpush3.bf16.msra.mxu1 %v2195_v15  ;;  %v2563_v7 = vld [vmem:[%s2859_s1 + $0xac] ss:$12 sps:$4 sm:$0xff]  }
 0x438   :  { %947 = vmatprep.subr.bf16.mxu0 %v2153_v8  ;;  %1775 = vmatprep.subr.bf16.mxu1 %v2077_v1  ;;  %v1547_v8 = vld [vmem:[%s2861_s0 + $0x60] sm:$0xff] }
 0x43b   :  { %948 = vmatpush1.bf16.msra.mxu0 %v2158_v9  ;;  %1776 = vmatpush3.bf16.msra.mxu1 %v2214_v18  ;;  %v879_v9 = vunpack.c.l.bf16 %v1547_v8 }
 0x43c   :  { %949 = vmatprep.subr.bf16.mxu0 %v2170_v11  ;;  %1777 = vmatprep.subr.bf16.mxu1 %v2077_v1 }
 0x43f   :  { %950 = vmatpush1.bf16.msra.mxu0 %v2183_v13  ;;  %1778 = vmatpush3.bf16.msra.mxu1 %v2233_v21  ;;  %v1549_v13 = vld [vmem:[%s2861_s0 + $0x6c] sm:$0xff] }
 0x440   :  { %951 = vmatprep.subr.bf16.mxu0 %v2189_v14  ;;  %1779 = vmatprep.subr.bf16.mxu1 %v2077_v1  ;;  %v880_v18 = vunpack.c.l.bf16 %v1549_v13  ;;  %v898_v54 = vrot.slane %v1549_v13, 4 }
 0x442   :  { %v902_v63 = vunpack.c.l.bf16 %v898_v54  ;;  %v2690_v54 = vld [vmem:[%s2859_s1 + $0x18] ss:$12 sps:$4 sm:$0xff]  }
 0x443   :  { %952 = vmatpush1.bf16.msra.mxu0 %v2202_v16  ;;  %1780 = vmatpush3.bf16.msra.mxu1 %v2247_v23 }
 0x444   :  { %953 = vmatprep.subr.bf16.mxu0 %v2208_v17  ;;  %1781 = vmatprep.subr.bf16.mxu1 %v2077_v1 }
 0x447   :  { %954 = vmatpush1.bf16.msra.mxu0 %v2221_v19  ;;  %1782 = vmatpush3.bf16.msra.mxu1 %v2256_v24 }
 0x448   :  { %955 = vmatprep.subr.bf16.mxu0 %v2227_v20  ;;  %1783 = vmatprep.subr.bf16.mxu1 %v2077_v1 }
 0x44b   :  { %956 = vmatpush1.bf16.msra.mxu0 %v2240_v22  ;;  %1784 = vmatpush3.bf16.msra.mxu1 %v2266_v26  ;;  %v897_v26 = vrot.slane %v1547_v8, 4 }
 0x44c   :  { %1087 = vmatprep.subr.bf16.mxu0 %v2563_v7  ;;  %1789 = vmatprep.subr.bf16.mxu1 %v2077_v1 }
 0x44d   :  { %v901_v60 = vunpack.c.l.bf16 %v897_v26  ;;  %v2677_v26 = vld [vmem:[%s2859_s1 + $0x38] ss:$12 sps:$4 sm:$0xff]  }
 0x4ee   :  { %v829_v11 = vpop.f32.mrf.mxu0  ;;  %v872_v12 = vpop.f32.mrf.mxu1 }
 0x4ef   :  { %v830_v14 = vadd.f32 %v829_v11, %v2309_v32  ;;  %v873_v40 = vadd.f32 %v872_v12, %v2320_v31 }
 0x4f0   :  { %v831_v15 = vpop.f32.mrf.mxu0  ;;  %v1767_v16 = vpop.f32.mrf.mxu1 }
 0x4f1   :  { %v881_v17 = vadd.f32 %v879_v9, %v830_v14  ;;  %v832_v58 = vadd.f32 %v831_v15, %v2316_v45  ;;  %v2614_v15 = vld [vmem:[%s2859_s1 + $0x78] ss:$12 sps:$4 sm:$0xff]   ;;  %v2620_v16 = vld [vmem:[%s2859_s1 + $0x80] ss:$12 sps:$4 sm:$0xff]  }
 0x4f2   :  { %v833_v19 = vpop.f32.mrf.mxu0  ;;  %v875_v20 = vpop.f32.mrf.mxu1 }
 0x4f3   :  { %v1551_v21 = vmul.f32 -1.442695, %v881_v17  ;;  %v834_v22 = vadd.f32 %v833_v19, %v2309_v32  ;;  %v903_v25 = vadd.f32 %v901_v60, %v832_v58  ;;  %v876_v41 = vadd.f32 %v875_v20, %v2320_v31  ;;  %v2626_v17 = vld [vmem:[%s2859_s1 + $0x64] ss:$12 sps:$4 sm:$0xff]   ;;  %v2639_v19 = vld [vmem:[%s2859_s1 + $0x68] ss:$12 sps:$4 sm:$0xff]  }
 0x4f4   :  { %v1768_v23 = vpop.f32.mrf.mxu1  ;;  %v835_v57 = vpop.f32.mrf.mxu0  ;;  %v2645_v20 = vld [vmem:[%s2859_s1 + $0x4c] ss:$12 sps:$4 sm:$0xff]   ;;  %v2702_v58 = vld [vmem:[%s2859_s1 + $0x4] ss:$12 sps:$4 sm:$0xff]  }
 0x4f5   :  { %1973 = vpow2.f32 %v1551_v21  ;;  %v882_v24 = vadd.f32 %v880_v18, %v834_v22  ;;  %v836_v62 = vadd.f32 %v835_v57, %v2316_v45  ;;  %v1553_v29 = vmul.f32 -1.442695, %v903_v25  ;;  %v2633_v18 = vld [vmem:[%s2859_s1 + $0x60] ss:$12 sps:$4 sm:$0xff]   ;;  %v2652_v21 = vld [vmem:[%s2859_s1 + $0x48] ss:$12 sps:$4 sm:$0xff]  }
 0x4f6   :  { %v2658_v22 = vld [vmem:[%s2859_s1 + $0x50] ss:$12 sps:$4 sm:$0xff]   ;;  %v2664_v23 = vld [vmem:[%s2859_s1 + $0x34] ss:$12 sps:$4 sm:$0xff]  }
 0x4f7   :  { %v1552_v53 = vmul.f32 -1.442695, %v882_v24  ;;  %v904_v27 = vadd.f32 %v902_v63, %v836_v62  ;;  %v2671_v24 = vld [vmem:[%s2859_s1 + $0x30] ss:$12 sps:$4 sm:$0xff]   ;;  %v2696_v57 = vld [vmem:[%s2859_s1 + $0x20] ss:$12 sps:$4 sm:$0xff]  }
 0x4f8   :  { %v2709_v60 = vld [vmem:[%s2859_s1] ss:$12 sps:$4 sm:$0xff]   ;;  %v2715_v62 = vld [vmem:[%s2859_s1 + $0x8] ss:$12 sps:$4 sm:$0xff]   ;;  %v1555_v63 = vld [vmem:[%s2861_s0 + $0x78] sm:$0xff] }
 0x4f9   :  { %1975 = vpow2.f32 %v1552_v53  ;;  %v1554_v34 = vmul.f32 -1.442695, %v904_v27  ;;  %v2683_v53 = vld [vmem:[%s2859_s1 + $0x1c] ss:$12 sps:$4 sm:$0xff]   ;;  %v1025_v25 = vunpack.c.l.bf16 %v1555_v63 }
 0x502   :  { %v1974_v49 = vpop.eup %1973 }
 0x503   :  { %v889_v33 = vadd.f32 1.0, %v1974_v49 }
 0x505   :  { %1977 = vrcp.f32 %v889_v33 }
 0x506   :  { %v1976_v36 = vpop.eup %1975  ;;  %1979 = vpow2.f32 %v1553_v29  ;;  %v1557_v29 = vld [vmem:[%s2861_s0 + $0x84] sm:$0xff] }
 0x507   :  { %v890_v37 = vadd.f32 1.0, %v1976_v36  ;;  %1981 = vpow2.f32 %v1554_v34  ;;  %v1026_v59 = vunpack.c.l.bf16 %v1557_v29 }
 0x509   :  { %1983 = vrcp.f32 %v890_v37 }
 0x512   :  { %v1978_v4 = vpop.eup %1977 }
 0x513   :  { %v1980_v5 = vpop.eup %1979  ;;  %v917_v44 = vmul.f32 %v1978_v4, %v873_v40 }
 0x514   :  { %v1982_v46 = vpop.eup %1981  ;;  %v911_v0 = vadd.f32 1.0, %v1980_v5 }
 0x515   :  { %v921_v61 = vadd.f32 %v919_v3, %v917_v44  ;;  %v912_v35 = vadd.f32 1.0, %v1982_v46  ;;  %v1043_v46 = vrot.slane %v1555_v63, 4 }
 0x516   :  { %v1984_v28 = vpop.eup %1983 }
 0x517   :  { %1985 = vtanh.f32 %v921_v61  ;;  %v918_v6 = vmul.f32 %v1984_v28, %v876_v41  ;;  %v1044_v41 = vrot.slane %v1557_v29, 4 }
 0x518   :  { %1987 = vrcp.f32 %v911_v0  ;;  %v1047_v0 = vunpack.c.l.bf16 %v1043_v46 }
 0x519   :  { %v922_v30 = vadd.f32 %v920_v42, %v918_v6 }
 0x51b   :  { %1989 = vtanh.f32 %v922_v30  ;;  %v1048_v30 = vunpack.c.l.bf16 %v1044_v41 }
 0x51c   :  { %1991 = vrcp.f32 %v912_v35 }
 0x524   :  { %v1986_v47 = vpop.eup %1985 }
 0x525   :  { %v925_v55 = vsub.f32 %v2501_v48, %v1986_v47  ;;  %v1988_v56 = vpop.eup %1987  ;;  %v2594_v48 = vld [vmem:[%s2859_s1 + $0xb0] ss:$12 sps:$4 sm:$0xff]  }
 0x527   :  { %v927_v8 = vmul.f32 %v1988_v56, %v925_v55 }
 0x528   :  { %v1990_v43 = vpop.eup %1989 }
 0x529   :  { %v926_v51 = vsub.f32 %v2503_v50, %v1990_v43  ;;  %v1992_v9 = vpop.eup %1991  ;;  %v2584_v12 = vadd.f32 %v1986_v47, %v927_v8  ;;  %v2606_v50 = vld [vmem:[%s2859_s1 + $0x98] ss:$12 sps:$4 sm:$0xff]  }
 0x52b   :  { %v928_v11 = vmul.f32 %v1992_v9, %v926_v51 }
 0x52d   :  { %v2586_v13 = vadd.f32 %v1990_v43, %v928_v11  ;;  %v1556_v11 = vld [vmem:[%s2861_s0 + $0x80] ss:$12 sps:$4 sm:$0xff]  }
 0x52e   :  { %v1065_v63 = vunpack.c.l.bf16 %v1556_v11 }
 0x52f   :  { %v940_v14 = vpack.c.bf16 %v2586_v13, %v2584_v12 }
 0x531   :  { %974 = vmatmul.mubr.bf16.vlgmr.msra.gmra.mxu0 %v940_v14  ;;  %1786 = vmatmul.mubr.bf16.vlgmr.msra.gmra.mxu1 %v940_v14 }
 0x532   :  { %1088 = vmatpush1.bf16.msra.mxu0 %v2510_v38  ;;  %1790 = vmatpush3.bf16.msra.mxu1 %v2594_v48 }
 0x533   :  { %1089 = vmatprep.subr.bf16.mxu0 %v2517_v39  ;;  %1791 = vmatprep.subr.bf16.mxu1 %v2077_v1 }
 0x534   :  { %1119 = vmatprep.mubr.bf16.mxu0 %v2078_v2  ;;  %1805 = vmatprep.mubr.msk.bf16.mxu1 %vm2079_vm0, %v2077_v1 }
 0x536   :  { %1090 = vmatpush1.bf16.msra.mxu0 %v2527_v52  ;;  %1792 = vmatpush3.bf16.msra.mxu1 %v2606_v50 }
 0x537   :  { %1091 = vmatprep.subr.bf16.mxu0 %v2534_v10  ;;  %1793 = vmatprep.subr.bf16.mxu1 %v2077_v1 }
 0x53a   :  { %1092 = vmatpush1.bf16.msra.mxu0 %v2614_v15  ;;  %1794 = vmatpush3.bf16.msra.mxu1 %v2620_v16 }
 0x53b   :  { %1093 = vmatprep.subr.bf16.mxu0 %v2626_v17  ;;  %1795 = vmatprep.subr.bf16.mxu1 %v2077_v1 }
 0x53e   :  { %1094 = vmatpush1.bf16.msra.mxu0 %v2633_v18  ;;  %1796 = vmatpush3.bf16.msra.mxu1 %v2639_v19 }
 0x53f   :  { %1095 = vmatprep.subr.bf16.mxu0 %v2645_v20  ;;  %1797 = vmatprep.subr.bf16.mxu1 %v2077_v1 }
 0x542   :  { %1096 = vmatpush1.bf16.msra.mxu0 %v2652_v21  ;;  %1798 = vmatpush3.bf16.msra.mxu1 %v2658_v22 }
 0x543   :  { %1097 = vmatprep.subr.bf16.mxu0 %v2664_v23  ;;  %1799 = vmatprep.subr.bf16.mxu1 %v2077_v1 }
 0x546   :  { %1098 = vmatpush1.bf16.msra.mxu0 %v2671_v24  ;;  %1800 = vmatpush3.bf16.msra.mxu1 %v2677_v26 }
 0x547   :  { %1099 = vmatprep.subr.bf16.mxu0 %v2683_v53  ;;  %1801 = vmatprep.subr.bf16.mxu1 %v2077_v1 }
 0x54a   :  { %1100 = vmatpush1.bf16.msra.mxu0 %v2690_v54  ;;  %1802 = vmatpush3.bf16.msra.mxu1 %v2696_v57 }
 0x54b   :  { %1101 = vmatprep.subr.bf16.mxu0 %v2702_v58  ;;  %1803 = vmatprep.subr.bf16.mxu1 %v2077_v1 }
 0x54e   :  { %1102 = vmatpush1.bf16.msra.mxu0 %v2709_v60  ;;  %1804 = vmatpush3.bf16.msra.mxu1 %v2715_v62 }
 0x54f   :  { %1233 = vmatprep.subr.bf16.mxu0 %v2563_v7  ;;  %1809 = vmatprep.subr.bf16.mxu1 %v2077_v1 }
 0x5f1   :  { %v975_v27 = vpop.f32.mrf.mxu0  ;;  %v1018_v49 = vpop.f32.mrf.mxu1 }
 0x5f2   :  { %v976_v33 = vadd.f32 %v975_v27, %v2309_v32  ;;  %v1019_v14 = vadd.f32 %v1018_v49, %v2320_v31 }
 0x5f3   :  { %v977_v34 = vpop.f32.mrf.mxu0  ;;  %v1787_v36 = vpop.f32.mrf.mxu1 }
 0x5f4   :  { %v1027_v37 = vadd.f32 %v1025_v25, %v976_v33  ;;  %v978_v28 = vadd.f32 %v977_v34, %v2316_v45 }
 0x5f5   :  { %v979_v7 = vpop.f32.mrf.mxu0  ;;  %v1021_v40 = vpop.f32.mrf.mxu1 }
 0x5f6   :  { %v1559_v3 = vmul.f32 -1.442695, %v1027_v37  ;;  %v980_v4 = vadd.f32 %v979_v7, %v2309_v32  ;;  %v1049_v35 = vadd.f32 %v1047_v0, %v978_v28  ;;  %v1022_v36 = vadd.f32 %v1021_v40, %v2320_v31 }
 0x5f7   :  { %v1788_v5 = vpop.f32.mrf.mxu1  ;;  %v981_v42 = vpop.f32.mrf.mxu0  ;;  %v1066_v37 = vunpack.c.h.bf16 %v1556_v11 }
 0x5f8   :  { %1993 = vpow2.f32 %v1559_v3  ;;  %v1028_v44 = vadd.f32 %v1026_v59, %v980_v4  ;;  %v982_v6 = vadd.f32 %v981_v42, %v2316_v45  ;;  %v1561_v56 = vmul.f32 -1.442695, %v1049_v35 }
 0x5fa   :  { %v1560_v61 = vmul.f32 -1.442695, %v1028_v44  ;;  %v1050_v47 = vadd.f32 %v1048_v30, %v982_v6 }
 0x5fc   :  { %1995 = vpow2.f32 %v1560_v61  ;;  %v1562_v51 = vmul.f32 -1.442695, %v1050_v47 }
 0x605   :  { %v1994_v55 = vpop.eup %1993 }
 0x606   :  { %v1035_v43 = vadd.f32 1.0, %v1994_v55 }
 0x608   :  { %1997 = vrcp.f32 %v1035_v43 }
 0x609   :  { %v1996_v8 = vpop.eup %1995  ;;  %1999 = vpow2.f32 %v1561_v56 }
 0x60a   :  { %v1036_v9 = vadd.f32 1.0, %v1996_v8  ;;  %2001 = vpow2.f32 %v1562_v51  ;;  %v1564_v8 = vld [vmem:[%s2861_s0 + $0x98] ss:$12 sps:$4 sm:$0xff]  }
 0x60b   :  { %v1211_v11 = vunpack.c.l.bf16 %v1564_v8 }
 0x60c   :  { %2003 = vrcp.f32 %v1036_v9 }
 0x615   :  { %v1998_v25 = vpop.eup %1997 }
 0x616   :  { %v2000_v27 = vpop.eup %1999  ;;  %v1063_v29 = vmul.f32 %v1998_v25, %v1019_v14 }
 0x617   :  { %v2002_v33 = vpop.eup %2001  ;;  %v1057_v7 = vadd.f32 1.0, %v2000_v27 }
 0x618   :  { %v1067_v34 = vadd.f32 %v1065_v63, %v1063_v29  ;;  %v1058_v5 = vadd.f32 1.0, %v2002_v33 }
 0x619   :  { %v2004_v59 = vpop.eup %2003 }
 0x61a   :  { %2005 = vtanh.f32 %v1067_v34  ;;  %v1064_v3 = vmul.f32 %v2004_v59, %v1022_v36  ;;  %v1212_v34 = vunpack.c.h.bf16 %v1564_v8 }
 0x61b   :  { %2007 = vrcp.f32 %v1057_v7 }
 0x61c   :  { %v1068_v4 = vadd.f32 %v1066_v37, %v1064_v3 }
 0x61e   :  { %2009 = vtanh.f32 %v1068_v4 }
 0x61f   :  { %2011 = vrcp.f32 %v1058_v5 }
 0x627   :  { %v2006_v44 = vpop.eup %2005 }
 0x628   :  { %v1071_v49 = vsub.f32 %v2584_v12, %v2006_v44  ;;  %v2008_v46 = vpop.eup %2007 }
 0x62a   :  { %v1073_v42 = vmul.f32 %v2008_v46, %v1071_v49 }
 0x62b   :  { %v2010_v61 = vpop.eup %2009 }
 0x62c   :  { %v1072_v41 = vsub.f32 %v2586_v13, %v2010_v61  ;;  %v2012_v28 = vpop.eup %2011  ;;  %v2737_v0 = vadd.f32 %v2006_v44, %v1073_v42 }
 0x62e   :  { %v1074_v40 = vmul.f32 %v2012_v28, %v1072_v41 }
 0x630   :  { %v2739_v6 = vadd.f32 %v2010_v61, %v1074_v40 }
 0x632   :  { %v1086_v30 = vpack.c.bf16 %v2739_v6, %v2737_v0 }
 0x634   :  { %1120 = vmatmul.mubr.bf16.vlgmr.msra.gmra.mxu0 %v1086_v30  ;;  %1806 = vmatmul.mubr.bf16.vlgmr.msra.gmra.mxu1 %v1086_v30 }
 0x635   :  { %1234 = vmatpush1.bf16.msra.mxu0 %v2510_v38  ;;  %1810 = vmatpush3.bf16.msra.mxu1 %v2594_v48 }
 0x636   :  { %1235 = vmatprep.subr.bf16.mxu0 %v2517_v39  ;;  %1811 = vmatprep.subr.bf16.mxu1 %v2077_v1 }
 0x637   :  { %1265 = vmatprep.mubr.bf16.mxu0 %v2078_v2  ;;  %1825 = vmatprep.mubr.msk.bf16.mxu1 %vm2079_vm0, %v2077_v1  ;;  %v1563_v2 = vld [vmem:[%s2861_s0 + $0x90] sm:$0xff] }
 0x638   :  { %v1171_v38 = vunpack.c.l.bf16 %v1563_v2 }
 0x639   :  { %1236 = vmatpush1.bf16.msra.mxu0 %v2527_v52  ;;  %1812 = vmatpush3.bf16.msra.mxu1 %v2606_v50 }
 0x63a   :  { %1237 = vmatprep.subr.bf16.mxu0 %v2534_v10  ;;  %1813 = vmatprep.subr.bf16.mxu1 %v2077_v1  ;;  %v1565_v10 = vld [vmem:[%s2861_s0 + $0x9c] sm:$0xff] }
 0x63d   :  { %1238 = vmatpush1.bf16.msra.mxu0 %v2614_v15  ;;  %1814 = vmatpush3.bf16.msra.mxu1 %v2620_v16  ;;  %v1172_v15 = vunpack.c.l.bf16 %v1565_v10 }
 0x63e   :  { %1239 = vmatprep.subr.bf16.mxu0 %v2626_v17  ;;  %1815 = vmatprep.subr.bf16.mxu1 %v2077_v1 }
 0x641   :  { %1240 = vmatpush1.bf16.msra.mxu0 %v2633_v18  ;;  %1816 = vmatpush3.bf16.msra.mxu1 %v2639_v19 }
 0x642   :  { %1241 = vmatprep.subr.bf16.mxu0 %v2645_v20  ;;  %1817 = vmatprep.subr.bf16.mxu1 %v2077_v1 }
 0x645   :  { %1242 = vmatpush1.bf16.msra.mxu0 %v2652_v21  ;;  %1818 = vmatpush3.bf16.msra.mxu1 %v2658_v22  ;;  %v1189_v22 = vrot.slane %v1563_v2, 4  ;;  %v1887_v2 = vld [vmem:[%s2862_s3 + $0x28] sm:$0xff]  }
 0x646   :  { %1243 = vmatprep.subr.bf16.mxu0 %v2664_v23  ;;  %1819 = vmatprep.subr.bf16.mxu1 %v2077_v1 }
 0x649   :  { %1244 = vmatpush1.bf16.msra.mxu0 %v2671_v24  ;;  %1820 = vmatpush3.bf16.msra.mxu1 %v2677_v26  ;;  %v1190_v24 = vrot.slane %v1565_v10, 4  ;;  %v1891_v10 = vld [vmem:[%s2862_s3 + $0x8] sm:$0xff]  }
 0x64a   :  { %1245 = vmatprep.subr.bf16.mxu0 %v2683_v53  ;;  %1821 = vmatprep.subr.bf16.mxu1 %v2077_v1 }
 0x64d   :  { %1246 = vmatpush1.bf16.msra.mxu0 %v2690_v54  ;;  %1822 = vmatpush3.bf16.msra.mxu1 %v2696_v57  ;;  %v1193_v54 = vunpack.c.l.bf16 %v1189_v22 }
 0x64e   :  { %1247 = vmatprep.subr.bf16.mxu0 %v2702_v58  ;;  %1823 = vmatprep.subr.bf16.mxu1 %v2077_v1  ;;  %v1194_v58 = vunpack.c.l.bf16 %v1190_v24 }
 0x651   :  { %1248 = vmatpush1.bf16.msra.mxu0 %v2709_v60  ;;  %1824 = vmatpush3.bf16.msra.mxu1 %v2715_v62 }
 0x652   :  { %1829 = vmatprep.subr.bf16.mxu0 %v2077_v1 }
 0x6f4   :  { %v1121_v39 = vpop.f32.mrf.mxu0  ;;  %v1164_v52 = vpop.f32.mrf.mxu1 }
 0x6f5   :  { %v1122_v12 = vadd.f32 %v1121_v39, %v2309_v32  ;;  %v1165_v9 = vadd.f32 %v1164_v52, %v2320_v31  ;;  %v1889_v39 = vld [vmem:[%s2862_s3 + $0x18] sm:$0xff]   ;;  %v1890_v52 = vld [vmem:[%s2862_s3 + $0x10] sm:$0xff]  }
 0x6f6   :  { %v1123_v13 = vpop.f32.mrf.mxu0  ;;  %v1807_v48 = vpop.f32.mrf.mxu1 }
 0x6f7   :  { %v1173_v50 = vadd.f32 %v1171_v38, %v1122_v12  ;;  %v1124_v53 = vadd.f32 %v1123_v13, %v2316_v45  ;;  %v1888_v38 = vld [vmem:[%s2862_s3 + $0x20] sm:$0xff]   ;;  %v1571_v13 = vld [vmem:[%s2861_s0 + $0xa8] sm:$0xff] }
 0x6f8   :  { %v1125_v16 = vpop.f32.mrf.mxu0  ;;  %v1167_v17 = vpop.f32.mrf.mxu1  ;;  %v1892_v12 = vld [vmem:[%s2862_s3] sm:$0xff]   ;;  %v1317_v48 = vunpack.c.l.bf16 %v1571_v13 }
 0x6f9   :  { %v1567_v18 = vmul.f32 -1.442695, %v1173_v50  ;;  %v1126_v19 = vadd.f32 %v1125_v16, %v2309_v32  ;;  %v1195_v60 = vadd.f32 %v1193_v54, %v1124_v53  ;;  %v1168_v33 = vadd.f32 %v1167_v17, %v2320_v31  ;;  %v1573_v16 = vld [vmem:[%s2861_s0 + $0xb4] sm:$0xff] }
 0x6fa   :  { %v1808_v20 = vpop.f32.mrf.mxu1  ;;  %v1127_v26 = vpop.f32.mrf.mxu0  ;;  %v1335_v54 = vrot.slane %v1571_v13, 4 }
 0x6fb   :  { %2013 = vpow2.f32 %v1567_v18  ;;  %v1174_v21 = vadd.f32 %v1172_v15, %v1126_v19  ;;  %v1128_v57 = vadd.f32 %v1127_v26, %v2316_v45  ;;  %v1569_v47 = vmul.f32 -1.442695, %v1195_v60 }
 0x6fd   :  { %v1568_v23 = vmul.f32 -1.442695, %v1174_v21  ;;  %v1196_v62 = vadd.f32 %v1194_v58, %v1128_v57  ;;  %v1318_v21 = vunpack.c.l.bf16 %v1573_v16  ;;  %v1336_v58 = vrot.slane %v1573_v16, 4 }
 0x6ff   :  { %2015 = vpow2.f32 %v1568_v23  ;;  %v1570_v56 = vmul.f32 -1.442695, %v1196_v62 }
 0x708   :  { %v2014_v35 = vpop.eup %2013 }
 0x709   :  { %v1181_v55 = vadd.f32 1.0, %v2014_v35  ;;  %v1339_v35 = vunpack.c.l.bf16 %v1335_v54 }
 0x70b   :  { %2017 = vrcp.f32 %v1181_v55  ;;  %v1340_v55 = vunpack.c.l.bf16 %v1336_v58 }
 0x70c   :  { %v2016_v43 = vpop.eup %2015  ;;  %2019 = vpow2.f32 %v1569_v47 }
 0x70d   :  { %v1182_v51 = vadd.f32 1.0, %v2016_v43  ;;  %2021 = vpow2.f32 %v1570_v56 }
 0x70f   :  { %2023 = vrcp.f32 %v1182_v51 }
 0x718   :  { %v2018_v14 = vpop.eup %2017 }
 0x719   :  { %v2020_v63 = vpop.eup %2019  ;;  %v1209_v25 = vmul.f32 %v2018_v14, %v1165_v9 }
 0x71a   :  { %v2022_v27 = vpop.eup %2021  ;;  %v1203_v37 = vadd.f32 1.0, %v2020_v63  ;;  %v1572_v63 = vld [vmem:[%s2861_s0 + $0xb0] ss:$12 sps:$4 sm:$0xff]  }
 0x71b   :  { %v1213_v29 = vadd.f32 %v1211_v11, %v1209_v25  ;;  %v1204_v3 = vadd.f32 1.0, %v2022_v27 }
 0x71c   :  { %v2024_v36 = vpop.eup %2023 }
 0x71d   :  { %2025 = vtanh.f32 %v1213_v29  ;;  %v1210_v59 = vmul.f32 %v2024_v36, %v1168_v33 }
 0x71e   :  { %2027 = vrcp.f32 %v1203_v37 }
 0x71f   :  { %v1214_v7 = vadd.f32 %v1212_v34, %v1210_v59  ;;  %v1358_v59 = vunpack.c.h.bf16 %v1572_v63 }
 0x721   :  { %2029 = vtanh.f32 %v1214_v7 }
 0x722   :  { %2031 = vrcp.f32 %v1204_v3 }
 0x72a   :  { %v2026_v4 = vpop.eup %2025 }
 0x72b   :  { %v1217_v5 = vsub.f32 %v2737_v0, %v2026_v4  ;;  %v2028_v44 = vpop.eup %2027  ;;  %v1885_v0 = vld [vmem:[%s2862_s3 + $0x38] sm:$0xff]  }
 0x72d   :  { %v1219_v61 = vmul.f32 %v2028_v44, %v1217_v5 }
 0x72e   :  { %v2030_v49 = vpop.eup %2029 }
 0x72f   :  { %v1218_v46 = vsub.f32 %v2739_v6, %v2030_v49  ;;  %v2032_v41 = vpop.eup %2031  ;;  %v2794_v28 = vadd.f32 %v2026_v4, %v1219_v61  ;;  %v1886_v6 = vld [vmem:[%s2862_s3 + $0x30] sm:$0xff]  }
 0x731   :  { %v1220_v42 = vmul.f32 %v2032_v41, %v1218_v46 }
 0x733   :  { %v2796_v40 = vadd.f32 %v2030_v49, %v1220_v42 }
 0x735   :  { %v1232_v30 = vpack.c.bf16 %v2796_v40, %v2794_v28 }
 0x737   :  { %1266 = vmatmul.mubr.bf16.vlgmr.msra.gmra.mxu0 %v1232_v30  ;;  %1826 = vmatmul.mubr.bf16.vlgmr.msra.gmra.mxu1 %v1232_v30 }
 0x738   :  { %1845 = vmatprep.mubr.msk.bf16.mxu0 %vm2079_vm0, %v2077_v1  ;;  %1830 = vmatpush3.bf16.msra.mxu0 %v1885_v0 }
 0x739   :  { %1831 = vmatprep.subr.bf16.mxu0 %v2077_v1 }
 0x73c   :  { %1832 = vmatpush3.bf16.msra.mxu0 %v1886_v6 }
 0x73d   :  { %1833 = vmatprep.subr.bf16.mxu0 %v2077_v1 }
 0x740   :  { %1834 = vmatpush3.bf16.msra.mxu0 %v1887_v2 }
 0x741   :  { %1835 = vmatprep.subr.bf16.mxu0 %v2077_v1 }
 0x744   :  { %1836 = vmatpush3.bf16.msra.mxu0 %v1888_v38 }
 0x745   :  { %1837 = vmatprep.subr.bf16.mxu0 %v2077_v1 }
 0x748   :  { %1838 = vmatpush3.bf16.msra.mxu0 %v1889_v39  ;;  %v1579_v39 = vld [vmem:[%s2863_s4] ss:$0 sm:$0xff] }
 0x749   :  { %1839 = vmatprep.subr.bf16.mxu0 %v2077_v1 }
 0x74c   :  { %1840 = vmatpush3.bf16.msra.mxu0 %v1890_v52 }
 0x74d   :  { %1841 = vmatprep.subr.bf16.mxu0 %v2077_v1 }
 0x750   :  { %1842 = vmatpush3.bf16.msra.mxu0 %v1891_v10 }
 0x751   :  { %1843 = vmatprep.subr.bf16.mxu0 %v2077_v1 }
 0x754   :  { %1844 = vmatpush3.bf16.msra.mxu0 %v1892_v12 }
 0x7f7   :  { %v1267_v50 = vpop.f32.mrf.mxu0  ;;  %v1310_v15 = vpop.f32.mrf.mxu1 }
 0x7f8   :  { %v1268_v17 = vadd.f32 %v1267_v50, %v2309_v32  ;;  %v1311_v25 = vadd.f32 %v1310_v15, %v2320_v31 }
 0x7f9   :  { %v1269_v18 = vpop.f32.mrf.mxu0  ;;  %v1827_v19 = vpop.f32.mrf.mxu1 }
 0x7fa   :  { %v1319_v20 = vadd.f32 %v1317_v48, %v1268_v17  ;;  %v1270_v62 = vadd.f32 %v1269_v18, %v2316_v45 }
 0x7fb   :  { %v1271_v22 = vpop.f32.mrf.mxu0  ;;  %v1313_v1 = vpop.f32.mrf.mxu1 }
 0x7fc   :  { %v1575_v23 = vmul.f32 -1.442695, %v1319_v20  ;;  %v1272_v24 = vadd.f32 %v1271_v22, %v2309_v32  ;;  %v1341_v56 = vadd.f32 %v1339_v35, %v1270_v62  ;;  %v1314_v37 = vadd.f32 %v1313_v1, %v2320_v31 }
 0x7fd   :  { %v1828_v26 = vpop.f32.mrf.mxu1  ;;  %v1273_v60 = vpop.f32.mrf.mxu0 }
 0x7fe   :  { %2033 = vpow2.f32 %v1575_v23  ;;  %v1320_v53 = vadd.f32 %v1318_v21, %v1272_v24  ;;  %v1274_v47 = vadd.f32 %v1273_v60, %v2316_v45  ;;  %v1577_v8 = vmul.f32 -1.442695, %v1341_v56 }
 0x7ff   :  { %v1357_v45 = vunpack.c.l.bf16 %v1572_v63 }
 0x800   :  { %v1576_v57 = vmul.f32 -1.442695, %v1320_v53  ;;  %v1342_v43 = vadd.f32 %v1340_v55, %v1274_v47 }
 0x802   :  { %2035 = vpow2.f32 %v1576_v57  ;;  %v1578_v32 = vmul.f32 -1.442695, %v1342_v43 }
 0x80b   :  { %v2034_v51 = vpop.eup %2033 }
 0x80c   :  { %v1327_v9 = vadd.f32 1.0, %v2034_v51 }
 0x80e   :  { %2037 = vrcp.f32 %v1327_v9 }
 0x80f   :  { %v2036_v11 = vpop.eup %2035  ;;  %2039 = vpow2.f32 %v1577_v8 }
 0x810   :  { %v1328_v14 = vadd.f32 1.0, %v2036_v11  ;;  %2041 = vpow2.f32 %v1578_v32 }
 0x812   :  { %2043 = vrcp.f32 %v1328_v14 }
 0x81b   :  { %v2038_v27 = vpop.eup %2037 }
 0x81c   :  { %v2040_v29 = vpop.eup %2039  ;;  %v1355_v33 = vmul.f32 %v2038_v27, %v1311_v25 }
 0x81d   :  { %v2042_v34 = vpop.eup %2041  ;;  %v1349_v3 = vadd.f32 1.0, %v2040_v29 }
 0x81e   :  { %v1359_v36 = vadd.f32 %v1357_v45, %v1355_v33  ;;  %v1350_v44 = vadd.f32 1.0, %v2042_v34 }
 0x81f   :  { %v2044_v7 = vpop.eup %2043 }
 0x820   :  { %2045 = vtanh.f32 %v1359_v36  ;;  %v1356_v4 = vmul.f32 %v2044_v7, %v1314_v37 }
 0x821   :  { %2047 = vrcp.f32 %v1349_v3 }
 0x822   :  { %v1360_v5 = vadd.f32 %v1358_v59, %v1356_v4 }
 0x824   :  { %2049 = vtanh.f32 %v1360_v5 }
 0x825   :  { %2051 = vrcp.f32 %v1350_v44 }
 0x82d   :  { %v2046_v49 = vpop.eup %2045 }
 0x82e   :  { %v1363_v46 = vsub.f32 %v2794_v28, %v2046_v49  ;;  %v2048_v61 = vpop.eup %2047 }
 0x830   :  { %v1365_v30 = vmul.f32 %v2048_v61, %v1363_v46 }
 0x831   :  { %v2050_v41 = vpop.eup %2049 }
 0x832   :  { %v1364_v42 = vsub.f32 %v2796_v40, %v2050_v41  ;;  %v2052_v0 = vpop.eup %2051  ;;  %v1367_v6 = vadd.f32 %v2046_v49, %v1365_v30 }
 0x834   :  { %v1366_v31 = vmul.f32 %v2052_v0, %v1364_v42 }
 0x836   :  { %v1368_v2 = vadd.f32 %v2050_v41, %v1366_v31 }
 0x838   :  { %v1376_v38 = vpack.c.bf16 %v1368_v2, %v1367_v6 }
 0x83a   :  { %1846 = vmatmul.mubr.bf16.vlgmr.msra.gmra.mxu0 %v1376_v38 }
 0x8fa   :  { %v1482_v52 = vpop.f32.mrf.mxu0 }
 0x8fb   :  { %v1483_v10 = vadd.f32 %v1579_v39, %v1482_v52 }
 0x8fc   :  { %v1847_v12 = vpop.f32.mrf.mxu0 }
 0x8fd   :  { %1489 = vst [vmem:[%s2864_s5] sm:$0xff] %v1483_v10 }
 0x8fe   :  { %v1485_v28 = vpop.f32.mrf.mxu0 }
 0x8ff   :  { %v1486_v40 = vadd.f32 %v1579_v39, %v1485_v28 }
 0x900   :  { %v1848_v13 = vpop.f32.mrf.mxu0 }
 0x901   :  { %1490 = vst [vmem:[%s2864_s5 + $0x8] sm:$0xff] %v1486_v40 }

</bundles_post_ra>
